<compile_context>
chip_gen: v5e
topology: v5e:2x2
jax: 0.10.0
libtpu: 0.0.40
codegen_flags: <defaults>
</compile_context>

<pallas_src>
import jax
import jax.numpy as jnp
from jax.experimental import pallas as pl
from jax.experimental.pallas import tpu as pltpu

BN_EPS = 1e-5
CPAD = 128                    # lane-dense channel padding for every conv output
CIN1_PAD = 4                  # pad the 3 RGB input channels -> 4 (K1 = 9*4 = 36)
NEG_BIG = -1e30               # masks padded logits out of the softmax
VMEM_LIMIT = 32 * 1024 * 1024
TILE_M = 512                  # target rows per matmul / pool tile


# ----------------------------- Pallas kernels ------------------------------ #

def conv_matmul_stats_kernel(p_ref, w_ref, y_ref, stats_ref):
    """One M-tile of the im2col matmul + per-tile BatchNorm partial statistics.

    p_ref:     (TM, K)    bf16 im2col patches for this tile
    w_ref:     (K, CPAD)  bf16 weight matrix (constant index -> resident in VMEM)
    y_ref:     (TM, CPAD) bf16 raw (pre-BN) conv output tile
    stats_ref: (8, CPAD)  f32 per-tile partials: row0 = sum, row1 = sum(x^2)
    """
    y = jnp.dot(p_ref[...], w_ref[...], preferred_element_type=jnp.float32)
    y_ref[...] = y.astype(y_ref.dtype)
    s = jnp.sum(y, axis=0, keepdims=True)          # (1, CPAD) f32
    sq = jnp.sum(y * y, axis=0, keepdims=True)     # (1, CPAD) f32
    pad = jnp.zeros((6, y.shape[1]), jnp.float32)
    stats_ref[...] = jnp.concatenate([s, sq, pad], axis=0)


def bn_relu_maxpool_kernel(t_ref, scale_ref, shift_ref, o_ref):
    """Fused BN-normalize + ReLU + 3x3 MaxPool for one tile of pooled rows.

    t_ref:  (9, TPM, CPAD) bf16 raw conv values for the 9 taps of each output
    scale_ref/shift_ref: (1, CPAD) f32 folded BN affine
    o_ref:  (TPM, CPAD) bf16 pooled output
    """
    z = jnp.maximum(t_ref[...].astype(jnp.float32) * scale_ref[...]
                    + shift_ref[...], 0.0)
    o_ref[...] = jnp.max(z, axis=0).astype(o_ref.dtype)


def tail_kernel(p_ref, w3_ref, g_ref, b_ref, avg_ref, wl_ref, bl_ref,
                feat_ref, prob_ref):
    """conv3 + BN3 + ReLU + global avg pool + Linear + Softmax in one kernel.

    p_ref:   (M3, K3)   bf16 conv3 im2col patches (M3 = N*OH3*OW3)
    w3_ref:  (K3, CPAD) bf16 conv3 weight matrix
    g_ref/b_ref: (1, CPAD) f32 BN3 gamma / beta
    avg_ref: (N, M3)    f32 per-sample spatial averaging matrix
    wl_ref:  (CPAD, OPAD) bf16 padded classifier weights
    bl_ref:  (1, OPAD)  f32 padded classifier bias (NEG_BIG on padded columns)
    feat_ref:(N, CPAD)  f32 pooled features; prob_ref: (N, OPAD) f32 softmax
    """
    y = jnp.dot(p_ref[...], w3_ref[...], preferred_element_type=jnp.float32)
    # Train-mode BatchNorm over all batch*spatial rows (mean-centred variance).
    mean = jnp.mean(y, axis=0, keepdims=True)
    var = jnp.mean((y - mean) * (y - mean), axis=0, keepdims=True)
    inv = jax.lax.rsqrt(var + BN_EPS)
    z = jnp.maximum((y - mean) * (inv * g_ref[...]) + b_ref[...], 0.0)
    # AdaptiveAvgPool2d((1,1)): per-sample spatial mean via a tiny f32 matmul.
    feat = jnp.dot(avg_ref[...], z, preferred_element_type=jnp.float32)
    feat_ref[...] = feat
    # Linear + Softmax; padded logits carry a -1e30 bias so exp underflows to 0.
    logits = jnp.dot(feat.astype(wl_ref.dtype), wl_ref[...],
                     preferred_element_type=jnp.float32) + bl_ref[...]
    m = jnp.max(logits, axis=-1, keepdims=True)
    e = jnp.exp(logits - m)
    prob_ref[...] = e / jnp.sum(e, axis=-1, keepdims=True)   # exact normalization


# ------------------------------- JAX glue ---------------------------------- #

def _pick_tile(m, target=TILE_M):
    """Largest tile <= target that evenly divides m (multiple of 8), else full m."""
    if m <= target:
        return m
    for t in (target, 256, 128, 64, 32, 16, 8):
        if m % t == 0:
            return t
    return m


def _im2col(x, k, stride, padding):
    """x: (N,H,W,C) -> (N*OH*OW, k*k*C) patches; per-row layout is (ki, kj, c)."""
    n, h, w, c = x.shape
    xp = jnp.pad(x, ((0, 0), (padding, padding), (padding, padding), (0, 0)))
    oh = (h + 2 * padding - k) // stride + 1
    ow = (w + 2 * padding - k) // stride + 1
    taps = []
    for i in range(k):
        for j in range(k):
            taps.append(xp[:, i:i + stride * (oh - 1) + 1:stride,
                           j:j + stride * (ow - 1) + 1:stride, :])
    patches = jnp.concatenate(taps, axis=-1)           # (N, OH, OW, k*k*C)
    return patches.reshape(n * oh * ow, k * k * c), oh, ow


def _pool_taps(y, k, stride, padding):
    """Gather the 9 pooling taps of the RAW bf16 conv output.

    Edge-replication padding is exactly equivalent to PyTorch's implicit -inf
    padding here: every replicated element duplicates a member of the same 3x3
    window (k=3, stride=2, padding<=1), so the per-window max is unchanged even
    after the per-element BN affine is applied inside the kernel.
    """
    assert k == 3 and stride == 2 and padding <= 1, "edge-pad trick needs k=3,s=2,p<=1"
    n, h, w, c = y.shape
    if padding:
        y = jnp.pad(y, ((0, 0), (padding, padding), (padding, padding), (0, 0)),
                    mode="edge")
    poh = (h + 2 * padding - k) // stride + 1
    pow_ = (w + 2 * padding - k) // stride + 1
    taps = []
    for i in range(k):
        for j in range(k):
            taps.append(y[:, i:i + stride * (poh - 1) + 1:stride,
                          j:j + stride * (pow_ - 1) + 1:stride, :])
    return jnp.stack(taps, axis=0).reshape(k * k, n * poh * pow_, c), poh, pow_


def _conv_weight_matrix(w_oihw, cin_pad, cout_pad):
    """(Cout,Cin,kh,kw) -> zero-padded (kh*kw*cin_pad, cout_pad) bf16 matrix."""
    cout, cin, kh, kw = w_oihw.shape
    wp = jnp.pad(w_oihw, ((0, cout_pad - cout), (0, cin_pad - cin), (0, 0), (0, 0)))
    w_mat = jnp.transpose(wp, (2, 3, 1, 0)).reshape(kh * kw * cin_pad, cout_pad)
    return w_mat.astype(jnp.bfloat16)


def conv_stage(x, w_oihw, *, stride, padding, cout_pad=CPAD):
    """Pass 1 of a conv layer: M-tiled matmul + per-tile BN partial statistics.

    x: (N,H,W,Cin_pad). Returns bf16 raw conv output (N,OH,OW,cout_pad),
    per-channel (sum, sumsq) f32 vectors and the reduced-row count M = N*OH*OW.
    """
    n, h, w, cin_pad = x.shape
    k = w_oihw.shape[2]
    patches, oh, ow = _im2col(x.astype(jnp.bfloat16), k, stride, padding)
    w_mat = _conv_weight_matrix(w_oihw, cin_pad, cout_pad)
    m, kk = patches.shape
    tm = _pick_tile(m)
    nt = m // tm
    y, stats = pl.pallas_call(
        conv_matmul_stats_kernel,
        out_shape=(jax.ShapeDtypeStruct((m, cout_pad), jnp.bfloat16),
                   jax.ShapeDtypeStruct((nt * 8, cout_pad), jnp.float32)),
        grid=(nt,),
        in_specs=[pl.BlockSpec((tm, kk), lambda i: (i, 0)),
                  pl.BlockSpec((kk, cout_pad), lambda i: (0, 0))],
        out_specs=(pl.BlockSpec((tm, cout_pad), lambda i: (i, 0)),
                   pl.BlockSpec((8, cout_pad), lambda i: (i, 0))),
        compiler_params=pltpu.CompilerParams(
            dimension_semantics=("parallel",),   # per-tile partial stats -> megacore OK
            vmem_limit_bytes=VMEM_LIMIT),
    )(patches, w_mat)
    stats = stats.reshape(nt, 8, cout_pad)
    s1 = jnp.sum(stats[:, 0, :], axis=0)
    s2 = jnp.sum(stats[:, 1, :], axis=0)
    return y.reshape(n, oh, ow, cout_pad), s1, s2, m


def _bn_affine(s1, s2, gamma, beta, count, cpad=CPAD):
    """Fold train-mode BatchNorm (biased batch variance) into scale/shift."""
    mean = s1 / count
    var = jnp.maximum(s2 / count - mean * mean, 0.0)
    inv = jax.lax.rsqrt(var + BN_EPS)
    g = jnp.pad(gamma, (0, cpad - gamma.shape[0]))
    b = jnp.pad(beta, (0, cpad - beta.shape[0]))
    scale = g * inv
    shift = b - mean * scale
    return scale.reshape(1, cpad), shift.reshape(1, cpad)


def bn_relu_maxpool(y, scale, shift, *, k, stride, padding):
    """Pass 2: fused BN-normalize + ReLU + MaxPool2d. y: (N,H,W,CPAD) bf16 raw conv."""
    n, h, w, c = y.shape
    taps, poh, pow_ = _pool_taps(y, k, stride, padding)    # bf16 taps
    pm = taps.shape[1]
    tpm = _pick_tile(pm)
    out = pl.pallas_call(
        bn_relu_maxpool_kernel,
        out_shape=jax.ShapeDtypeStruct((pm, c), jnp.bfloat16),
        grid=(pm // tpm,),
        in_specs=[pl.BlockSpec((k * k, tpm, c), lambda i: (0, i, 0)),
                  pl.BlockSpec((1, c), lambda i: (0, 0)),
                  pl.BlockSpec((1, c), lambda i: (0, 0))],
        out_specs=pl.BlockSpec((tpm, c), lambda i: (i, 0)),
        compiler_params=pltpu.CompilerParams(
            dimension_semantics=("parallel",),
            vmem_limit_bytes=VMEM_LIMIT),
    )(taps, scale, shift)
    return out.reshape(n, poh, pow_, c)


def fused_tail(x2, w3_oihw, gamma3, beta3, w_lin, b_lin, *, stride, padding,
               opad=CPAD):
    """conv3 + BN3 + ReLU + AdaptiveAvgPool2d((1,1)) + Linear + Softmax, one kernel."""
    n = x2.shape[0]
    cin_pad = x2.shape[-1]
    patches, oh, ow = _im2col(x2.astype(jnp.bfloat16), 3, stride, padding)
    w3_mat = _conv_weight_matrix(w3_oihw, cin_pad, CPAD)
    m3, kk = patches.shape
    s3 = oh * ow
    c = CPAD
    o = w_lin.shape[0]
    g = jnp.pad(gamma3, (0, c - gamma3.shape[0])).reshape(1, c)
    b = jnp.pad(beta3, (0, c - beta3.shape[0])).reshape(1, c)
    avg = (jnp.arange(m3)[None, :] // s3
           == jnp.arange(n)[:, None]).astype(jnp.float32) / float(s3)
    wl = jnp.zeros((c, opad), jnp.float32).at[:, :o].set(w_lin.T).astype(jnp.bfloat16)
    bl = jnp.full((1, opad), NEG_BIG, jnp.float32).at[0, :o].set(b_lin)
    feat, probs = pl.pallas_call(
        tail_kernel,
        out_shape=(jax.ShapeDtypeStruct((n, c), jnp.float32),
                   jax.ShapeDtypeStruct((n, opad), jnp.float32)),
        grid=(1,),
        in_specs=[pl.BlockSpec((m3, kk), lambda i: (0, 0)),
                  pl.BlockSpec((kk, c), lambda i: (0, 0)),
                  pl.BlockSpec((1, c), lambda i: (0, 0)),
                  pl.BlockSpec((1, c), lambda i: (0, 0)),
                  pl.BlockSpec((n, m3), lambda i: (0, 0)),
                  pl.BlockSpec((c, opad), lambda i: (0, 0)),
                  pl.BlockSpec((1, opad), lambda i: (0, 0))],
        out_specs=(pl.BlockSpec((n, c), lambda i: (0, 0)),
                   pl.BlockSpec((n, opad), lambda i: (0, 0))),
        compiler_params=pltpu.CompilerParams(
            dimension_semantics=("arbitrary",),
            vmem_limit_bytes=VMEM_LIMIT),
    )(patches, w3_mat, g, b, avg, wl, bl)
    return feat, probs[:, :o]


# ------------------------------ Model wrapper ------------------------------- #

def init_params(key, output_num=10):
    ks = jax.random.split(key, 4)
    return {
        # Conv2d weights in PyTorch layout (Cout, Cin, kh, kw); bias=False per spec.
        "w1": 0.1 * jax.random.normal(ks[0], (64, 3, 3, 3), jnp.float32),
        "g1": jnp.ones((64,), jnp.float32), "b1": jnp.zeros((64,), jnp.float32),
        "w2": 0.1 * jax.random.normal(ks[1], (96, 64, 3, 3), jnp.float32),
        "g2": jnp.ones((96,), jnp.float32), "b2": jnp.zeros((96,), jnp.float32),
        "w3": 0.1 * jax.random.normal(ks[2], (128, 96, 3, 3), jnp.float32),
        "g3": jnp.ones((128,), jnp.float32), "b3": jnp.zeros((128,), jnp.float32),
        "wl": 0.1 * jax.random.normal(ks[3], (output_num, 128), jnp.float32),
        "bl": jnp.zeros((output_num,), jnp.float32),
    }


@jax.jit
def ordinary_cnn_forward(x_nchw, params):
    x = jnp.transpose(x_nchw, (0, 2, 3, 1))                      # NCHW -> NHWC
    x = jnp.pad(x, ((0, 0), (0, 0), (0, 0), (0, CIN1_PAD - x.shape[-1])))

    # conv1 + BN1 + ReLU + pool1
    y, s1, s2, m = conv_stage(x, params["w1"], stride=2, padding=1)
    scale, shift = _bn_affine(s1, s2, params["g1"], params["b1"], float(m))
    x = bn_relu_maxpool(y, scale, shift, k=3, stride=2, padding=1)

    # conv2 + BN2 + ReLU + pool2
    y, s1, s2, m = conv_stage(x, params["w2"], stride=2, padding=1)
    scale, shift = _bn_affine(s1, s2, params["g2"], params["b2"], float(m))
    x = bn_relu_maxpool(y, scale, shift, k=3, stride=2, padding=0)

    # conv3 + BN3 + ReLU + global avg pool + Linear + Softmax (fused tail kernel)
    feature, probs = fused_tail(x, params["w3"], params["g3"], params["b3"],
                                params["wl"], params["bl"], stride=2, padding=1)
    return feature, probs


if __name__ == "__main__":
    key = jax.random.PRNGKey(0)
    kx, kp = jax.random.split(key)
    # CIFAR-like input: batch=2, channels=3, 32x32 (minimum that survives pool2).
    x = jax.random.normal(kx, (2, 3, 32, 32), jnp.float32)
    params = init_params(kp, output_num=10)

    feature, probs = ordinary_cnn_forward(x, params)
    jax.block_until_ready((feature, probs))

    assert feature.shape == (2, 128)
    assert probs.shape == (2, 10)
    assert bool(jnp.all(jnp.isfinite(feature))) and bool(jnp.all(jnp.isfinite(probs)))
    assert bool(jnp.allclose(jnp.sum(probs, axis=1), 1.0, atol=1e-3))
    print("KERNEL_OK")
</pallas_src>

<mosaic_0001>
module attributes {stable_mosaic.version = 11 : i64} {
  func.func @conv_matmul_stats_kernel(%arg0: i32, %arg1: memref<512x36xbf16, #tpu.memory_space<vmem>>, %arg2: memref<36x128xbf16, #tpu.memory_space<vmem>>, %arg3: memref<512x128xbf16, #tpu.memory_space<vmem>>, %arg4: memref<8x128xf32, #tpu.memory_space<vmem>>) attributes {dimension_semantics = [#tpu.dimension_semantics<parallel>], iteration_bounds = array<i64: 1>, scalar_prefetch = 0 : i64, scratch_operands = 0 : i64, tpu.core_type = #tpu.core_type<tc>, window_params = [{transform_indices = @transform_0, window_bounds = array<i64: 512, 36>}, {pipeline_mode = #tpu.pipeline_mode<synchronous>, transform_indices = @transform_1, window_bounds = array<i64: 36, 128>}, {transform_indices = @transform_2, window_bounds = array<i64: 512, 128>}, {transform_indices = @transform_3, window_bounds = array<i64: 8, 128>}]} {
    %c0 = arith.constant 0 : index
    %c0_0 = arith.constant 0 : index
    %0 = vector.load %arg1[%c0, %c0_0] : memref<512x36xbf16, #tpu.memory_space<vmem>>, vector<512x36xbf16>
    %c0_1 = arith.constant 0 : index
    %c0_2 = arith.constant 0 : index
    %1 = vector.load %arg2[%c0_1, %c0_2] : memref<36x128xbf16, #tpu.memory_space<vmem>>, vector<36x128xbf16>
    %cst = arith.constant dense<0.000000e+00> : vector<512x128xf32>
    %2 = tpu.matmul %0, %1, %cst {dimension_numbers = #tpu.dot_dimension_numbers<[1], [0], [0], [1], [0, 0, 1, 1], [], []>} : vector<512x36xbf16>, vector<36x128xbf16>, vector<512x128xf32> -> vector<512x128xf32>
    %3 = arith.truncf %2 : vector<512x128xf32> to vector<512x128xbf16>
    %c0_3 = arith.constant 0 : index
    %c0_4 = arith.constant 0 : index
    %4 = vector.load %arg3[%c0_3, %c0_4] : memref<512x128xbf16, #tpu.memory_space<vmem>>, vector<512x128xbf16>
    tpu.vector_store %arg3[%c0_3, %c0_4], %3 {strides = array<i32>} : memref<512x128xbf16, #tpu.memory_space<vmem>>, vector<512x128xbf16>,
    %cst_5 = arith.constant dense<0.000000e+00> : vector<128xf32>
    %5 = vector.multi_reduction <add>, %2, %cst_5 [0] : vector<512x128xf32> to vector<128xf32>
    %6 = vector.shape_cast %5 : vector<128xf32> to vector<1x128xf32>
    %7 = arith.mulf %2, %2 : vector<512x128xf32>
    %cst_6 = arith.constant dense<0.000000e+00> : vector<128xf32>
    %8 = vector.multi_reduction <add>, %7, %cst_6 [0] : vector<512x128xf32> to vector<128xf32>
    %9 = vector.shape_cast %8 : vector<128xf32> to vector<1x128xf32>
    %cst_7 = arith.constant 0.000000e+00 : f32
    %10 = vector.broadcast %cst_7 : f32 to vector<6x128xf32>
    %11 = tpu.concatenate %6, %9, %10 in 0 : vector<1x128xf32>, vector<1x128xf32>, vector<6x128xf32> -> vector<8x128xf32>
    %c0_8 = arith.constant 0 : index
    %c0_9 = arith.constant 0 : index
    %12 = vector.load %arg4[%c0_8, %c0_9] : memref<8x128xf32, #tpu.memory_space<vmem>>, vector<8x128xf32>
    tpu.vector_store %arg4[%c0_8, %c0_9], %11 {strides = array<i32>} : memref<8x128xf32, #tpu.memory_space<vmem>>, vector<8x128xf32>,
    return
  }
  func.func @transform_0(%arg0: i32) -> (i32, i32) {
    %c0_i32 = arith.constant 0 : i32
    %c0_i32_0 = arith.constant 0 : i32
    return %arg0, %c0_i32 : i32, i32
  }
  func.func @transform_1(%arg0: i32) -> (i32, i32) {
    %c0_i32 = arith.constant 0 : i32
    %c0_i32_0 = arith.constant 0 : i32
    %c0_i32_1 = arith.constant 0 : i32
    return %c0_i32, %c0_i32_0 : i32, i32
  }
  func.func @transform_2(%arg0: i32) -> (i32, i32) {
    %c0_i32 = arith.constant 0 : i32
    %c0_i32_0 = arith.constant 0 : i32
    return %arg0, %c0_i32 : i32, i32
  }
  func.func @transform_3(%arg0: i32) -> (i32, i32) {
    %c0_i32 = arith.constant 0 : i32
    %c0_i32_0 = arith.constant 0 : i32
    return %arg0, %c0_i32 : i32, i32
  }
}

module attributes {stable_mosaic.version = 11 : i64} {
  func.func @bn_relu_maxpool_kernel(%arg0: i32, %arg1: memref<9x128x128xbf16, #tpu.memory_space<vmem>>, %arg2: memref<1x128xf32, #tpu.memory_space<vmem>>, %arg3: memref<1x128xf32, #tpu.memory_space<vmem>>, %arg4: memref<128x128xbf16, #tpu.memory_space<vmem>>) attributes {dimension_semantics = [#tpu.dimension_semantics<parallel>], iteration_bounds = array<i64: 1>, scalar_prefetch = 0 : i64, scratch_operands = 0 : i64, tpu.core_type = #tpu.core_type<tc>, window_params = [{transform_indices = @transform_0, window_bounds = array<i64: 9, 128, 128>}, {pipeline_mode = #tpu.pipeline_mode<synchronous>, transform_indices = @transform_1, window_bounds = array<i64: 1, 128>}, {pipeline_mode = #tpu.pipeline_mode<synchronous>, transform_indices = @transform_2, window_bounds = array<i64: 1, 128>}, {transform_indices = @transform_3, window_bounds = array<i64: 128, 128>}]} {
    %c0 = arith.constant 0 : index
    %c0_0 = arith.constant 0 : index
    %c0_1 = arith.constant 0 : index
    %0 = vector.load %arg1[%c0, %c0_0, %c0_1] : memref<9x128x128xbf16, #tpu.memory_space<vmem>>, vector<9x128x128xbf16>
    %1 = arith.extf %0 : vector<9x128x128xbf16> to vector<9x128x128xf32>
    %c0_2 = arith.constant 0 : index
    %c0_3 = arith.constant 0 : index
    %2 = vector.load %arg2[%c0_2, %c0_3] : memref<1x128xf32, #tpu.memory_space<vmem>>, vector<1x128xf32>
    %3 = vector.shape_cast %2 : vector<1x128xf32> to vector<1x1x128xf32>
    %4 = vector.broadcast %3 : vector<1x1x128xf32> to vector<9x128x128xf32>
    %5 = arith.mulf %1, %4 : vector<9x128x128xf32>
    %c0_4 = arith.constant 0 : index
    %c0_5 = arith.constant 0 : index
    %6 = vector.load %arg3[%c0_4, %c0_5] : memref<1x128xf32, #tpu.memory_space<vmem>>, vector<1x128xf32>
    %7 = vector.shape_cast %6 : vector<1x128xf32> to vector<1x1x128xf32>
    %8 = vector.broadcast %7 : vector<1x1x128xf32> to vector<9x128x128xf32>
    %9 = arith.addf %5, %8 : vector<9x128x128xf32>
    %cst = arith.constant 0.000000e+00 : f32
    %10 = vector.broadcast %cst : f32 to vector<9x128x128xf32>
    %11 = arith.maximumf %9, %10 : vector<9x128x128xf32>
    %cst_6 = arith.constant dense<0xFF800000> : vector<128x128xf32>
    %12 = vector.multi_reduction <maximumf>, %11, %cst_6 [0] : vector<9x128x128xf32> to vector<128x128xf32>
    %13 = arith.truncf %12 : vector<128x128xf32> to vector<128x128xbf16>
    %c0_7 = arith.constant 0 : index
    %c0_8 = arith.constant 0 : index
    %14 = vector.load %arg4[%c0_7, %c0_8] : memref<128x128xbf16, #tpu.memory_space<vmem>>, vector<128x128xbf16>
    tpu.vector_store %arg4[%c0_7, %c0_8], %13 {strides = array<i32>} : memref<128x128xbf16, #tpu.memory_space<vmem>>, vector<128x128xbf16>,
    return
  }
  func.func @transform_0(%arg0: i32) -> (i32, i32, i32) {
    %c0_i32 = arith.constant 0 : i32
    %c0_i32_0 = arith.constant 0 : i32
    %c0_i32_1 = arith.constant 0 : i32
    return %c0_i32, %arg0, %c0_i32_0 : i32, i32, i32
  }
  func.func @transform_1(%arg0: i32) -> (i32, i32) {
    %c0_i32 = arith.constant 0 : i32
    %c0_i32_0 = arith.constant 0 : i32
    %c0_i32_1 = arith.constant 0 : i32
    return %c0_i32, %c0_i32_0 : i32, i32
  }
  func.func @transform_2(%arg0: i32) -> (i32, i32) {
    %c0_i32 = arith.constant 0 : i32
    %c0_i32_0 = arith.constant 0 : i32
    %c0_i32_1 = arith.constant 0 : i32
    return %c0_i32, %c0_i32_0 : i32, i32
  }
  func.func @transform_3(%arg0: i32) -> (i32, i32) {
    %c0_i32 = arith.constant 0 : i32
    %c0_i32_0 = arith.constant 0 : i32
    return %arg0, %c0_i32 : i32, i32
  }
}

module attributes {stable_mosaic.version = 11 : i64} {
  func.func @conv_matmul_stats_kernel(%arg0: i32, %arg1: memref<32x1152xbf16, #tpu.memory_space<vmem>>, %arg2: memref<1152x128xbf16, #tpu.memory_space<vmem>>, %arg3: memref<32x128xbf16, #tpu.memory_space<vmem>>, %arg4: memref<8x128xf32, #tpu.memory_space<vmem>>) attributes {dimension_semantics = [#tpu.dimension_semantics<parallel>], iteration_bounds = array<i64: 1>, scalar_prefetch = 0 : i64, scratch_operands = 0 : i64, tpu.core_type = #tpu.core_type<tc>, window_params = [{transform_indices = @transform_0, window_bounds = array<i64: 32, 1152>}, {pipeline_mode = #tpu.pipeline_mode<synchronous>, transform_indices = @transform_1, window_bounds = array<i64: 1152, 128>}, {transform_indices = @transform_2, window_bounds = array<i64: 32, 128>}, {transform_indices = @transform_3, window_bounds = array<i64: 8, 128>}]} {
    %c0 = arith.constant 0 : index
    %c0_0 = arith.constant 0 : index
    %0 = vector.load %arg1[%c0, %c0_0] : memref<32x1152xbf16, #tpu.memory_space<vmem>>, vector<32x1152xbf16>
    %c0_1 = arith.constant 0 : index
    %c0_2 = arith.constant 0 : index
    %1 = vector.load %arg2[%c0_1, %c0_2] : memref<1152x128xbf16, #tpu.memory_space<vmem>>, vector<1152x128xbf16>
    %cst = arith.constant dense<0.000000e+00> : vector<32x128xf32>
    %2 = tpu.matmul %0, %1, %cst {dimension_numbers = #tpu.dot_dimension_numbers<[1], [0], [0], [1], [0, 0, 1, 1], [], []>} : vector<32x1152xbf16>, vector<1152x128xbf16>, vector<32x128xf32> -> vector<32x128xf32>
    %3 = arith.truncf %2 : vector<32x128xf32> to vector<32x128xbf16>
    %c0_3 = arith.constant 0 : index
    %c0_4 = arith.constant 0 : index
    %4 = vector.load %arg3[%c0_3, %c0_4] : memref<32x128xbf16, #tpu.memory_space<vmem>>, vector<32x128xbf16>
    tpu.vector_store %arg3[%c0_3, %c0_4], %3 {strides = array<i32>} : memref<32x128xbf16, #tpu.memory_space<vmem>>, vector<32x128xbf16>,
    %cst_5 = arith.constant dense<0.000000e+00> : vector<128xf32>
    %5 = vector.multi_reduction <add>, %2, %cst_5 [0] : vector<32x128xf32> to vector<128xf32>
    %6 = vector.shape_cast %5 : vector<128xf32> to vector<1x128xf32>
    %7 = arith.mulf %2, %2 : vector<32x128xf32>
    %cst_6 = arith.constant dense<0.000000e+00> : vector<128xf32>
    %8 = vector.multi_reduction <add>, %7, %cst_6 [0] : vector<32x128xf32> to vector<128xf32>
    %9 = vector.shape_cast %8 : vector<128xf32> to vector<1x128xf32>
    %cst_7 = arith.constant 0.000000e+00 : f32
    %10 = vector.broadcast %cst_7 : f32 to vector<6x128xf32>
    %11 = tpu.concatenate %6, %9, %10 in 0 : vector<1x128xf32>, vector<1x128xf32>, vector<6x128xf32> -> vector<8x128xf32>
    %c0_8 = arith.constant 0 : index
    %c0_9 = arith.constant 0 : index
    %12 = vector.load %arg4[%c0_8, %c0_9] : memref<8x128xf32, #tpu.memory_space<vmem>>, vector<8x128xf32>
    tpu.vector_store %arg4[%c0_8, %c0_9], %11 {strides = array<i32>} : memref<8x128xf32, #tpu.memory_space<vmem>>, vector<8x128xf32>,
    return
  }
  func.func @transform_0(%arg0: i32) -> (i32, i32) {
    %c0_i32 = arith.constant 0 : i32
    %c0_i32_0 = arith.constant 0 : i32
    return %arg0, %c0_i32 : i32, i32
  }
  func.func @transform_1(%arg0: i32) -> (i32, i32) {
    %c0_i32 = arith.constant 0 : i32
    %c0_i32_0 = arith.constant 0 : i32
    %c0_i32_1 = arith.constant 0 : i32
    return %c0_i32, %c0_i32_0 : i32, i32
  }
  func.func @transform_2(%arg0: i32) -> (i32, i32) {
    %c0_i32 = arith.constant 0 : i32
    %c0_i32_0 = arith.constant 0 : i32
    return %arg0, %c0_i32 : i32, i32
  }
  func.func @transform_3(%arg0: i32) -> (i32, i32) {
    %c0_i32 = arith.constant 0 : i32
    %c0_i32_0 = arith.constant 0 : i32
    return %arg0, %c0_i32 : i32, i32
  }
}

module attributes {stable_mosaic.version = 11 : i64} {
  func.func @bn_relu_maxpool_kernel(%arg0: i32, %arg1: memref<9x2x128xbf16, #tpu.memory_space<vmem>>, %arg2: memref<1x128xf32, #tpu.memory_space<vmem>>, %arg3: memref<1x128xf32, #tpu.memory_space<vmem>>, %arg4: memref<2x128xbf16, #tpu.memory_space<vmem>>) attributes {dimension_semantics = [#tpu.dimension_semantics<parallel>], iteration_bounds = array<i64: 1>, scalar_prefetch = 0 : i64, scratch_operands = 0 : i64, tpu.core_type = #tpu.core_type<tc>, window_params = [{transform_indices = @transform_0, window_bounds = array<i64: 9, 2, 128>}, {pipeline_mode = #tpu.pipeline_mode<synchronous>, transform_indices = @transform_1, window_bounds = array<i64: 1, 128>}, {pipeline_mode = #tpu.pipeline_mode<synchronous>, transform_indices = @transform_2, window_bounds = array<i64: 1, 128>}, {transform_indices = @transform_3, window_bounds = array<i64: 2, 128>}]} {
    %c0 = arith.constant 0 : index
    %c0_0 = arith.constant 0 : index
    %c0_1 = arith.constant 0 : index
    %0 = vector.load %arg1[%c0, %c0_0, %c0_1] : memref<9x2x128xbf16, #tpu.memory_space<vmem>>, vector<9x2x128xbf16>
    %1 = arith.extf %0 : vector<9x2x128xbf16> to vector<9x2x128xf32>
    %c0_2 = arith.constant 0 : index
    %c0_3 = arith.constant 0 : index
    %2 = vector.load %arg2[%c0_2, %c0_3] : memref<1x128xf32, #tpu.memory_space<vmem>>, vector<1x128xf32>
    %3 = vector.shape_cast %2 : vector<1x128xf32> to vector<1x1x128xf32>
    %4 = vector.broadcast %3 : vector<1x1x128xf32> to vector<9x2x128xf32>
    %5 = arith.mulf %1, %4 : vector<9x2x128xf32>
    %c0_4 = arith.constant 0 : index
    %c0_5 = arith.constant 0 : index
    %6 = vector.load %arg3[%c0_4, %c0_5] : memref<1x128xf32, #tpu.memory_space<vmem>>, vector<1x128xf32>
    %7 = vector.shape_cast %6 : vector<1x128xf32> to vector<1x1x128xf32>
    %8 = vector.broadcast %7 : vector<1x1x128xf32> to vector<9x2x128xf32>
    %9 = arith.addf %5, %8 : vector<9x2x128xf32>
    %cst = arith.constant 0.000000e+00 : f32
    %10 = vector.broadcast %cst : f32 to vector<9x2x128xf32>
    %11 = arith.maximumf %9, %10 : vector<9x2x128xf32>
    %cst_6 = arith.constant dense<0xFF800000> : vector<2x128xf32>
    %12 = vector.multi_reduction <maximumf>, %11, %cst_6 [0] : vector<9x2x128xf32> to vector<2x128xf32>
    %13 = arith.truncf %12 : vector<2x128xf32> to vector<2x128xbf16>
    %c0_7 = arith.constant 0 : index
    %c0_8 = arith.constant 0 : index
    %14 = vector.load %arg4[%c0_7, %c0_8] : memref<2x128xbf16, #tpu.memory_space<vmem>>, vector<2x128xbf16>
    tpu.vector_store %arg4[%c0_7, %c0_8], %13 {strides = array<i32>} : memref<2x128xbf16, #tpu.memory_space<vmem>>, vector<2x128xbf16>,
    return
  }
  func.func @transform_0(%arg0: i32) -> (i32, i32, i32) {
    %c0_i32 = arith.constant 0 : i32
    %c0_i32_0 = arith.constant 0 : i32
    %c0_i32_1 = arith.constant 0 : i32
    return %c0_i32, %arg0, %c0_i32_0 : i32, i32, i32
  }
  func.func @transform_1(%arg0: i32) -> (i32, i32) {
    %c0_i32 = arith.constant 0 : i32
    %c0_i32_0 = arith.constant 0 : i32
    %c0_i32_1 = arith.constant 0 : i32
    return %c0_i32, %c0_i32_0 : i32, i32
  }
  func.func @transform_2(%arg0: i32) -> (i32, i32) {
    %c0_i32 = arith.constant 0 : i32
    %c0_i32_0 = arith.constant 0 : i32
    %c0_i32_1 = arith.constant 0 : i32
    return %c0_i32, %c0_i32_0 : i32, i32
  }
  func.func @transform_3(%arg0: i32) -> (i32, i32) {
    %c0_i32 = arith.constant 0 : i32
    %c0_i32_0 = arith.constant 0 : i32
    return %arg0, %c0_i32 : i32, i32
  }
}

module attributes {stable_mosaic.version = 11 : i64} {
  func.func @tail_kernel(%arg0: i32, %arg1: memref<2x1152xbf16, #tpu.memory_space<vmem>>, %arg2: memref<1152x128xbf16, #tpu.memory_space<vmem>>, %arg3: memref<1x128xf32, #tpu.memory_space<vmem>>, %arg4: memref<1x128xf32, #tpu.memory_space<vmem>>, %arg5: memref<2x2xf32, #tpu.memory_space<vmem>>, %arg6: memref<128x128xbf16, #tpu.memory_space<vmem>>, %arg7: memref<1x128xf32, #tpu.memory_space<vmem>>, %arg8: memref<2x128xf32, #tpu.memory_space<vmem>>, %arg9: memref<2x128xf32, #tpu.memory_space<vmem>>) attributes {dimension_semantics = [#tpu.dimension_semantics<arbitrary>], iteration_bounds = array<i64: 1>, scalar_prefetch = 0 : i64, scratch_operands = 0 : i64, tpu.core_type = #tpu.core_type<tc>, window_params = [{pipeline_mode = #tpu.pipeline_mode<synchronous>, transform_indices = @transform_0, window_bounds = array<i64: 2, 1152>}, {pipeline_mode = #tpu.pipeline_mode<synchronous>, transform_indices = @transform_1, window_bounds = array<i64: 1152, 128>}, {pipeline_mode = #tpu.pipeline_mode<synchronous>, transform_indices = @transform_2, window_bounds = array<i64: 1, 128>}, {pipeline_mode = #tpu.pipeline_mode<synchronous>, transform_indices = @transform_3, window_bounds = array<i64: 1, 128>}, {pipeline_mode = #tpu.pipeline_mode<synchronous>, transform_indices = @transform_4, window_bounds = array<i64: 2, 2>}, {pipeline_mode = #tpu.pipeline_mode<synchronous>, transform_indices = @transform_5, window_bounds = array<i64: 128, 128>}, {pipeline_mode = #tpu.pipeline_mode<synchronous>, transform_indices = @transform_6, window_bounds = array<i64: 1, 128>}, {pipeline_mode = #tpu.pipeline_mode<synchronous>, transform_indices = @transform_7, window_bounds = array<i64: 2, 128>}, {pipeline_mode = #tpu.pipeline_mode<synchronous>, transform_indices = @transform_8, window_bounds = array<i64: 2, 128>}]} {
    %c0 = arith.constant 0 : index
    %c0_0 = arith.constant 0 : index
    %0 = vector.load %arg1[%c0, %c0_0] : memref<2x1152xbf16, #tpu.memory_space<vmem>>, vector<2x1152xbf16>
    %c0_1 = arith.constant 0 : index
    %c0_2 = arith.constant 0 : index
    %1 = vector.load %arg2[%c0_1, %c0_2] : memref<1152x128xbf16, #tpu.memory_space<vmem>>, vector<1152x128xbf16>
    %cst = arith.constant dense<0.000000e+00> : vector<2x128xf32>
    %2 = tpu.matmul %0, %1, %cst {dimension_numbers = #tpu.dot_dimension_numbers<[1], [0], [0], [1], [0, 0, 1, 1], [], []>} : vector<2x1152xbf16>, vector<1152x128xbf16>, vector<2x128xf32> -> vector<2x128xf32>
    %cst_3 = arith.constant dense<0.000000e+00> : vector<128xf32>
    %3 = vector.multi_reduction <add>, %2, %cst_3 [0] : vector<2x128xf32> to vector<128xf32>
    %4 = vector.shape_cast %3 : vector<128xf32> to vector<1x128xf32>
    %cst_4 = arith.constant 2.000000e+00 : f32
    %5 = vector.broadcast %cst_4 : f32 to vector<1x128xf32>
    %6 = arith.divf %4, %5 : vector<1x128xf32>
    %7 = vector.broadcast %6 : vector<1x128xf32> to vector<2x128xf32>
    %8 = arith.subf %2, %7 : vector<2x128xf32>
    %9 = vector.broadcast %6 : vector<1x128xf32> to vector<2x128xf32>
    %10 = arith.subf %2, %9 : vector<2x128xf32>
    %11 = arith.mulf %8, %10 : vector<2x128xf32>
    %cst_5 = arith.constant dense<0.000000e+00> : vector<128xf32>
    %12 = vector.multi_reduction <add>, %11, %cst_5 [0] : vector<2x128xf32> to vector<128xf32>
    %13 = vector.shape_cast %12 : vector<128xf32> to vector<1x128xf32>
    %cst_6 = arith.constant 2.000000e+00 : f32
    %14 = vector.broadcast %cst_6 : f32 to vector<1x128xf32>
    %15 = arith.divf %13, %14 : vector<1x128xf32>
    %cst_7 = arith.constant 9.99999974E-6 : f32
    %16 = vector.broadcast %cst_7 : f32 to vector<1x128xf32>
    %17 = arith.addf %15, %16 : vector<1x128xf32>
    %18 = math.rsqrt %17 : vector<1x128xf32>
    %19 = vector.broadcast %6 : vector<1x128xf32> to vector<2x128xf32>
    %20 = arith.subf %2, %19 : vector<2x128xf32>
    %c0_8 = arith.constant 0 : index
    %c0_9 = arith.constant 0 : index
    %21 = vector.load %arg3[%c0_8, %c0_9] : memref<1x128xf32, #tpu.memory_space<vmem>>, vector<1x128xf32>
    %22 = arith.mulf %18, %21 : vector<1x128xf32>
    %23 = vector.broadcast %22 : vector<1x128xf32> to vector<2x128xf32>
    %24 = arith.mulf %20, %23 : vector<2x128xf32>
    %c0_10 = arith.constant 0 : index
    %c0_11 = arith.constant 0 : index
    %25 = vector.load %arg4[%c0_10, %c0_11] : memref<1x128xf32, #tpu.memory_space<vmem>>, vector<1x128xf32>
    %26 = vector.broadcast %25 : vector<1x128xf32> to vector<2x128xf32>
    %27 = arith.addf %24, %26 : vector<2x128xf32>
    %cst_12 = arith.constant 0.000000e+00 : f32
    %28 = vector.broadcast %cst_12 : f32 to vector<2x128xf32>
    %29 = arith.maximumf %27, %28 : vector<2x128xf32>
    %c0_13 = arith.constant 0 : index
    %c0_14 = arith.constant 0 : index
    %30 = vector.load %arg5[%c0_13, %c0_14] : memref<2x2xf32, #tpu.memory_space<vmem>>, vector<2x2xf32>
    %cst_15 = arith.constant dense<0.000000e+00> : vector<2x128xf32>
    %31 = tpu.matmul %30, %29, %cst_15 {dimension_numbers = #tpu.dot_dimension_numbers<[1], [0], [0], [1], [0, 0, 1, 1], [], []>} : vector<2x2xf32>, vector<2x128xf32>, vector<2x128xf32> -> vector<2x128xf32>
    %c0_16 = arith.constant 0 : index
    %c0_17 = arith.constant 0 : index
    %32 = vector.load %arg8[%c0_16, %c0_17] : memref<2x128xf32, #tpu.memory_space<vmem>>, vector<2x128xf32>
    tpu.vector_store %arg8[%c0_16, %c0_17], %31 {strides = array<i32>} : memref<2x128xf32, #tpu.memory_space<vmem>>, vector<2x128xf32>,
    %33 = arith.truncf %31 : vector<2x128xf32> to vector<2x128xbf16>
    %c0_18 = arith.constant 0 : index
    %c0_19 = arith.constant 0 : index
    %34 = vector.load %arg6[%c0_18, %c0_19] : memref<128x128xbf16, #tpu.memory_space<vmem>>, vector<128x128xbf16>
    %cst_20 = arith.constant dense<0.000000e+00> : vector<2x128xf32>
    %35 = tpu.matmul %33, %34, %cst_20 {dimension_numbers = #tpu.dot_dimension_numbers<[1], [0], [0], [1], [0, 0, 1, 1], [], []>} : vector<2x128xbf16>, vector<128x128xbf16>, vector<2x128xf32> -> vector<2x128xf32>
    %c0_21 = arith.constant 0 : index
    %c0_22 = arith.constant 0 : index
    %36 = vector.load %arg7[%c0_21, %c0_22] : memref<1x128xf32, #tpu.memory_space<vmem>>, vector<1x128xf32>
    %37 = vector.broadcast %36 : vector<1x128xf32> to vector<2x128xf32>
    %38 = arith.addf %35, %37 : vector<2x128xf32>
    %cst_23 = arith.constant dense<0xFF800000> : vector<2xf32>
    %39 = vector.multi_reduction <maximumf>, %38, %cst_23 [1] : vector<2x128xf32> to vector<2xf32>
    %40 = vector.shape_cast %39 : vector<2xf32> to vector<2x1xf32>
    %41 = vector.broadcast %40 : vector<2x1xf32> to vector<2x128xf32>
    %42 = arith.subf %38, %41 : vector<2x128xf32>
    %43 = math.exp %42 : vector<2x128xf32>
    %cst_24 = arith.constant dense<0.000000e+00> : vector<2xf32>
    %44 = vector.multi_reduction <add>, %43, %cst_24 [1] : vector<2x128xf32> to vector<2xf32>
    %45 = vector.shape_cast %44 : vector<2xf32> to vector<2x1xf32>
    %46 = vector.broadcast %45 : vector<2x1xf32> to vector<2x128xf32>
    %47 = arith.divf %43, %46 : vector<2x128xf32>
    %c0_25 = arith.constant 0 : index
    %c0_26 = arith.constant 0 : index
    %48 = vector.load %arg9[%c0_25, %c0_26] : memref<2x128xf32, #tpu.memory_space<vmem>>, vector<2x128xf32>
    tpu.vector_store %arg9[%c0_25, %c0_26], %47 {strides = array<i32>} : memref<2x128xf32, #tpu.memory_space<vmem>>, vector<2x128xf32>,
    return
  }
  func.func @transform_0(%arg0: i32) -> (i32, i32) {
    %c0_i32 = arith.constant 0 : i32
    %c0_i32_0 = arith.constant 0 : i32
    %c0_i32_1 = arith.constant 0 : i32
    return %c0_i32, %c0_i32_0 : i32, i32
  }
  func.func @transform_1(%arg0: i32) -> (i32, i32) {
    %c0_i32 = arith.constant 0 : i32
    %c0_i32_0 = arith.constant 0 : i32
    %c0_i32_1 = arith.constant 0 : i32
    return %c0_i32, %c0_i32_0 : i32, i32
  }
  func.func @transform_2(%arg0: i32) -> (i32, i32) {
    %c0_i32 = arith.constant 0 : i32
    %c0_i32_0 = arith.constant 0 : i32
    %c0_i32_1 = arith.constant 0 : i32
    return %c0_i32, %c0_i32_0 : i32, i32
  }
  func.func @transform_3(%arg0: i32) -> (i32, i32) {
    %c0_i32 = arith.constant 0 : i32
    %c0_i32_0 = arith.constant 0 : i32
    %c0_i32_1 = arith.constant 0 : i32
    return %c0_i32, %c0_i32_0 : i32, i32
  }
  func.func @transform_4(%arg0: i32) -> (i32, i32) {
    %c0_i32 = arith.constant 0 : i32
    %c0_i32_0 = arith.constant 0 : i32
    %c0_i32_1 = arith.constant 0 : i32
    return %c0_i32, %c0_i32_0 : i32, i32
  }
  func.func @transform_5(%arg0: i32) -> (i32, i32) {
    %c0_i32 = arith.constant 0 : i32
    %c0_i32_0 = arith.constant 0 : i32
    %c0_i32_1 = arith.constant 0 : i32
    return %c0_i32, %c0_i32_0 : i32, i32
  }
  func.func @transform_6(%arg0: i32) -> (i32, i32) {
    %c0_i32 = arith.constant 0 : i32
    %c0_i32_0 = arith.constant 0 : i32
    %c0_i32_1 = arith.constant 0 : i32
    return %c0_i32, %c0_i32_0 : i32, i32
  }
  func.func @transform_7(%arg0: i32) -> (i32, i32) {
    %c0_i32 = arith.constant 0 : i32
    %c0_i32_0 = arith.constant 0 : i32
    %c0_i32_1 = arith.constant 0 : i32
    return %c0_i32, %c0_i32_0 : i32, i32
  }
  func.func @transform_8(%arg0: i32) -> (i32, i32) {
    %c0_i32 = arith.constant 0 : i32
    %c0_i32_0 = arith.constant 0 : i32
    %c0_i32_1 = arith.constant 0 : i32
    return %c0_i32, %c0_i32_0 : i32, i32
  }
}

</mosaic_0001>

<bundles_post_ra>
// kernel: ordinary_cnn_forward.5
= control target key start
LH: loop header
LB: loop body
LE: loop exit
PB: predicated region body
PF: predicated region fallthrough
CT: control target
= control target key end

     0   :  { %vm355_vm0 = vcmask 1041408   ;;  %vm258_vm1 = vcmask 293888   ;;  %vm858_vm2 = vcmask 1040384   ;;  %s1818_s1 = inlined_call_operand.vmem [shape: bf16[36,128], index: 1, kind: input, shape index: {}]   ;;  %s1819_s0 = inlined_call_operand.vmem [shape: bf16[512,36], index: 0, kind: input, shape index: {}]   ;;  %s1820_s2 = inlined_call_operand.vmem [shape: bf16[512,128], index: 2, kind: output, shape index: {0}]   ;;  %s1821_s3 = inlined_call_operand.vmem [shape: f32[8,128], index: 3, kind: output, shape index: {1}]  }
   0x1   :  { %v82_v0 = vld [vmem:[%s1818_s1 + $0x10] sm:$0x3]  ;;  %v1071_v4 = vld [vmem:[%s1818_s1 + $0x8] sm:$0xff]  ;;  %v1070_v5 = vld [vmem:[%s1818_s1] sm:$0xff] }
   0x2   :  { %v252_v1 = vunpack.c.l.b16 %v82_v0  ;;  %v1038_v6 = vld [vmem:[%s1819_s0] sm:$0xff]  ;;  %v1039_v8 = vld [vmem:[%s1819_s0 + $0x8] sm:$0xff]  ;;  %v1040_v11 = vld [vmem:[%s1819_s0 + $0x10] sm:$0xff] }
   0x3   :  { %v1046_v7 = vld [vmem:[%s1819_s0 + $0x40] sm:$0xff]  ;;  %v1047_v9 = vld [vmem:[%s1819_s0 + $0x48] sm:$0xff]  ;;  %v1048_v12 = vld [vmem:[%s1819_s0 + $0x50] sm:$0xff] }
   0x4   :  { %v255_v2 = vpack.c.b16 %v252_v1, %v252_v1  ;;  %v1054_v10 = vld [vmem:[%s1819_s0 + $0x80] sm:$0xff]  ;;  %v1055_v13 = vld [vmem:[%s1819_s0 + $0x88] sm:$0xff]  ;;  %v1041_v14 = vld [vmem:[%s1819_s0 + $0x18] sm:$0xff] }
   0x5   :  { %v1049_v15 = vld [vmem:[%s1819_s0 + $0x58] sm:$0xff]  ;;  %v1056_v16 = vld [vmem:[%s1819_s0 + $0x90] sm:$0xff]  ;;  %v1062_v17 = vld [vmem:[%s1819_s0 + $0xc0] sm:$0xff] }
   0x6   :  { %v357_v3 = vsel %vm355_vm0, %v255_v2, 0  ;;  %v1042_v18 = vld [vmem:[%s1819_s0 + $0x20] sm:$0xff]  ;;  %v1057_v20 = vld [vmem:[%s1819_s0 + $0x98] sm:$0xff]  ;;  %v1063_v21 = vld [vmem:[%s1819_s0 + $0xc8] sm:$0xff] }
   0x7   :  { %364 = vmatpush.bf16.msra.mxu0 %v357_v3  ;;  %1263 = vmatpush.bf16.msra.mxu1 %v357_v3  ;;  %v1050_v19 = vld [vmem:[%s1819_s0 + $0x60] sm:$0xff]  ;;  %v1043_v22 = vld [vmem:[%s1819_s0 + $0x28] sm:$0xff]  ;;  %v1064_v25 = vld [vmem:[%s1819_s0 + $0xd0] sm:$0xff] }
   0x8   :  { %1264 = vmatpush.bf16.msra.mxu2 %v357_v3  ;;  %1265 = vmatpush.bf16.msra.mxu3 %v357_v3  ;;  %v1051_v23 = vld [vmem:[%s1819_s0 + $0x68] sm:$0xff]  ;;  %v1058_v24 = vld [vmem:[%s1819_s0 + $0xa0] sm:$0xff]  ;;  %v1044_v26 = vld [vmem:[%s1819_s0 + $0x30] sm:$0xff] }
   0x9   :  { %v1052_v27 = vld [vmem:[%s1819_s0 + $0x70] sm:$0xff]  ;;  %v1059_v28 = vld [vmem:[%s1819_s0 + $0xa8] sm:$0xff]  ;;  %v1065_v29 = vld [vmem:[%s1819_s0 + $0xd8] sm:$0xff] }
   0xa   :  { %v1045_v30 = vld [vmem:[%s1819_s0 + $0x38] sm:$0xff]  ;;  %v1060_v32 = vld [vmem:[%s1819_s0 + $0xb0] sm:$0xff]  ;;  %v1066_v33 = vld [vmem:[%s1819_s0 + $0xe0] sm:$0xff] }
   0xb   :  { %365 = vmatpush.bf16.msra.mxu0 %v1071_v4  ;;  %1266 = vmatpush.bf16.msra.mxu1 %v1071_v4  ;;  %v1053_v31 = vld [vmem:[%s1819_s0 + $0x78] sm:$0xff]  ;;  %v1067_v37 = vld [vmem:[%s1819_s0 + $0xe8] sm:$0xff]  ;;  %v1068_v51 = vld [vmem:[%s1819_s0 + $0xf0] sm:$0xff] }
   0xc   :  { %1267 = vmatpush.bf16.msra.mxu2 %v1071_v4  ;;  %1268 = vmatpush.bf16.msra.mxu3 %v1071_v4  ;;  %v1061_v36 = vld [vmem:[%s1819_s0 + $0xb8] sm:$0xff] }
   0xd   :  { %v1069_v3 = vld [vmem:[%s1819_s0 + $0xf8] sm:$0xff] }
   0xf   :  { %366 = vmatpush.bf16.msra.mxu0 %v1070_v5  ;;  %1269 = vmatpush.bf16.msra.mxu1 %v1070_v5 }
  0x10   :  { %1270 = vmatpush.bf16.msra.mxu2 %v1070_v5  ;;  %1271 = vmatpush.bf16.msra.mxu3 %v1070_v5 }
  0x12   :  { %1006 = vmatmul.msk.bf16.vlgmr.msra.gmra.mxu0 %vm258_vm1, %v1038_v6  ;;  %1014 = vmatmul.msk.bf16.vlgmr.msra.gmra.mxu1 %vm258_vm1, %v1046_v7 }
  0x13   :  { %1022 = vmatmul.msk.bf16.vlgmr.msra.gmra.mxu2 %vm258_vm1, %v1054_v10  ;;  %1030 = vmatmul.msk.bf16.vlgmr.msra.gmra.mxu3 %vm258_vm1, %v1062_v17 }
  0x22   :  { %1007 = vmatmul.msk.bf16.gmra.mxu0 %vm258_vm1, %v1039_v8  ;;  %1015 = vmatmul.msk.bf16.gmra.mxu1 %vm258_vm1, %v1047_v9 }
  0x23   :  { %1023 = vmatmul.msk.bf16.gmra.mxu2 %vm258_vm1, %v1055_v13  ;;  %1031 = vmatmul.msk.bf16.gmra.mxu3 %vm258_vm1, %v1063_v21 }
  0x32   :  { %1008 = vmatmul.msk.bf16.gmra.mxu0 %vm258_vm1, %v1040_v11  ;;  %1016 = vmatmul.msk.bf16.gmra.mxu1 %vm258_vm1, %v1048_v12 }
  0x33   :  { %1024 = vmatmul.msk.bf16.gmra.mxu2 %vm258_vm1, %v1056_v16  ;;  %1032 = vmatmul.msk.bf16.gmra.mxu3 %vm258_vm1, %v1064_v25 }
  0x42   :  { %1009 = vmatmul.msk.bf16.gmra.mxu0 %vm258_vm1, %v1041_v14  ;;  %1017 = vmatmul.msk.bf16.gmra.mxu1 %vm258_vm1, %v1049_v15 }
  0x43   :  { %1025 = vmatmul.msk.bf16.gmra.mxu2 %vm258_vm1, %v1057_v20  ;;  %1033 = vmatmul.msk.bf16.gmra.mxu3 %vm258_vm1, %v1065_v29 }
  0x52   :  { %1010 = vmatmul.msk.bf16.gmra.mxu0 %vm258_vm1, %v1042_v18  ;;  %1018 = vmatmul.msk.bf16.gmra.mxu1 %vm258_vm1, %v1050_v19 }
  0x53   :  { %1026 = vmatmul.msk.bf16.gmra.mxu2 %vm258_vm1, %v1058_v24  ;;  %1034 = vmatmul.msk.bf16.gmra.mxu3 %vm258_vm1, %v1066_v33 }
  0x62   :  { %1011 = vmatmul.msk.bf16.gmra.mxu0 %vm258_vm1, %v1043_v22  ;;  %1019 = vmatmul.msk.bf16.gmra.mxu1 %vm258_vm1, %v1051_v23 }
  0x63   :  { %1027 = vmatmul.msk.bf16.gmra.mxu2 %vm258_vm1, %v1059_v28  ;;  %1035 = vmatmul.msk.bf16.gmra.mxu3 %vm258_vm1, %v1067_v37 }
  0x72   :  { %1012 = vmatmul.msk.bf16.gmra.mxu0 %vm258_vm1, %v1044_v26  ;;  %1020 = vmatmul.msk.bf16.gmra.mxu1 %vm258_vm1, %v1052_v27 }
  0x73   :  { %1028 = vmatmul.msk.bf16.gmra.mxu2 %vm258_vm1, %v1060_v32  ;;  %1036 = vmatmul.msk.bf16.gmra.mxu3 %vm258_vm1, %v1068_v51 }
  0x82   :  { %1013 = vmatmul.msk.bf16.gmra.mxu0 %vm258_vm1, %v1045_v30  ;;  %1021 = vmatmul.msk.bf16.gmra.mxu1 %vm258_vm1, %v1053_v31 }
  0x83   :  { %1029 = vmatmul.msk.bf16.gmra.mxu2 %vm258_vm1, %v1061_v36  ;;  %1037 = vmatmul.msk.bf16.gmra.mxu3 %vm258_vm1, %v1069_v3 }
  0x8f   :  { %v368_v34 = vpop.f32.mrf.mxu0  ;;  %v1414_v35 = vpop.f32.mrf.mxu1 }
  0x90   :  { %v725_v38 = vmul.f32 %v368_v34, %v368_v34 }
  0x96   :  { %v1444_v58 = vpop.f32.mrf.mxu2  ;;  %v1496_v18 = vpop.f32.mrf.mxu3 }
  0x97   :  { %v370_v39 = vpop.f32.mrf.mxu0  ;;  %v1424_v40 = vpop.f32.mrf.mxu1 }
  0x98   :  { %v1075_v41 = vpack.c.bf16 %v370_v39, %v368_v34  ;;  %v656_v42 = vadd.f32 %v370_v39, %v368_v34  ;;  %v726_v43 = vmul.f32 %v370_v39, %v370_v39  ;;  %v1115_v44 = vpack.c.bf16 %v1424_v40, %v1414_v35 }
  0x9a   :  { %1076 = vst [vmem:[%s1820_s2] sm:$0xff] %v1075_v41   ;;  %v789_v45 = vadd.f32 %v726_v43, %v725_v38 }
  0x9b   :  { %1239 = vst [vmem:[%s1820_s2 + $0x40] sm:$0xff] %v1115_v44  }
  0x9e   :  { %v1456_v0 = vpop.f32.mrf.mxu2  ;;  %v1508_v22 = vpop.f32.mrf.mxu3 }
  0x9f   :  { %v373_v46 = vpop.f32.mrf.mxu0  ;;  %v1434_v47 = vpop.f32.mrf.mxu1  ;;  %v1155_v1 = vpack.c.bf16 %v1456_v0, %v1444_v58  ;;  %v1195_v24 = vpack.c.bf16 %v1508_v22, %v1496_v18 }
  0xa0   :  { %v657_v48 = vadd.f32 %v656_v42, %v373_v46  ;;  %v727_v49 = vmul.f32 %v373_v46, %v373_v46 }
  0xa1   :  { %1247 = vst [vmem:[%s1820_s2 + $0x80] sm:$0xff] %v1155_v1  }
  0xa2   :  { %v790_v50 = vadd.f32 %v789_v45, %v727_v49  ;;  %1255 = vst [vmem:[%s1820_s2 + $0xc0] sm:$0xff] %v1195_v24  }
  0xa6   :  { %v1473_v8 = vpop.f32.mrf.mxu2  ;;  %v1526_v30 = vpop.f32.mrf.mxu3 }
  0xa7   :  { %v375_v52 = vpop.f32.mrf.mxu0  ;;  %v1440_v53 = vpop.f32.mrf.mxu1 }
  0xa8   :  { %v1080_v54 = vpack.c.bf16 %v375_v52, %v373_v46  ;;  %v658_v55 = vadd.f32 %v657_v48, %v375_v52  ;;  %v728_v56 = vmul.f32 %v375_v52, %v375_v52  ;;  %v1120_v57 = vpack.c.bf16 %v1440_v53, %v1434_v47 }
  0xaa   :  { %1232 = vst [vmem:[%s1820_s2 + $0x8] sm:$0xff] %v1080_v54   ;;  %v791_v59 = vadd.f32 %v790_v50, %v728_v56 }
  0xab   :  { %1240 = vst [vmem:[%s1820_s2 + $0x48] sm:$0xff] %v1120_v57  }
  0xae   :  { %v1483_v11 = vpop.f32.mrf.mxu2  ;;  %v1538_v34 = vpop.f32.mrf.mxu3 }
  0xaf   :  { %v378_v60 = vpop.f32.mrf.mxu0  ;;  %v1452_v61 = vpop.f32.mrf.mxu1  ;;  %v1160_v12 = vpack.c.bf16 %v1483_v11, %v1473_v8  ;;  %v1200_v37 = vpack.c.bf16 %v1538_v34, %v1526_v30 }
  0xb0   :  { %v1454_v62 = vadd.f32 %v658_v55, %v378_v60  ;;  %v729_v63 = vmul.f32 %v378_v60, %v378_v60 }
  0xb1   :  { %1248 = vst [vmem:[%s1820_s2 + $0x88] sm:$0xff] %v1160_v12  }
  0xb2   :  { %v1460_v2 = vadd.f32 %v791_v59, %v729_v63  ;;  %1256 = vst [vmem:[%s1820_s2 + $0xc8] sm:$0xff] %v1200_v37  }
  0xb6   :  { %v1494_v17 = vpop.f32.mrf.mxu2  ;;  %v1556_v44 = vpop.f32.mrf.mxu3 }
  0xb7   :  { %v380_v4 = vpop.f32.mrf.mxu0  ;;  %v1469_v5 = vpop.f32.mrf.mxu1 }
  0xb8   :  { %v1085_v6 = vpack.c.bf16 %v380_v4, %v378_v60  ;;  %v1125_v7 = vpack.c.bf16 %v1469_v5, %v1452_v61  ;;  %v730_v50 = vmul.f32 %v380_v4, %v380_v4  ;;  %v660_v55 = vadd.f32 %v1454_v62, %v380_v4 }
  0xba   :  { %1233 = vst [vmem:[%s1820_s2 + $0x10] sm:$0xff] %v1085_v6   ;;  %v793_v56 = vadd.f32 %v1460_v2, %v730_v50 }
  0xbb   :  { %1241 = vst [vmem:[%s1820_s2 + $0x50] sm:$0xff] %v1125_v7  }
  0xbe   :  { %v1506_v21 = vpop.f32.mrf.mxu2  ;;  %v1568_v49 = vpop.f32.mrf.mxu3 }
  0xbf   :  { %v383_v9 = vpop.f32.mrf.mxu0  ;;  %v1481_v10 = vpop.f32.mrf.mxu1  ;;  %v1165_v23 = vpack.c.bf16 %v1506_v21, %v1494_v17  ;;  %v1205_v52 = vpack.c.bf16 %v1568_v49, %v1556_v44 }
  0xc0   :  { %v731_v54 = vmul.f32 %v383_v9, %v383_v9  ;;  %v661_v59 = vadd.f32 %v660_v55, %v383_v9 }
  0xc1   :  { %1249 = vst [vmem:[%s1820_s2 + $0x90] sm:$0xff] %v1165_v23  }
  0xc2   :  { %1257 = vst [vmem:[%s1820_s2 + $0xd0] sm:$0xff] %v1205_v52   ;;  %v794_v60 = vadd.f32 %v793_v56, %v731_v54 }
  0xc6   :  { %v1524_v29 = vpop.f32.mrf.mxu2  ;;  %v1588_v62 = vpop.f32.mrf.mxu3 }
  0xc7   :  { %v385_v13 = vpop.f32.mrf.mxu0  ;;  %v1490_v14 = vpop.f32.mrf.mxu1 }
  0xc8   :  { %v1090_v15 = vpack.c.bf16 %v385_v13, %v383_v9  ;;  %v1130_v16 = vpack.c.bf16 %v1490_v14, %v1481_v10  ;;  %v732_v57 = vmul.f32 %v385_v13, %v385_v13  ;;  %v662_v6 = vadd.f32 %v661_v59, %v385_v13 }
  0xca   :  { %1234 = vst [vmem:[%s1820_s2 + $0x18] sm:$0xff] %v1090_v15   ;;  %v795_v4 = vadd.f32 %v794_v60, %v732_v57 }
  0xcb   :  { %1242 = vst [vmem:[%s1820_s2 + $0x58] sm:$0xff] %v1130_v16  }
  0xce   :  { %v1536_v33 = vpop.f32.mrf.mxu2 }
  0xcf   :  { %v388_v19 = vpop.f32.mrf.mxu0  ;;  %v1504_v20 = vpop.f32.mrf.mxu1  ;;  %v1170_v36 = vpack.c.bf16 %v1536_v33, %v1524_v29 }
  0xd0   :  { %v733_v63 = vmul.f32 %v388_v19, %v388_v19  ;;  %v663_v23 = vadd.f32 %v662_v6, %v388_v19 }
  0xd1   :  { %1250 = vst [vmem:[%s1820_s2 + $0x98] sm:$0xff] %v1170_v36  }
  0xd2   :  { %v796_v2 = vadd.f32 %v795_v4, %v733_v63 }
  0xd6   :  { %v1554_v43 = vpop.f32.mrf.mxu2 }
  0xd7   :  { %v390_v25 = vpop.f32.mrf.mxu0  ;;  %v1520_v26 = vpop.f32.mrf.mxu1 }
  0xd8   :  { %v1095_v27 = vpack.c.bf16 %v390_v25, %v388_v19  ;;  %v1135_v28 = vpack.c.bf16 %v1520_v26, %v1504_v20  ;;  %v734_v16 = vmul.f32 %v390_v25, %v390_v25  ;;  %v664_v13 = vadd.f32 %v663_v23, %v390_v25 }
  0xda   :  { %1235 = vst [vmem:[%s1820_s2 + $0x20] sm:$0xff] %v1095_v27   ;;  %v797_v24 = vadd.f32 %v796_v2, %v734_v16 }
  0xdb   :  { %1243 = vst [vmem:[%s1820_s2 + $0x60] sm:$0xff] %v1135_v28  }
  0xde   :  { %v1566_v48 = vpop.f32.mrf.mxu2 }
  0xdf   :  { %v393_v31 = vpop.f32.mrf.mxu0  ;;  %v1534_v32 = vpop.f32.mrf.mxu1  ;;  %v1175_v51 = vpack.c.bf16 %v1566_v48, %v1554_v43 }
  0xe0   :  { %v735_v9 = vmul.f32 %v393_v31, %v393_v31  ;;  %v665_v28 = vadd.f32 %v664_v13, %v393_v31 }
  0xe1   :  { %1251 = vst [vmem:[%s1820_s2 + $0xa0] sm:$0xff] %v1175_v51   ;;  %v1600_v51 = vpop.f32.mrf.mxu3 }
  0xe2   :  { %v798_v36 = vadd.f32 %v797_v24, %v735_v9  ;;  %v1210_v25 = vpack.c.bf16 %v1600_v51, %v1588_v62  ;;  %v742_v24 = vmul.f32 %v1424_v40, %v1424_v40 }
  0xe4   :  { %1258 = vst [vmem:[%s1820_s2 + $0xd8] sm:$0xff] %v1210_v25  }
  0xe6   :  { %v1586_v15 = vpop.f32.mrf.mxu2 }
  0xe7   :  { %v395_v38 = vpop.f32.mrf.mxu0  ;;  %v1550_v39 = vpop.f32.mrf.mxu1 }
  0xe8   :  { %v1100_v41 = vpack.c.bf16 %v395_v38, %v393_v31  ;;  %v1140_v42 = vpack.c.bf16 %v1550_v39, %v1534_v32  ;;  %v736_v27 = vmul.f32 %v395_v38, %v395_v38  ;;  %v666_v19 = vadd.f32 %v665_v28, %v395_v38 }
  0xe9   :  { %v1618_v2 = vpop.f32.mrf.mxu3 }
  0xea   :  { %1236 = vst [vmem:[%s1820_s2 + $0x28] sm:$0xff] %v1100_v41   ;;  %v799_v52 = vadd.f32 %v798_v36, %v736_v27  ;;  %v743_v36 = vmul.f32 %v1434_v47, %v1434_v47 }
  0xeb   :  { %1244 = vst [vmem:[%s1820_s2 + $0x68] sm:$0xff] %v1140_v42  }
  0xee   :  { %v1598_v50 = vpop.f32.mrf.mxu2 }
  0xef   :  { %v398_v45 = vpop.f32.mrf.mxu0  ;;  %v1564_v46 = vpop.f32.mrf.mxu1  ;;  %v1180_v55 = vpack.c.bf16 %v1598_v50, %v1586_v15 }
  0xf0   :  { %v737_v37 = vmul.f32 %v398_v45, %v398_v45  ;;  %v667_v56 = vadd.f32 %v666_v19, %v398_v45 }
  0xf1   :  { %1252 = vst [vmem:[%s1820_s2 + $0xa8] sm:$0xff] %v1180_v55   ;;  %v1640_v55 = vpop.f32.mrf.mxu3 }
  0xf2   :  { %v800_v31 = vadd.f32 %v799_v52, %v737_v37  ;;  %v1215_v25 = vpack.c.bf16 %v1640_v55, %v1618_v2 }
  0xf4   :  { %1259 = vst [vmem:[%s1820_s2 + $0xe0] sm:$0xff] %v1215_v25  }
  0xf6   :  { %v1616_v23 = vpop.f32.mrf.mxu2 }
  0xf7   :  { %v400_v1 = vpop.f32.mrf.mxu0  ;;  %v1582_v3 = vpop.f32.mrf.mxu1 }
  0xf8   :  { %v1105_v7 = vpack.c.bf16 %v400_v1, %v398_v45  ;;  %v1145_v12 = vpack.c.bf16 %v1582_v3, %v1564_v46  ;;  %v738_v54 = vmul.f32 %v400_v1, %v400_v1  ;;  %v668_v38 = vadd.f32 %v667_v56, %v400_v1 }
  0xf9   :  { %v741_v1 = vmul.f32 %v1414_v35, %v1414_v35  ;;  %v754_v25 = vmul.f32 %v1582_v3, %v1582_v3 }
  0xfa   :  { %1237 = vst [vmem:[%s1820_s2 + $0x30] sm:$0xff] %v1105_v7   ;;  %v801_v59 = vadd.f32 %v800_v31, %v738_v54 }
  0xfb   :  { %1245 = vst [vmem:[%s1820_s2 + $0x70] sm:$0xff] %v1145_v12  }
  0xfe   :  { %v1638_v54 = vpop.f32.mrf.mxu2 }
  0xff   :  { %v403_v41 = vpop.f32.mrf.mxu0  ;;  %v1596_v42 = vpop.f32.mrf.mxu1 }
 0x100   :  { %v739_v57 = vmul.f32 %v403_v41, %v403_v41  ;;  %v669_v60 = vadd.f32 %v668_v38, %v403_v41 }
 0x102   :  { %v802_v63 = vadd.f32 %v801_v59, %v739_v57  ;;  %v747_v59 = vmul.f32 %v1481_v10, %v1481_v10 }
 0x107   :  { %v405_v6 = vpop.f32.mrf.mxu0  ;;  %v1612_v7 = vpop.f32.mrf.mxu1 }
 0x108   :  { %v1110_v12 = vpack.c.bf16 %v405_v6, %v403_v41  ;;  %v670_v4 = vadd.f32 %v669_v60, %v405_v6  ;;  %v740_v45 = vmul.f32 %v405_v6, %v405_v6  ;;  %v1150_v16 = vpack.c.bf16 %v1612_v7, %v1596_v42 }
 0x10a   :  { %1238 = vst [vmem:[%s1820_s2 + $0x38] sm:$0xff] %v1110_v12   ;;  %v671_v9 = vadd.f32 %v670_v4, %v1414_v35  ;;  %v803_v13 = vadd.f32 %v802_v63, %v740_v45  ;;  %v744_v35 = vmul.f32 %v1440_v53, %v1440_v53  ;;  %v748_v63 = vmul.f32 %v1490_v14, %v1490_v14  ;;  %v1664_v4 = vpop.f32.mrf.mxu2 }
 0x10b   :  { %1246 = vst [vmem:[%s1820_s2 + $0x78] sm:$0xff] %v1150_v16   ;;  %v749_v45 = vmul.f32 %v1504_v20, %v1504_v20 }
 0x10c   :  { %v672_v27 = vadd.f32 %v671_v9, %v1424_v40  ;;  %v804_v28 = vadd.f32 %v803_v13, %v741_v1  ;;  %v1185_v40 = vpack.c.bf16 %v1638_v54, %v1616_v23  ;;  %v750_v9 = vmul.f32 %v1520_v26, %v1520_v26 }
 0x10e   :  { %v673_v37 = vadd.f32 %v672_v27, %v1434_v47  ;;  %v805_v41 = vadd.f32 %v804_v28, %v742_v24  ;;  %v745_v47 = vmul.f32 %v1452_v61, %v1452_v61  ;;  %1253 = vst [vmem:[%s1820_s2 + $0xb0] sm:$0xff] %v1185_v40   ;;  %v752_v28 = vmul.f32 %v1550_v39, %v1550_v39 }
 0x110   :  { %v674_v19 = vadd.f32 %v673_v37, %v1440_v53  ;;  %v806_v52 = vadd.f32 %v805_v41, %v743_v36  ;;  %v746_v53 = vmul.f32 %v1469_v5, %v1469_v5 }
 0x112   :  { %v675_v56 = vadd.f32 %v674_v19, %v1452_v61  ;;  %v807_v31 = vadd.f32 %v806_v52, %v744_v35 }
 0x114   :  { %v676_v57 = vadd.f32 %v675_v56, %v1469_v5  ;;  %v808_v38 = vadd.f32 %v807_v31, %v745_v47  ;;  %v1666_v5 = vpop.f32.mrf.mxu3 }
 0x116   :  { %v809_v60 = vadd.f32 %v808_v38, %v746_v53  ;;  %v677_v61 = vadd.f32 %v676_v57, %v1481_v10  ;;  %v756_v57 = vmul.f32 %v1612_v7, %v1612_v7 }
 0x118   :  { %v678_v6 = vadd.f32 %v677_v61, %v1490_v14  ;;  %v810_v12 = vadd.f32 %v809_v60, %v747_v59  ;;  %v751_v14 = vmul.f32 %v1534_v32, %v1534_v32  ;;  %v758_v61 = vmul.f32 %v1456_v0, %v1456_v0 }
 0x11a   :  { %v679_v16 = vadd.f32 %v678_v6, %v1504_v20  ;;  %v811_v1 = vadd.f32 %v810_v12, %v748_v63  ;;  %v1680_v20 = vpop.f32.mrf.mxu2  ;;  %v759_v6 = vmul.f32 %v1473_v8, %v1473_v8 }
 0x11c   :  { %v680_v10 = vadd.f32 %v679_v16, %v1520_v26  ;;  %v812_v13 = vadd.f32 %v811_v1, %v749_v45  ;;  %v1682_v41 = vpop.f32.mrf.mxu3  ;;  %v1190_v26 = vpack.c.bf16 %v1680_v20, %v1664_v4  ;;  %v760_v45 = vmul.f32 %v1483_v11, %v1483_v11 }
 0x11d   :  { %v1220_v35 = vpack.c.bf16 %v1682_v41, %v1666_v5 }
 0x11e   :  { %v681_v24 = vadd.f32 %v680_v10, %v1534_v32  ;;  %v813_v27 = vadd.f32 %v812_v13, %v750_v9  ;;  %v753_v32 = vmul.f32 %v1564_v46, %v1564_v46  ;;  %1254 = vst [vmem:[%s1820_s2 + $0xb8] sm:$0xff] %v1190_v26  }
 0x11f   :  { %1260 = vst [vmem:[%s1820_s2 + $0xe8] sm:$0xff] %v1220_v35   ;;  %v765_v35 = vmul.f32 %v1554_v43, %v1554_v43 }
 0x120   :  { %v682_v36 = vadd.f32 %v681_v24, %v1550_v39  ;;  %v814_v37 = vadd.f32 %v813_v27, %v751_v14  ;;  %v763_v24 = vmul.f32 %v1524_v29, %v1524_v29 }
 0x122   :  { %v683_v19 = vadd.f32 %v682_v36, %v1564_v46  ;;  %v815_v52 = vadd.f32 %v814_v37, %v752_v28  ;;  %v755_v46 = vmul.f32 %v1596_v42, %v1596_v42 }
 0x124   :  { %v816_v39 = vadd.f32 %v815_v52, %v753_v32  ;;  %v684_v40 = vadd.f32 %v683_v19, %v1582_v3  ;;  %v1706_v38 = vpop.f32.mrf.mxu3  ;;  %v757_v3 = vmul.f32 %v1444_v58, %v1444_v58  ;;  %v766_v32 = vmul.f32 %v1566_v48, %v1566_v48 }
 0x126   :  { %v817_v47 = vadd.f32 %v816_v39, %v754_v25  ;;  %v685_v56 = vadd.f32 %v684_v40, %v1596_v42  ;;  %v767_v39 = vmul.f32 %v1586_v15, %v1586_v15 }
 0x128   :  { %v818_v31 = vadd.f32 %v817_v47, %v755_v46  ;;  %v686_v53 = vadd.f32 %v685_v56, %v1612_v7  ;;  %v768_v47 = vmul.f32 %v1598_v50, %v1598_v50 }
 0x12a   :  { %v687_v59 = vadd.f32 %v686_v53, %v1444_v58  ;;  %v819_v60 = vadd.f32 %v818_v31, %v756_v57 }
 0x12c   :  { %v688_v63 = vadd.f32 %v687_v59, %v1456_v0  ;;  %v820_v42 = vadd.f32 %v819_v60, %v757_v3  ;;  %v1720_v58 = vpop.f32.mrf.mxu3  ;;  %v761_v0 = vmul.f32 %v1494_v17, %v1494_v17  ;;  %v771_v60 = vmul.f32 %v1664_v4, %v1664_v4 }
 0x12d   :  { %v1225_v9 = vpack.c.bf16 %v1720_v58, %v1706_v38 }
 0x12e   :  { %v689_v12 = vadd.f32 %v688_v63, %v1473_v8  ;;  %v821_v7 = vadd.f32 %v820_v42, %v758_v61  ;;  %v762_v8 = vmul.f32 %v1506_v21, %v1506_v21  ;;  %v773_v42 = vmul.f32 %v1496_v18, %v1496_v18 }
 0x12f   :  { %1261 = vst [vmem:[%s1820_s2 + $0xf0] sm:$0xff] %v1225_v9  }
 0x130   :  { %v690_v16 = vadd.f32 %v689_v12, %v1483_v11  ;;  %v822_v1 = vadd.f32 %v821_v7, %v759_v6 }
 0x132   :  { %v691_v10 = vadd.f32 %v690_v16, %v1494_v17  ;;  %v823_v13 = vadd.f32 %v822_v1, %v760_v45  ;;  %v764_v17 = vmul.f32 %v1536_v33, %v1536_v33 }
 0x134   :  { %v692_v11 = vadd.f32 %v691_v10, %v1506_v21  ;;  %v824_v14 = vadd.f32 %v823_v13, %v761_v0  ;;  %v1739_v26 = vpop.f32.mrf.mxu3 }
 0x136   :  { %v825_v27 = vadd.f32 %v824_v14, %v762_v8  ;;  %v693_v28 = vadd.f32 %v692_v11, %v1524_v29 }
 0x138   :  { %v694_v36 = vadd.f32 %v693_v28, %v1536_v33  ;;  %v826_v37 = vadd.f32 %v825_v27, %v763_v24 }
 0x13a   :  { %v695_v21 = vadd.f32 %v694_v36, %v1554_v43  ;;  %v827_v19 = vadd.f32 %v826_v37, %v764_v17 }
 0x13c   :  { %v696_v52 = vadd.f32 %v695_v21, %v1566_v48  ;;  %v828_v29 = vadd.f32 %v827_v19, %v765_v35  ;;  %v525_v43 = vpop.f32.mrf.mxu3  ;;  %v769_v48 = vmul.f32 %v1616_v23, %v1616_v23 }
 0x13d   :  { %v1230_v46 = vpack.c.bf16 %v525_v43, %v1739_v26 }
 0x13e   :  { %v697_v33 = vadd.f32 %v696_v52, %v1586_v15  ;;  %v829_v40 = vadd.f32 %v828_v29, %v766_v32  ;;  %v784_v32 = vmul.f32 %v1682_v41, %v1682_v41 }
 0x13f   :  { %1262 = vst [vmem:[%s1820_s2 + $0xf8] sm:$0xff] %v1230_v46   ;;  %v788_v46 = vmul.f32 %v525_v43, %v525_v43 }
 0x140   :  { %v698_v25 = vadd.f32 %v697_v33, %v1598_v50  ;;  %v830_v56 = vadd.f32 %v829_v40, %v767_v39  ;;  %v770_v50 = vmul.f32 %v1638_v54, %v1638_v54  ;;  %v785_v39 = vmul.f32 %v1706_v38, %v1706_v38 }
 0x141   :  { %v786_v40 = vmul.f32 %v1720_v58, %v1720_v58 }
 0x142   :  { %v831_v31 = vadd.f32 %v830_v56, %v768_v47  ;;  %v699_v53 = vadd.f32 %v698_v25, %v1616_v23  ;;  %v772_v23 = vmul.f32 %v1680_v20, %v1680_v20  ;;  %v787_v47 = vmul.f32 %v1739_v26, %v1739_v26 }
 0x144   :  { %v832_v15 = vadd.f32 %v831_v31, %v769_v48  ;;  %v700_v57 = vadd.f32 %v699_v53, %v1638_v54  ;;  %v774_v54 = vmul.f32 %v1508_v22, %v1508_v22 }
 0x146   :  { %v833_v3 = vadd.f32 %v832_v15, %v770_v50  ;;  %v701_v59 = vadd.f32 %v700_v57, %v1664_v4  ;;  %v775_v4 = vmul.f32 %v1526_v30, %v1526_v30 }
 0x148   :  { %v834_v61 = vadd.f32 %v833_v3, %v771_v60  ;;  %v702_v63 = vadd.f32 %v701_v59, %v1680_v20  ;;  %v776_v20 = vmul.f32 %v1538_v34, %v1538_v34 }
 0x14a   :  { %v703_v6 = vadd.f32 %v702_v63, %v1496_v18  ;;  %v835_v12 = vadd.f32 %v834_v61, %v772_v23  ;;  %v777_v18 = vmul.f32 %v1556_v44, %v1556_v44 }
 0x14c   :  { %v704_v7 = vadd.f32 %v703_v6, %v1508_v22  ;;  %v836_v45 = vadd.f32 %v835_v12, %v773_v42  ;;  %v778_v22 = vmul.f32 %v1568_v49, %v1568_v49 }
 0x14e   :  { %v705_v16 = vadd.f32 %v704_v7, %v1526_v30  ;;  %v837_v1 = vadd.f32 %v836_v45, %v774_v54  ;;  %v779_v30 = vmul.f32 %v1588_v62, %v1588_v62 }
 0x150   :  { %v706_v9 = vadd.f32 %v705_v16, %v1538_v34  ;;  %v838_v0 = vadd.f32 %v837_v1, %v775_v4  ;;  %v780_v34 = vmul.f32 %v1600_v51, %v1600_v51 }
 0x152   :  { %v707_v10 = vadd.f32 %v706_v9, %v1556_v44  ;;  %v839_v13 = vadd.f32 %v838_v0, %v776_v20  ;;  %v781_v44 = vmul.f32 %v1618_v2, %v1618_v2 }
 0x154   :  { %v708_v8 = vadd.f32 %v707_v10, %v1568_v49  ;;  %v840_v11 = vadd.f32 %v839_v13, %v777_v18  ;;  %v782_v49 = vmul.f32 %v1640_v55, %v1640_v55 }
 0x156   :  { %v841_v14 = vadd.f32 %v840_v11, %v778_v22  ;;  %v709_v24 = vadd.f32 %v708_v8, %v1588_v62  ;;  %v783_v62 = vmul.f32 %v1666_v5, %v1666_v5 }
 0x158   :  { %v710_v27 = vadd.f32 %v709_v24, %v1600_v51  ;;  %v842_v28 = vadd.f32 %v841_v14, %v779_v30 }
 0x15a   :  { %v711_v17 = vadd.f32 %v710_v27, %v1618_v2  ;;  %v843_v36 = vadd.f32 %v842_v28, %v780_v34 }
 0x15c   :  { %v712_v37 = vadd.f32 %v711_v17, %v1640_v55  ;;  %v844_v35 = vadd.f32 %v843_v36, %v781_v44 }
 0x15e   :  { %v713_v21 = vadd.f32 %v712_v37, %v1666_v5  ;;  %v845_v19 = vadd.f32 %v844_v35, %v782_v49 }
 0x160   :  { %v714_v51 = vadd.f32 %v713_v21, %v1682_v41  ;;  %v846_v52 = vadd.f32 %v845_v19, %v783_v62 }
 0x162   :  { %v847_v2 = vadd.f32 %v846_v52, %v784_v32  ;;  %v715_v29 = vadd.f32 %v714_v51, %v1706_v38 }
 0x164   :  { %v848_v55 = vadd.f32 %v847_v2, %v785_v39  ;;  %v716_v33 = vadd.f32 %v715_v29, %v1720_v58 }
 0x166   :  { %v849_v5 = vadd.f32 %v848_v55, %v786_v40  ;;  %v717_v25 = vadd.f32 %v716_v33, %v1739_v26 }
 0x168   :  { %v850_v41 = vadd.f32 %v849_v5, %v787_v47  ;;  %v718_v56 = vadd.f32 %v717_v25, %v525_v43 }
 0x16a   :  { %v719_v31 = vrot.slane %v718_v56, 4  ;;  %v851_v53 = vadd.f32 %v850_v41, %v788_v46 }
 0x16c   :  { %v720_v48 = vadd.f32 %v719_v31, %v718_v56  ;;  %v852_v15 = vrot.slane %v851_v53, 4 }
 0x16e   :  { %v721_v38 = vrot.slane %v720_v48, 2  ;;  %v853_v57 = vadd.f32 %v852_v15, %v851_v53 }
 0x170   :  { %v722_v50 = vadd.f32 %v721_v38, %v720_v48  ;;  %v854_v3 = vrot.slane %v853_v57, 2 }
 0x172   :  { %v723_v59 = vrot.slane %v722_v50, 1  ;;  %v855_v60 = vadd.f32 %v854_v3, %v853_v57 }
 0x174   :  { %v856_v58 = vrot.slane %v855_v60, 1  ;;  %v724_v61 = vadd.f32 %v723_v59, %v722_v50 }
 0x176   :  { %v857_v63 = vadd.f32 %v856_v58, %v855_v60 }
 0x178   :  { %v859_v23 = vsel %vm858_vm2, %v724_v61, %v857_v63 }
 0x179   :  { %v860_v26 = vsel %vm355_vm0, %v859_v23, 0.0 }
 0x17a   :  { %861 = vst [vmem:[%s1821_s3] sm:$0xff] %v860_v26 }

// kernel: ordinary_cnn_forward.6
= control target key start
LH: loop header
LB: loop body
LE: loop exit
PB: predicated region body
PF: predicated region fallthrough
CT: control target
= control target key end

     0   :  { %s3624_s0 = inlined_call_operand.vmem [shape: bf16[9,128,128], index: 0, kind: input, shape index: {}]   ;;  %s3625_s1 = inlined_call_operand.vmem [shape: f32[1,128], index: 1, kind: input, shape index: {}]   ;;  %s3626_s2 = inlined_call_operand.vmem [shape: f32[1,128], index: 2, kind: input, shape index: {}]   ;;  %s3627_s3 = inlined_call_operand.vmem [shape: bf16[128,128], index: 3, kind: output, shape index: {}]  }
   0x1   :  { %v1337_v0 = vld [vmem:[%s3624_s0] sm:$0xff]   ;;  %v1342_v1 = vld [vmem:[%s3624_s0 + $0x8] sm:$0xff]   ;;  %v1347_v2 = vld [vmem:[%s3624_s0 + $0x10] sm:$0xff]  }
   0x2   :  { %v1356_v7 = vld [vmem:[%s3624_s0 + $0x18] sm:$0xff]   ;;  %v1361_v8 = vld [vmem:[%s3624_s0 + $0x20] sm:$0xff]   ;;  %v1366_v9 = vld [vmem:[%s3624_s0 + $0x28] sm:$0xff]  }
   0x3   :  { %v1375_v14 = vld [vmem:[%s3624_s0 + $0x30] sm:$0xff]   ;;  %v1380_v15 = vld [vmem:[%s3624_s0 + $0x38] sm:$0xff]   ;;  %v1385_v16 = vld [vmem:[%s3624_s0 + $0x40] sm:$0xff]  }
   0x4   :  { %v1394_v21 = vld [vmem:[%s3624_s0 + $0x48] sm:$0xff]   ;;  %v1399_v22 = vld [vmem:[%s3624_s0 + $0x50] sm:$0xff]   ;;  %v1404_v23 = vld [vmem:[%s3624_s0 + $0x58] sm:$0xff]  }
   0x5   :  { %v1413_v28 = vld [vmem:[%s3624_s0 + $0x60] sm:$0xff]   ;;  %v1418_v29 = vld [vmem:[%s3624_s0 + $0x68] sm:$0xff]   ;;  %v1427_v34 = vld [vmem:[%s3624_s0 + $0x70] sm:$0xff]  }
   0x6   :  { %v1432_v35 = vld [vmem:[%s3624_s0 + $0x78] sm:$0xff]   ;;  %v1441_v40 = vld [vmem:[%s3624_s0 + $0x80] sm:$0xff]   ;;  %v1446_v41 = vld [vmem:[%s3624_s0 + $0x88] sm:$0xff]  }
   0x7   :  { %v1455_v46 = vld [vmem:[%s3624_s0 + $0x90] sm:$0xff]   ;;  %v1460_v47 = vld [vmem:[%s3624_s0 + $0x98] sm:$0xff]   ;;  %v1469_v52 = vld [vmem:[%s3624_s0 + $0xa0] sm:$0xff]  }
   0x8   :  { %v1474_v53 = vld [vmem:[%s3624_s0 + $0xa8] sm:$0xff]   ;;  %v1483_v58 = vld [vmem:[%s3624_s0 + $0xb0] sm:$0xff]   ;;  %v1488_v59 = vld [vmem:[%s3624_s0 + $0xb8] sm:$0xff]  }
   0x9   :  { %v1497_v57 = vld [vmem:[%s3624_s0 + $0xc0] sm:$0xff]   ;;  %v1502_v56 = vld [vmem:[%s3624_s0 + $0xc8] sm:$0xff]   ;;  %v1511_v63 = vld [vmem:[%s3624_s0 + $0xd0] sm:$0xff]  }
   0xa   :  { %v1516_v54 = vld [vmem:[%s3624_s0 + $0xd8] sm:$0xff]   ;;  %v1525_v62 = vld [vmem:[%s3624_s0 + $0xe0] sm:$0xff]   ;;  %v1530_v50 = vld [vmem:[%s3624_s0 + $0xe8] sm:$0xff]  }
   0xb   :  { %v1539_v61 = vld [vmem:[%s3624_s0 + $0xf0] sm:$0xff]   ;;  %v1544_v48 = vld [vmem:[%s3624_s0 + $0xf8] sm:$0xff]   ;;  %v1553_v60 = vld [vmem:[%s3624_s0 + $0x100] sm:$0xff]  }
   0xc   :  { %v1558_v44 = vld [vmem:[%s3624_s0 + $0x108] sm:$0xff]   ;;  %v1567_v55 = vld [vmem:[%s3624_s0 + $0x110] sm:$0xff]   ;;  %v1572_v42 = vld [vmem:[%s3624_s0 + $0x118] sm:$0xff]  }
   0xd   :  { %v1581_v51 = vld [vmem:[%s3624_s0 + $0x120] sm:$0xff]   ;;  %v1586_v38 = vld [vmem:[%s3624_s0 + $0x128] sm:$0xff]   ;;  %v1595_v49 = vld [vmem:[%s3624_s0 + $0x130] sm:$0xff]  }
   0xe   :  { %v1600_v36 = vld [vmem:[%s3624_s0 + $0x138] sm:$0xff]   ;;  %v1609_v45 = vld [vmem:[%s3624_s0 + $0x140] sm:$0xff]   ;;  %v1614_v32 = vld [vmem:[%s3624_s0 + $0x148] sm:$0xff]  }
   0xf   :  { %v1623_v43 = vld [vmem:[%s3624_s0 + $0x150] sm:$0xff]   ;;  %v1628_v30 = vld [vmem:[%s3624_s0 + $0x158] sm:$0xff]   ;;  %v1637_v39 = vld [vmem:[%s3624_s0 + $0x160] sm:$0xff]  }
  0x10   :  { %v1642_v26 = vld [vmem:[%s3624_s0 + $0x168] sm:$0xff]   ;;  %v1651_v37 = vld [vmem:[%s3624_s0 + $0x170] sm:$0xff]   ;;  %v1656_v24 = vld [vmem:[%s3624_s0 + $0x178] sm:$0xff]  }
  0x11   :  { %3791 = vst [vmem:[#allocation2_spill] sm:$0xff] %v1656_v24  ;;  %v1665_v33 = vld [vmem:[%s3624_s0 + $0x180] sm:$0xff]   ;;  %v1670_v19 = vld [vmem:[%s3624_s0 + $0x188] sm:$0xff]   ;;  %v1679_v31 = vld [vmem:[%s3624_s0 + $0x190] sm:$0xff]   ;;  %v3813_v24 = vunpack.c.h.bf16 %v1342_v1 }
  0x12   :  { %3792 = vst [vmem:[#allocation3_spill] sm:$0xff] %v1665_v33  ;;  %v1684_v17 = vld [vmem:[%s3624_s0 + $0x198] sm:$0xff]   ;;  %v1689_v18 = vld [vmem:[%s3624_s0 + $0x1a0] sm:$0xff]   ;;  %v1698_v12 = vld [vmem:[%s3624_s0 + $0x1a8] sm:$0xff]  }
  0x13   :  { %3793 = vst [vmem:[#allocation4_spill] sm:$0xff] %v1670_v19  ;;  %v1707_v25 = vld [vmem:[%s3624_s0 + $0x1b0] sm:$0xff]   ;;  %v1712_v13 = vld [vmem:[%s3624_s0 + $0x1b8] sm:$0xff]   ;;  %v1721_v5 = vld [vmem:[%s3624_s0 + $0x1c0] sm:$0xff]   ;;  %v3812_v19 = vunpack.c.l.bf16 %v1342_v1  ;;  %v3819_v1 = vunpack.c.h.bf16 %v1356_v7 }
  0x14   :  { %3794 = vst [vmem:[#allocation5_spill] sm:$0xff] %v1679_v31  ;;  %v1726_v20 = vld [vmem:[%s3624_s0 + $0x1c8] sm:$0xff]   ;;  %v1735_v6 = vld [vmem:[%s3624_s0 + $0x1d0] sm:$0xff]   ;;  %v1740_v3 = vld [vmem:[%s3624_s0 + $0x1d8] sm:$0xff]   ;;  %v3818_v31 = vunpack.c.l.bf16 %v1356_v7  ;;  %v3825_v7 = vunpack.c.h.bf16 %v1366_v9 }
  0x15   :  { %3795 = vst [vmem:[#allocation6_spill] sm:$0xff] %v1684_v17  ;;  %v1749_v10 = vld [vmem:[%s3624_s0 + $0x1e0] sm:$0xff]   ;;  %v1763_v11 = vld [vmem:[%s3624_s0 + $0x1f0] sm:$0xff]  }
  0x16   :  { %3796 = vst [vmem:[#allocation7_spill] sm:$0xff] %v1689_v18  ;;  %v1777_v27 = vld [vmem:[%s3624_s0 + $0x200] sm:$0xff]   ;;  %v1791_v4 = vld [vmem:[%s3624_s0 + $0x210] sm:$0xff]  }
  0x17   :  { %3797 = vst [vmem:[#allocation8_spill] sm:$0xff] %v1698_v12  ;;  %v1754_v12 = vld [vmem:[%s3624_s0 + $0x1e8] sm:$0xff]   ;;  %v1805_v17 = vld [vmem:[%s3624_s0 + $0x220] sm:$0xff]   ;;  %v1819_v18 = vld [vmem:[%s3624_s0 + $0x230] sm:$0xff]  }
  0x18   :  { %3798 = vst [vmem:[#allocation9_spill] sm:$0xff] %v1707_v25  ;;  %v3810_v25 = vunpack.c.l.bf16 %v1337_v0 }
  0x19   :  { %3799 = vst [vmem:[#allocation10_spill] sm:$0xff] %v1712_v13  ;;  %v1768_v13 = vld [vmem:[%s3624_s0 + $0x1f8] sm:$0xff]  }
  0x1a   :  { %3800 = vst [vmem:[#allocation11_spill] sm:$0xff] %v1721_v5  ;;  %v3815_v5 = vunpack.c.l.bf16 %v1347_v2 }
  0x1b   :  { %3801 = vst [vmem:[#allocation12_spill] sm:$0xff] %v1726_v20  ;;  %v1782_v20 = vld [vmem:[%s3624_s0 + $0x208] sm:$0xff]  }
  0x1c   :  { %3802 = vst [vmem:[#allocation13_spill] sm:$0xff] %v1735_v6 }
  0x1d   :  { %3803 = vst [vmem:[#allocation14_spill] sm:$0xff] %v1740_v3  ;;  %v1796_v3 = vld [vmem:[%s3624_s0 + $0x218] sm:$0xff]  }
  0x1e   :  { %3804 = vst [vmem:[#allocation15_spill] sm:$0xff] %v1749_v10  ;;  %v1829_v10 = vld [vmem:[%s3625_s1] ss:$0 sm:$0xff] }
  0x1f   :  { %3805 = vst [vmem:[#allocation16_spill] sm:$0xff] %v1754_v12  ;;  %v1810_v12 = vld [vmem:[%s3624_s0 + $0x228] sm:$0xff]   ;;  %v1856_v33 = vmul.f32 %v1829_v10, %v3812_v19  ;;  %v1861_v6 = vmul.f32 %v1829_v10, %v3813_v24  ;;  %v1876_v19 = vmul.f32 %v1829_v10, %v3818_v31  ;;  %v1881_v24 = vmul.f32 %v1829_v10, %v3819_v1 }
  0x20   :  { %3806 = vst [vmem:[#allocation17_spill] sm:$0xff] %v1763_v11  ;;  %v1901_v1 = vmul.f32 %v1829_v10, %v3825_v7 }
  0x21   :  { %3807 = vst [vmem:[#allocation18_spill] sm:$0xff] %v1768_v13  ;;  %v1824_v13 = vld [vmem:[%s3624_s0 + $0x238] sm:$0xff]  }
  0x22   :  { %3808 = vst [vmem:[#allocation19_spill] sm:$0xff] %v1777_v27  ;;  %v3811_v27 = vunpack.c.h.bf16 %v1337_v0  ;;  %v3816_v0 = vunpack.c.h.bf16 %v1347_v2  ;;  %v3822_v2 = vunpack.c.h.bf16 %v1361_v8 }
  0x23   :  { %3809 = vst [vmem:[#allocation20_spill] sm:$0xff] %v1782_v20  ;;  %v1846_v20 = vmul.f32 %v1829_v10, %v3810_v25  ;;  %v1866_v25 = vmul.f32 %v1829_v10, %v3815_v5 }
  0x24   :  { %v1851_v11 = vmul.f32 %v1829_v10, %v3811_v27  ;;  %3814 = vst [vmem:[#allocation21_spill] sm:$0xff] %v1861_v6  ;;  %v1871_v27 = vmul.f32 %v1829_v10, %v3816_v0  ;;  %v3821_v6 = vunpack.c.l.bf16 %v1361_v8  ;;  %v1891_v0 = vmul.f32 %v1829_v10, %v3822_v2 }
  0x25   :  { %3820 = vst [vmem:[#allocation23_spill] sm:$0xff] %v1881_v24  ;;  %v3827_v24 = vunpack.c.l.bf16 %v1375_v14  ;;  %v3828_v8 = vunpack.c.h.bf16 %v1375_v14  ;;  %v3834_v14 = vunpack.c.h.bf16 %v1385_v16 }
  0x26   :  { %3817 = vst [vmem:[#allocation22_spill] sm:$0xff] %v1871_v27  ;;  %v1886_v5 = vmul.f32 %v1829_v10, %v3821_v6  ;;  %v3824_v27 = vunpack.c.l.bf16 %v1366_v9  ;;  %v3831_v9 = vunpack.c.h.bf16 %v1380_v15 }
  0x27   :  { %3823 = vst [vmem:[#allocation24_spill] sm:$0xff] %v1891_v0  ;;  %v1906_v6 = vmul.f32 %v1829_v10, %v3827_v24  ;;  %v1911_v2 = vmul.f32 %v1829_v10, %v3828_v8  ;;  %v3830_v0 = vunpack.c.l.bf16 %v1380_v15  ;;  %v1931_v8 = vmul.f32 %v1829_v10, %v3834_v14 }
  0x28   :  { %v1896_v31 = vmul.f32 %v1829_v10, %v3824_v27  ;;  %3826 = vst [vmem:[#allocation25_spill] sm:$0xff] %v1901_v1  ;;  %v1921_v7 = vmul.f32 %v1829_v10, %v3831_v9  ;;  %v3833_v1 = vunpack.c.l.bf16 %v1385_v16  ;;  %v3837_v15 = vunpack.c.h.bf16 %v1394_v21 }
  0x29   :  { %3829 = vst [vmem:[#allocation26_spill] sm:$0xff] %v1911_v2  ;;  %v1916_v27 = vmul.f32 %v1829_v10, %v3830_v0  ;;  %v3836_v2 = vunpack.c.l.bf16 %v1394_v21  ;;  %v3840_v16 = vunpack.c.h.bf16 %v1399_v22  ;;  %v3843_v21 = vunpack.c.h.bf16 %v1404_v23 }
  0x2a   :  { %3832 = vst [vmem:[#allocation27_spill] sm:$0xff] %v1921_v7  ;;  %v1926_v24 = vmul.f32 %v1829_v10, %v3833_v1  ;;  %v1941_v9 = vmul.f32 %v1829_v10, %v3837_v15  ;;  %v3839_v7 = vunpack.c.l.bf16 %v1399_v22  ;;  %v3846_v22 = vunpack.c.h.bf16 %v1413_v28 }
  0x2b   :  { %3835 = vst [vmem:[#allocation28_spill] sm:$0xff] %v1931_v8  ;;  %v1936_v0 = vmul.f32 %v1829_v10, %v3836_v2  ;;  %v1951_v14 = vmul.f32 %v1829_v10, %v3840_v16  ;;  %v3842_v8 = vunpack.c.l.bf16 %v1404_v23  ;;  %v1961_v15 = vmul.f32 %v1829_v10, %v3843_v21 }
  0x2c   :  { %3838 = vst [vmem:[#allocation29_spill] sm:$0xff] %v1941_v9  ;;  %v1946_v1 = vmul.f32 %v1829_v10, %v3839_v7  ;;  %v3845_v9 = vunpack.c.l.bf16 %v1413_v28  ;;  %v1971_v16 = vmul.f32 %v1829_v10, %v3846_v22  ;;  %v3849_v23 = vunpack.c.h.bf16 %v1418_v29 }
  0x2d   :  { %3841 = vst [vmem:[#allocation30_spill] sm:$0xff] %v1951_v14  ;;  %v1956_v2 = vmul.f32 %v1829_v10, %v3842_v8  ;;  %v3848_v14 = vunpack.c.l.bf16 %v1418_v29  ;;  %v3852_v28 = vunpack.c.h.bf16 %v1427_v34  ;;  %v3855_v29 = vunpack.c.h.bf16 %v1432_v35 }
  0x2e   :  { %3844 = vst [vmem:[#allocation31_spill] sm:$0xff] %v1961_v15  ;;  %v1966_v7 = vmul.f32 %v1829_v10, %v3845_v9  ;;  %v1981_v21 = vmul.f32 %v1829_v10, %v3849_v23  ;;  %v3851_v15 = vunpack.c.l.bf16 %v1427_v34  ;;  %v3858_v34 = vunpack.c.h.bf16 %v1441_v40 }
  0x2f   :  { %3847 = vst [vmem:[#allocation32_spill] sm:$0xff] %v1971_v16  ;;  %v1976_v8 = vmul.f32 %v1829_v10, %v3848_v14  ;;  %v1991_v22 = vmul.f32 %v1829_v10, %v3852_v28  ;;  %v3854_v16 = vunpack.c.l.bf16 %v1432_v35  ;;  %v2001_v23 = vmul.f32 %v1829_v10, %v3855_v29 }
  0x30   :  { %3850 = vst [vmem:[#allocation33_spill] sm:$0xff] %v1981_v21  ;;  %v1986_v9 = vmul.f32 %v1829_v10, %v3851_v15  ;;  %v3857_v21 = vunpack.c.l.bf16 %v1441_v40  ;;  %v2011_v28 = vmul.f32 %v1829_v10, %v3858_v34  ;;  %v3861_v35 = vunpack.c.h.bf16 %v1446_v41 }
  0x31   :  { %3853 = vst [vmem:[#allocation34_spill] sm:$0xff] %v1991_v22  ;;  %v1996_v14 = vmul.f32 %v1829_v10, %v3854_v16  ;;  %v3860_v22 = vunpack.c.l.bf16 %v1446_v41  ;;  %v3864_v40 = vunpack.c.h.bf16 %v1455_v46  ;;  %v3867_v41 = vunpack.c.h.bf16 %v1460_v47 }
  0x32   :  { %3856 = vst [vmem:[#allocation35_spill] sm:$0xff] %v2001_v23  ;;  %v2006_v15 = vmul.f32 %v1829_v10, %v3857_v21  ;;  %v2021_v29 = vmul.f32 %v1829_v10, %v3861_v35  ;;  %v3863_v23 = vunpack.c.l.bf16 %v1455_v46  ;;  %v3870_v46 = vunpack.c.h.bf16 %v1469_v52 }
  0x33   :  { %3859 = vst [vmem:[#allocation36_spill] sm:$0xff] %v2011_v28  ;;  %v2016_v16 = vmul.f32 %v1829_v10, %v3860_v22  ;;  %v2031_v34 = vmul.f32 %v1829_v10, %v3864_v40  ;;  %v3866_v28 = vunpack.c.l.bf16 %v1460_v47  ;;  %v2041_v35 = vmul.f32 %v1829_v10, %v3867_v41 }
  0x34   :  { %3862 = vst [vmem:[#allocation37_spill] sm:$0xff] %v2021_v29  ;;  %v2026_v21 = vmul.f32 %v1829_v10, %v3863_v23  ;;  %v3869_v29 = vunpack.c.l.bf16 %v1469_v52  ;;  %v2051_v40 = vmul.f32 %v1829_v10, %v3870_v46  ;;  %v3873_v47 = vunpack.c.h.bf16 %v1474_v53 }
  0x35   :  { %3865 = vst [vmem:[#allocation38_spill] sm:$0xff] %v2031_v34  ;;  %v2036_v22 = vmul.f32 %v1829_v10, %v3866_v28  ;;  %v3872_v34 = vunpack.c.l.bf16 %v1474_v53  ;;  %v3876_v52 = vunpack.c.h.bf16 %v1483_v58  ;;  %v3879_v53 = vunpack.c.h.bf16 %v1488_v59 }
  0x36   :  { %3868 = vst [vmem:[#allocation39_spill] sm:$0xff] %v2041_v35  ;;  %v2046_v23 = vmul.f32 %v1829_v10, %v3869_v29  ;;  %v2061_v41 = vmul.f32 %v1829_v10, %v3873_v47  ;;  %v3875_v35 = vunpack.c.l.bf16 %v1483_v58  ;;  %v3882_v58 = vunpack.c.h.bf16 %v1497_v57 }
  0x37   :  { %3871 = vst [vmem:[#allocation40_spill] sm:$0xff] %v2051_v40  ;;  %v2056_v28 = vmul.f32 %v1829_v10, %v3872_v34  ;;  %v2071_v46 = vmul.f32 %v1829_v10, %v3876_v52  ;;  %v3878_v40 = vunpack.c.l.bf16 %v1488_v59  ;;  %v2081_v47 = vmul.f32 %v1829_v10, %v3879_v53 }
  0x38   :  { %3874 = vst [vmem:[#allocation41_spill] sm:$0xff] %v2061_v41  ;;  %v2066_v29 = vmul.f32 %v1829_v10, %v3875_v35  ;;  %v3881_v41 = vunpack.c.l.bf16 %v1497_v57  ;;  %v2091_v52 = vmul.f32 %v1829_v10, %v3882_v58  ;;  %v3885_v59 = vunpack.c.h.bf16 %v1502_v56 }
  0x39   :  { %3877 = vst [vmem:[#allocation42_spill] sm:$0xff] %v2071_v46  ;;  %v2076_v34 = vmul.f32 %v1829_v10, %v3878_v40  ;;  %v3884_v46 = vunpack.c.l.bf16 %v1502_v56  ;;  %v3888_v57 = vunpack.c.h.bf16 %v1511_v63  ;;  %v3891_v56 = vunpack.c.h.bf16 %v1516_v54 }
  0x3a   :  { %3880 = vst [vmem:[#allocation43_spill] sm:$0xff] %v2081_v47  ;;  %v2086_v35 = vmul.f32 %v1829_v10, %v3881_v41  ;;  %v2101_v53 = vmul.f32 %v1829_v10, %v3885_v59  ;;  %v3887_v47 = vunpack.c.l.bf16 %v1511_v63  ;;  %v3894_v63 = vunpack.c.h.bf16 %v1525_v62 }
  0x3b   :  { %3883 = vst [vmem:[#allocation44_spill] sm:$0xff] %v2091_v52  ;;  %v2096_v40 = vmul.f32 %v1829_v10, %v3884_v46  ;;  %v2111_v58 = vmul.f32 %v1829_v10, %v3888_v57  ;;  %v3890_v52 = vunpack.c.l.bf16 %v1516_v54  ;;  %v2121_v59 = vmul.f32 %v1829_v10, %v3891_v56 }
  0x3c   :  { %3886 = vst [vmem:[#allocation45_spill] sm:$0xff] %v2101_v53  ;;  %v2106_v41 = vmul.f32 %v1829_v10, %v3887_v47  ;;  %v3893_v53 = vunpack.c.l.bf16 %v1525_v62  ;;  %v2131_v57 = vmul.f32 %v1829_v10, %v3894_v63  ;;  %v3897_v54 = vunpack.c.h.bf16 %v1530_v50 }
  0x3d   :  { %3889 = vst [vmem:[#allocation46_spill] sm:$0xff] %v2111_v58  ;;  %v2116_v46 = vmul.f32 %v1829_v10, %v3890_v52  ;;  %v3896_v58 = vunpack.c.l.bf16 %v1530_v50  ;;  %v3900_v62 = vunpack.c.h.bf16 %v1539_v61  ;;  %v3903_v50 = vunpack.c.h.bf16 %v1544_v48 }
  0x3e   :  { %3892 = vst [vmem:[#allocation47_spill] sm:$0xff] %v2121_v59  ;;  %v2126_v47 = vmul.f32 %v1829_v10, %v3893_v53  ;;  %v2141_v56 = vmul.f32 %v1829_v10, %v3897_v54  ;;  %v3899_v59 = vunpack.c.l.bf16 %v1539_v61  ;;  %v3906_v61 = vunpack.c.h.bf16 %v1553_v60 }
  0x3f   :  { %3895 = vst [vmem:[#allocation48_spill] sm:$0xff] %v2131_v57  ;;  %v2136_v52 = vmul.f32 %v1829_v10, %v3896_v58  ;;  %v2151_v63 = vmul.f32 %v1829_v10, %v3900_v62  ;;  %v3902_v57 = vunpack.c.l.bf16 %v1544_v48  ;;  %v2161_v54 = vmul.f32 %v1829_v10, %v3903_v50 }
  0x40   :  { %3898 = vst [vmem:[#allocation49_spill] sm:$0xff] %v2141_v56  ;;  %v2146_v53 = vmul.f32 %v1829_v10, %v3899_v59  ;;  %v3905_v56 = vunpack.c.l.bf16 %v1553_v60  ;;  %v2171_v62 = vmul.f32 %v1829_v10, %v3906_v61  ;;  %v3909_v48 = vunpack.c.h.bf16 %v1558_v44 }
  0x41   :  { %3901 = vst [vmem:[#allocation50_spill] sm:$0xff] %v2151_v63  ;;  %v2156_v58 = vmul.f32 %v1829_v10, %v3902_v57  ;;  %v3908_v63 = vunpack.c.l.bf16 %v1558_v44  ;;  %v3912_v60 = vunpack.c.h.bf16 %v1567_v55  ;;  %v3915_v44 = vunpack.c.h.bf16 %v1572_v42 }
  0x42   :  { %3904 = vst [vmem:[#allocation51_spill] sm:$0xff] %v2161_v54  ;;  %v2166_v59 = vmul.f32 %v1829_v10, %v3905_v56  ;;  %v2181_v50 = vmul.f32 %v1829_v10, %v3909_v48  ;;  %v3911_v54 = vunpack.c.l.bf16 %v1567_v55  ;;  %v3918_v55 = vunpack.c.h.bf16 %v1581_v51 }
  0x43   :  { %3907 = vst [vmem:[#allocation52_spill] sm:$0xff] %v2171_v62  ;;  %v2176_v57 = vmul.f32 %v1829_v10, %v3908_v63  ;;  %v2191_v61 = vmul.f32 %v1829_v10, %v3912_v60  ;;  %v3914_v62 = vunpack.c.l.bf16 %v1572_v42  ;;  %v2201_v48 = vmul.f32 %v1829_v10, %v3915_v44 }
  0x44   :  { %3910 = vst [vmem:[#allocation53_spill] sm:$0xff] %v2181_v50  ;;  %v2186_v56 = vmul.f32 %v1829_v10, %v3911_v54  ;;  %v3917_v50 = vunpack.c.l.bf16 %v1581_v51  ;;  %v2211_v60 = vmul.f32 %v1829_v10, %v3918_v55  ;;  %v3921_v42 = vunpack.c.h.bf16 %v1586_v38 }
  0x45   :  { %3913 = vst [vmem:[#allocation54_spill] sm:$0xff] %v2191_v61  ;;  %v2196_v63 = vmul.f32 %v1829_v10, %v3914_v62  ;;  %v3920_v61 = vunpack.c.l.bf16 %v1586_v38  ;;  %v3924_v51 = vunpack.c.h.bf16 %v1595_v49  ;;  %v3927_v38 = vunpack.c.h.bf16 %v1600_v36 }
  0x46   :  { %3916 = vst [vmem:[#allocation55_spill] sm:$0xff] %v2201_v48  ;;  %v2206_v54 = vmul.f32 %v1829_v10, %v3917_v50  ;;  %v2221_v44 = vmul.f32 %v1829_v10, %v3921_v42  ;;  %v3923_v48 = vunpack.c.l.bf16 %v1595_v49  ;;  %v3930_v49 = vunpack.c.h.bf16 %v1609_v45 }
  0x47   :  { %3919 = vst [vmem:[#allocation56_spill] sm:$0xff] %v2211_v60  ;;  %v2216_v62 = vmul.f32 %v1829_v10, %v3920_v61  ;;  %v2231_v55 = vmul.f32 %v1829_v10, %v3924_v51  ;;  %v3926_v60 = vunpack.c.l.bf16 %v1600_v36  ;;  %v2241_v42 = vmul.f32 %v1829_v10, %v3927_v38 }
  0x48   :  { %3922 = vst [vmem:[#allocation57_spill] sm:$0xff] %v2221_v44  ;;  %v2226_v50 = vmul.f32 %v1829_v10, %v3923_v48  ;;  %v3929_v44 = vunpack.c.l.bf16 %v1609_v45  ;;  %v2251_v51 = vmul.f32 %v1829_v10, %v3930_v49  ;;  %v3933_v36 = vunpack.c.h.bf16 %v1614_v32 }
  0x49   :  { %3925 = vst [vmem:[#allocation58_spill] sm:$0xff] %v2231_v55  ;;  %v2236_v61 = vmul.f32 %v1829_v10, %v3926_v60  ;;  %v3932_v55 = vunpack.c.l.bf16 %v1614_v32  ;;  %v3936_v45 = vunpack.c.h.bf16 %v1623_v43  ;;  %v3939_v32 = vunpack.c.h.bf16 %v1628_v30 }
  0x4a   :  { %3928 = vst [vmem:[#allocation59_spill] sm:$0xff] %v2241_v42  ;;  %v2246_v48 = vmul.f32 %v1829_v10, %v3929_v44  ;;  %v2261_v38 = vmul.f32 %v1829_v10, %v3933_v36  ;;  %v3935_v42 = vunpack.c.l.bf16 %v1623_v43  ;;  %v3943_v43 = vunpack.c.h.bf16 %v1637_v39 }
  0x4b   :  { %3931 = vst [vmem:[#allocation60_spill] sm:$0xff] %v2251_v51  ;;  %v2256_v60 = vmul.f32 %v1829_v10, %v3932_v55  ;;  %v2271_v49 = vmul.f32 %v1829_v10, %v3936_v45  ;;  %v3938_v51 = vunpack.c.l.bf16 %v1628_v30  ;;  %v2281_v36 = vmul.f32 %v1829_v10, %v3939_v32 }
  0x4c   :  { %3934 = vst [vmem:[#allocation61_spill] sm:$0xff] %v2261_v38  ;;  %v2266_v44 = vmul.f32 %v1829_v10, %v3935_v42  ;;  %v3941_v38 = vunpack.c.l.bf16 %v1637_v39  ;;  %v2291_v45 = vmul.f32 %v1829_v10, %v3943_v43  ;;  %v3947_v30 = vunpack.c.h.bf16 %v1642_v26 }
  0x4d   :  { %3937 = vst [vmem:[#allocation62_spill] sm:$0xff] %v2271_v49  ;;  %v2276_v55 = vmul.f32 %v1829_v10, %v3938_v51  ;;  %v3945_v49 = vunpack.c.l.bf16 %v1642_v26  ;;  %v3951_v39 = vunpack.c.h.bf16 %v1651_v37 }
  0x4e   :  { %3940 = vst [vmem:[#allocation63_spill] sm:$0xff] %v2281_v36  ;;  %v2286_v42 = vmul.f32 %v1829_v10, %v3941_v38  ;;  %v2301_v32 = vmul.f32 %v1829_v10, %v3947_v30  ;;  %v3949_v36 = vunpack.c.l.bf16 %v1651_v37 }
  0x4f   :  { %3944 = vst [vmem:[#allocation65_spill] sm:$0xff] %v2291_v45  ;;  %v2296_v51 = vmul.f32 %v1829_v10, %v3945_v49  ;;  %v2311_v43 = vmul.f32 %v1829_v10, %v3951_v39  ;;  %v3953_v45 = vld [vmem:[#allocation2_spill] sm:$0xff] }
  0x50   :  { %3942 = vst [vmem:[#allocation64_spill] sm:$0xff] %v2286_v42  ;;  %v2306_v38 = vmul.f32 %v1829_v10, %v3949_v36  ;;  %v3954_v42 = vunpack.c.l.bf16 %v3953_v45  ;;  %v3956_v26 = vunpack.c.h.bf16 %v3953_v45 }
  0x51   :  { %3946 = vst [vmem:[#allocation66_spill] sm:$0xff] %v2296_v51 }
  0x52   :  { %3948 = vst [vmem:[#allocation67_spill] sm:$0xff] %v2301_v32  ;;  %v2316_v49 = vmul.f32 %v1829_v10, %v3954_v42  ;;  %v2321_v30 = vmul.f32 %v1829_v10, %v3956_v26  ;;  %v3958_v32 = vld [vmem:[#allocation3_spill] sm:$0xff] }
  0x53   :  { %3950 = vst [vmem:[#allocation68_spill] sm:$0xff] %v2306_v38  ;;  %v3959_v51 = vunpack.c.l.bf16 %v3958_v32  ;;  %v3961_v37 = vunpack.c.h.bf16 %v3958_v32 }
  0x54   :  { %3952 = vst [vmem:[#allocation69_spill] sm:$0xff] %v2311_v43  ;;  %v3963_v43 = vld [vmem:[#allocation4_spill] sm:$0xff] }
  0x55   :  { %3955 = vst [vmem:[#allocation2_spill] sm:$0xff] %v2316_v49  ;;  %v2326_v36 = vmul.f32 %v1829_v10, %v3959_v51  ;;  %v2331_v39 = vmul.f32 %v1829_v10, %v3961_v37  ;;  %v3964_v38 = vunpack.c.l.bf16 %v3963_v43  ;;  %v3966_v45 = vunpack.c.h.bf16 %v3963_v43 }
  0x56   :  { %3957 = vst [vmem:[#allocation70_spill] sm:$0xff] %v2321_v30  ;;  %v3968_v30 = vld [vmem:[#allocation5_spill] sm:$0xff] }
  0x57   :  { %3960 = vst [vmem:[#allocation3_spill] sm:$0xff] %v2326_v36  ;;  %v2336_v42 = vmul.f32 %v1829_v10, %v3964_v38  ;;  %v2341_v26 = vmul.f32 %v1829_v10, %v3966_v45  ;;  %v3969_v49 = vunpack.c.l.bf16 %v3968_v30  ;;  %v3971_v32 = vunpack.c.h.bf16 %v3968_v30 }
  0x58   :  { %3962 = vst [vmem:[#allocation71_spill] sm:$0xff] %v2331_v39  ;;  %v3973_v39 = vld [vmem:[#allocation6_spill] sm:$0xff] }
  0x59   :  { %3965 = vst [vmem:[#allocation4_spill] sm:$0xff] %v2336_v42  ;;  %v2346_v51 = vmul.f32 %v1829_v10, %v3969_v49  ;;  %v2351_v37 = vmul.f32 %v1829_v10, %v3971_v32  ;;  %v3974_v36 = vunpack.c.l.bf16 %v3973_v39  ;;  %v3976_v43 = vunpack.c.h.bf16 %v3973_v39 }
  0x5a   :  { %3967 = vst [vmem:[#allocation72_spill] sm:$0xff] %v2341_v26  ;;  %v3978_v26 = vld [vmem:[#allocation7_spill] sm:$0xff] }
  0x5b   :  { %3970 = vst [vmem:[#allocation5_spill] sm:$0xff] %v2346_v51  ;;  %v2356_v38 = vmul.f32 %v1829_v10, %v3974_v36  ;;  %v2361_v45 = vmul.f32 %v1829_v10, %v3976_v43  ;;  %v3979_v42 = vunpack.c.l.bf16 %v3978_v26  ;;  %v3981_v30 = vunpack.c.h.bf16 %v3978_v26 }
  0x5c   :  { %3972 = vst [vmem:[#allocation73_spill] sm:$0xff] %v2351_v37  ;;  %v3983_v37 = vld [vmem:[#allocation8_spill] sm:$0xff] }
  0x5d   :  { %3975 = vst [vmem:[#allocation6_spill] sm:$0xff] %v2356_v38  ;;  %v2366_v49 = vmul.f32 %v1829_v10, %v3979_v42  ;;  %v2371_v32 = vmul.f32 %v1829_v10, %v3981_v30  ;;  %v3984_v51 = vunpack.c.l.bf16 %v3983_v37  ;;  %v3986_v39 = vunpack.c.h.bf16 %v3983_v37 }
  0x5e   :  { %3977 = vst [vmem:[#allocation74_spill] sm:$0xff] %v2361_v45  ;;  %v3988_v45 = vld [vmem:[#allocation9_spill] sm:$0xff] }
  0x5f   :  { %3980 = vst [vmem:[#allocation7_spill] sm:$0xff] %v2366_v49  ;;  %v2376_v36 = vmul.f32 %v1829_v10, %v3984_v51  ;;  %v2381_v43 = vmul.f32 %v1829_v10, %v3986_v39  ;;  %v3989_v38 = vunpack.c.l.bf16 %v3988_v45  ;;  %v3991_v26 = vunpack.c.h.bf16 %v3988_v45 }
  0x60   :  { %3982 = vst [vmem:[#allocation75_spill] sm:$0xff] %v2371_v32  ;;  %v3993_v32 = vld [vmem:[#allocation10_spill] sm:$0xff] }
  0x61   :  { %3985 = vst [vmem:[#allocation8_spill] sm:$0xff] %v2376_v36  ;;  %v2386_v42 = vmul.f32 %v1829_v10, %v3989_v38  ;;  %v2391_v30 = vmul.f32 %v1829_v10, %v3991_v26  ;;  %v3994_v49 = vunpack.c.l.bf16 %v3993_v32  ;;  %v3996_v37 = vunpack.c.h.bf16 %v3993_v32 }
  0x62   :  { %3987 = vst [vmem:[#allocation76_spill] sm:$0xff] %v2381_v43  ;;  %v3998_v43 = vld [vmem:[#allocation11_spill] sm:$0xff] }
  0x63   :  { %3990 = vst [vmem:[#allocation9_spill] sm:$0xff] %v2386_v42  ;;  %v2396_v51 = vmul.f32 %v1829_v10, %v3994_v49  ;;  %v2401_v39 = vmul.f32 %v1829_v10, %v3996_v37  ;;  %v3999_v36 = vunpack.c.l.bf16 %v3998_v43  ;;  %v4001_v45 = vunpack.c.h.bf16 %v3998_v43 }
  0x64   :  { %3992 = vst [vmem:[#allocation77_spill] sm:$0xff] %v2391_v30  ;;  %v4003_v30 = vld [vmem:[#allocation12_spill] sm:$0xff] }
  0x65   :  { %3995 = vst [vmem:[#allocation10_spill] sm:$0xff] %v2396_v51  ;;  %v2406_v38 = vmul.f32 %v1829_v10, %v3999_v36  ;;  %v2411_v26 = vmul.f32 %v1829_v10, %v4001_v45  ;;  %v4004_v42 = vunpack.c.l.bf16 %v4003_v30  ;;  %v4006_v32 = vunpack.c.h.bf16 %v4003_v30 }
  0x66   :  { %3997 = vst [vmem:[#allocation78_spill] sm:$0xff] %v2401_v39  ;;  %v4008_v39 = vld [vmem:[#allocation13_spill] sm:$0xff] }
  0x67   :  { %4000 = vst [vmem:[#allocation11_spill] sm:$0xff] %v2406_v38  ;;  %v2416_v49 = vmul.f32 %v1829_v10, %v4004_v42  ;;  %v2421_v37 = vmul.f32 %v1829_v10, %v4006_v32  ;;  %v4009_v51 = vunpack.c.l.bf16 %v4008_v39  ;;  %v4011_v43 = vunpack.c.h.bf16 %v4008_v39 }
  0x68   :  { %4002 = vst [vmem:[#allocation79_spill] sm:$0xff] %v2411_v26  ;;  %v4013_v26 = vld [vmem:[#allocation14_spill] sm:$0xff] }
  0x69   :  { %4005 = vst [vmem:[#allocation12_spill] sm:$0xff] %v2416_v49  ;;  %v2426_v36 = vmul.f32 %v1829_v10, %v4009_v51  ;;  %v2431_v45 = vmul.f32 %v1829_v10, %v4011_v43  ;;  %v4014_v38 = vunpack.c.l.bf16 %v4013_v26  ;;  %v4016_v30 = vunpack.c.h.bf16 %v4013_v26 }
  0x6a   :  { %4007 = vst [vmem:[#allocation80_spill] sm:$0xff] %v2421_v37  ;;  %v4018_v37 = vld [vmem:[#allocation15_spill] sm:$0xff] }
  0x6b   :  { %4010 = vst [vmem:[#allocation13_spill] sm:$0xff] %v2426_v36  ;;  %v2436_v42 = vmul.f32 %v1829_v10, %v4014_v38  ;;  %v2441_v32 = vmul.f32 %v1829_v10, %v4016_v30  ;;  %v4019_v49 = vunpack.c.l.bf16 %v4018_v37  ;;  %v4021_v39 = vunpack.c.h.bf16 %v4018_v37 }
  0x6c   :  { %4012 = vst [vmem:[#allocation81_spill] sm:$0xff] %v2431_v45  ;;  %v4023_v45 = vld [vmem:[#allocation16_spill] sm:$0xff] }
  0x6d   :  { %4015 = vst [vmem:[#allocation14_spill] sm:$0xff] %v2436_v42  ;;  %v2446_v51 = vmul.f32 %v1829_v10, %v4019_v49  ;;  %v2451_v43 = vmul.f32 %v1829_v10, %v4021_v39  ;;  %v4024_v36 = vunpack.c.l.bf16 %v4023_v45  ;;  %v4026_v26 = vunpack.c.h.bf16 %v4023_v45 }
  0x6e   :  { %4017 = vst [vmem:[#allocation82_spill] sm:$0xff] %v2441_v32  ;;  %v4028_v32 = vld [vmem:[#allocation17_spill] sm:$0xff] }
  0x6f   :  { %4020 = vst [vmem:[#allocation15_spill] sm:$0xff] %v2446_v51  ;;  %v2456_v38 = vmul.f32 %v1829_v10, %v4024_v36  ;;  %v2461_v30 = vmul.f32 %v1829_v10, %v4026_v26  ;;  %v4029_v42 = vunpack.c.l.bf16 %v4028_v32  ;;  %v4031_v37 = vunpack.c.h.bf16 %v4028_v32 }
  0x70   :  { %4022 = vst [vmem:[#allocation83_spill] sm:$0xff] %v2451_v43  ;;  %v4033_v43 = vld [vmem:[#allocation18_spill] sm:$0xff] }
  0x71   :  { %4025 = vst [vmem:[#allocation16_spill] sm:$0xff] %v2456_v38  ;;  %v2466_v49 = vmul.f32 %v1829_v10, %v4029_v42  ;;  %v2471_v39 = vmul.f32 %v1829_v10, %v4031_v37  ;;  %v4034_v51 = vunpack.c.l.bf16 %v4033_v43  ;;  %v4035_v45 = vunpack.c.h.bf16 %v4033_v43 }
  0x72   :  { %4027 = vst [vmem:[#allocation84_spill] sm:$0xff] %v2461_v30  ;;  %v4036_v30 = vld [vmem:[#allocation19_spill] sm:$0xff] }
  0x73   :  { %4030 = vst [vmem:[#allocation17_spill] sm:$0xff] %v2466_v49  ;;  %v2476_v36 = vmul.f32 %v1829_v10, %v4034_v51  ;;  %v2481_v26 = vmul.f32 %v1829_v10, %v4035_v45  ;;  %v4037_v38 = vunpack.c.l.bf16 %v4036_v30  ;;  %v4039_v32 = vunpack.c.h.bf16 %v4036_v30 }
  0x74   :  { %4032 = vst [vmem:[#allocation85_spill] sm:$0xff] %v2471_v39  ;;  %v4041_v39 = vld [vmem:[#allocation20_spill] sm:$0xff]  ;;  %v4046_v30 = vunpack.c.l.bf16 %v1791_v4 }
  0x75   :  { %v2486_v42 = vmul.f32 %v1829_v10, %v4037_v38  ;;  %v2491_v37 = vmul.f32 %v1829_v10, %v4039_v32  ;;  %v4042_v49 = vunpack.c.l.bf16 %v4041_v39  ;;  %v4044_v43 = vunpack.c.h.bf16 %v4041_v39  ;;  %v2506_v38 = vld [vmem:[%s3626_s2] ss:$0 sm:$0xff] }
  0x76   :  { %v2511_v32 = vmul.f32 %v1829_v10, %v4046_v30  ;;  %v4049_v39 = vunpack.c.l.bf16 %v1796_v3 }
  0x77   :  { %4038 = vst [vmem:[#allocation18_spill] sm:$0xff] %v2486_v42  ;;  %v2496_v51 = vmul.f32 %v1829_v10, %v4042_v49  ;;  %v2501_v45 = vmul.f32 %v1829_v10, %v4044_v43  ;;  %v4052_v42 = vunpack.c.l.bf16 %v1805_v17 }
  0x78   :  { %4040 = vst [vmem:[#allocation19_spill] sm:$0xff] %v2491_v37  ;;  %v4047_v37 = vunpack.c.h.bf16 %v1791_v4  ;;  %v2521_v43 = vmul.f32 %v1829_v10, %v4049_v39  ;;  %v4053_v4 = vunpack.c.h.bf16 %v1805_v17  ;;  %v4059_v17 = vunpack.c.h.bf16 %v1819_v18 }
  0x79   :  { %4043 = vst [vmem:[#allocation20_spill] sm:$0xff] %v2496_v51  ;;  %v2531_v30 = vmul.f32 %v1829_v10, %v4052_v42 }
  0x7a   :  { %4045 = vst [vmem:[#allocation86_spill] sm:$0xff] %v2501_v45  ;;  %v2516_v49 = vmul.f32 %v1829_v10, %v4047_v37  ;;  %v4050_v45 = vunpack.c.h.bf16 %v1796_v3  ;;  %v2536_v37 = vmul.f32 %v1829_v10, %v4053_v4  ;;  %v4056_v3 = vunpack.c.h.bf16 %v1810_v12 }
  0x7b   :  { %v2556_v4 = vmul.f32 %v1829_v10, %v4059_v17  ;;  %v4064_v17 = vld [vmem:[#allocation21_spill] sm:$0xff] }
  0x7c   :  { %4048 = vst [vmem:[#allocation87_spill] sm:$0xff] %v2516_v49  ;;  %v2526_v51 = vmul.f32 %v1829_v10, %v4050_v45  ;;  %v4055_v49 = vunpack.c.l.bf16 %v1810_v12  ;;  %v2546_v45 = vmul.f32 %v1829_v10, %v4056_v3  ;;  %v4061_v12 = vunpack.c.h.bf16 %v1824_v13 }
  0x7d   :  { %4054 = vst [vmem:[#allocation89_spill] sm:$0xff] %v2536_v37  ;;  %v4060_v37 = vunpack.c.l.bf16 %v1824_v13  ;;  %v4067_v13 = vld [vmem:[#allocation22_spill] sm:$0xff] }
  0x7e   :  { %4051 = vst [vmem:[#allocation88_spill] sm:$0xff] %v2526_v51  ;;  %v2541_v39 = vmul.f32 %v1829_v10, %v4055_v49  ;;  %v4058_v51 = vunpack.c.l.bf16 %v1819_v18  ;;  %v2566_v3 = vmul.f32 %v1829_v10, %v4061_v12  ;;  %v2574_v18 = vadd.f32 %v2506_v38, %v1851_v11  ;;  %v4070_v12 = vld [vmem:[#allocation23_spill] sm:$0xff] }
  0x7f   :  { %4057 = vst [vmem:[#allocation90_spill] sm:$0xff] %v2546_v45  ;;  %v2561_v49 = vmul.f32 %v1829_v10, %v4060_v37  ;;  %v2570_v45 = vadd.f32 %v2506_v38, %v1846_v20  ;;  %v2582_v37 = vadd.f32 %v2506_v38, %v4064_v17  ;;  %v2590_v20 = vadd.f32 %v2506_v38, %v4067_v13 }
  0x80   :  { %v2551_v42 = vmul.f32 %v1829_v10, %v4058_v51  ;;  %v2578_v51 = vadd.f32 %v2506_v38, %v1856_v33  ;;  %v2586_v10 = vadd.f32 %v2506_v38, %v1866_v25  ;;  %v2594_v11 = vadd.f32 %v2506_v38, %v1876_v19 }
  0x81   :  { %4062 = vst [vmem:[#allocation91_spill] sm:$0xff] %v2570_v45  ;;  %v2598_v33 = vadd.f32 %v2506_v38, %v4070_v12  ;;  %v2602_v17 = vadd.f32 %v2506_v38, %v1886_v5  ;;  %v2610_v13 = vadd.f32 %v2506_v38, %v1896_v31  ;;  %v2618_v12 = vadd.f32 %v2506_v38, %v1906_v6 }
  0x82   :  { %4063 = vst [vmem:[#allocation92_spill] sm:$0xff] %v2578_v51 }
  0x83   :  { %4065 = vst [vmem:[#allocation21_spill] sm:$0xff] %v2582_v37  ;;  %v4073_v37 = vld [vmem:[#allocation24_spill] sm:$0xff] }
  0x84   :  { %4066 = vst [vmem:[#allocation93_spill] sm:$0xff] %v2586_v10  ;;  %v2606_v25 = vadd.f32 %v2506_v38, %v4073_v37  ;;  %v2626_v37 = vadd.f32 %v2506_v38, %v1916_v27 }
  0x85   :  { %4068 = vst [vmem:[#allocation22_spill] sm:$0xff] %v2590_v20  ;;  %v4076_v20 = vld [vmem:[#allocation25_spill] sm:$0xff] }
  0x86   :  { %4069 = vst [vmem:[#allocation94_spill] sm:$0xff] %v2594_v11  ;;  %v2614_v19 = vadd.f32 %v2506_v38, %v4076_v20  ;;  %v2634_v20 = vadd.f32 %v2506_v38, %v1926_v24 }
  0x87   :  { %4071 = vst [vmem:[#allocation23_spill] sm:$0xff] %v2598_v33  ;;  %v4079_v33 = vld [vmem:[#allocation26_spill] sm:$0xff] }
  0x88   :  { %4072 = vst [vmem:[#allocation95_spill] sm:$0xff] %v2602_v17  ;;  %v2622_v5 = vadd.f32 %v2506_v38, %v4079_v33  ;;  %v2642_v33 = vadd.f32 %v2506_v38, %v1936_v0 }
  0x89   :  { %4074 = vst [vmem:[#allocation24_spill] sm:$0xff] %v2606_v25  ;;  %v4082_v25 = vld [vmem:[#allocation27_spill] sm:$0xff]  ;;  %v4376_v51 = vld [vmem:[#allocation92_spill] sm:$0xff] }
  0x8a   :  { %4075 = vst [vmem:[#allocation96_spill] sm:$0xff] %v2610_v13  ;;  %v2630_v31 = vadd.f32 %v2506_v38, %v4082_v25  ;;  %v2650_v25 = vadd.f32 %v2506_v38, %v1946_v1 }
  0x8b   :  { %4077 = vst [vmem:[#allocation25_spill] sm:$0xff] %v2614_v19  ;;  %v4084_v19 = vld [vmem:[#allocation28_spill] sm:$0xff] }
  0x8c   :  { %4078 = vst [vmem:[#allocation97_spill] sm:$0xff] %v2618_v12  ;;  %v2638_v6 = vadd.f32 %v2506_v38, %v4084_v19  ;;  %v2658_v19 = vadd.f32 %v2506_v38, %v1956_v2 }
  0x8d   :  { %4080 = vst [vmem:[#allocation26_spill] sm:$0xff] %v2622_v5  ;;  %v4086_v5 = vld [vmem:[#allocation29_spill] sm:$0xff] }
  0x8e   :  { %4081 = vst [vmem:[#allocation98_spill] sm:$0xff] %v2626_v37  ;;  %v2646_v27 = vadd.f32 %v2506_v38, %v4086_v5  ;;  %v2666_v5 = vadd.f32 %v2506_v38, %v1966_v7 }
  0x8f   :  { %4083 = vst [vmem:[#allocation27_spill] sm:$0xff] %v2630_v31  ;;  %v4088_v31 = vld [vmem:[#allocation30_spill] sm:$0xff] }
  0x90   :  { %4085 = vst [vmem:[#allocation28_spill] sm:$0xff] %v2638_v6  ;;  %v2654_v24 = vadd.f32 %v2506_v38, %v4088_v31  ;;  %v4090_v6 = vld [vmem:[#allocation31_spill] sm:$0xff]  ;;  %v2674_v31 = vadd.f32 %v2506_v38, %v1976_v8 }
  0x91   :  { %4087 = vst [vmem:[#allocation29_spill] sm:$0xff] %v2646_v27  ;;  %v2662_v0 = vadd.f32 %v2506_v38, %v4090_v6  ;;  %v4093_v27 = vld [vmem:[#allocation32_spill] sm:$0xff]  ;;  %v2682_v6 = vadd.f32 %v2506_v38, %v1986_v9 }
  0x92   :  { %4089 = vst [vmem:[#allocation30_spill] sm:$0xff] %v2654_v24  ;;  %v2670_v1 = vadd.f32 %v2506_v38, %v4093_v27  ;;  %v4096_v24 = vld [vmem:[#allocation33_spill] sm:$0xff]  ;;  %v2690_v27 = vadd.f32 %v2506_v38, %v1996_v14 }
  0x93   :  { %4091 = vst [vmem:[#allocation31_spill] sm:$0xff] %v2662_v0  ;;  %v2678_v2 = vadd.f32 %v2506_v38, %v4096_v24  ;;  %v4099_v0 = vld [vmem:[#allocation34_spill] sm:$0xff]  ;;  %v2698_v24 = vadd.f32 %v2506_v38, %v2006_v15 }
  0x94   :  { %4092 = vst [vmem:[#allocation99_spill] sm:$0xff] %v2666_v5  ;;  %v2686_v7 = vadd.f32 %v2506_v38, %v4099_v0  ;;  %v2706_v0 = vadd.f32 %v2506_v38, %v2016_v16 }
  0x95   :  { %4094 = vst [vmem:[#allocation32_spill] sm:$0xff] %v2670_v1  ;;  %v4102_v1 = vld [vmem:[#allocation35_spill] sm:$0xff] }
  0x96   :  { %4095 = vst [vmem:[#allocation100_spill] sm:$0xff] %v2674_v31  ;;  %v2694_v8 = vadd.f32 %v2506_v38, %v4102_v1  ;;  %v2714_v1 = vadd.f32 %v2506_v38, %v2026_v21 }
  0x97   :  { %4097 = vst [vmem:[#allocation33_spill] sm:$0xff] %v2678_v2  ;;  %v4104_v2 = vld [vmem:[#allocation36_spill] sm:$0xff] }
  0x98   :  { %4098 = vst [vmem:[#allocation101_spill] sm:$0xff] %v2682_v6  ;;  %v2702_v9 = vadd.f32 %v2506_v38, %v4104_v2  ;;  %v2722_v2 = vadd.f32 %v2506_v38, %v2036_v22  ;;  %v4283_v11 = vld [vmem:[#allocation28_spill] sm:$0xff]  ;;  %v4284_v17 = vld [vmem:[#allocation29_spill] sm:$0xff] }
  0x99   :  { %4100 = vst [vmem:[#allocation34_spill] sm:$0xff] %v2686_v7  ;;  %v4106_v7 = vld [vmem:[#allocation37_spill] sm:$0xff]  ;;  %v4285_v13 = vld [vmem:[#allocation30_spill] sm:$0xff] }
  0x9a   :  { %4101 = vst [vmem:[#allocation102_spill] sm:$0xff] %v2690_v27  ;;  %v2710_v14 = vadd.f32 %v2506_v38, %v4106_v7  ;;  %v2730_v7 = vadd.f32 %v2506_v38, %v2046_v23  ;;  %v4286_v12 = vld [vmem:[#allocation31_spill] sm:$0xff] }
  0x9b   :  { %4103 = vst [vmem:[#allocation35_spill] sm:$0xff] %v2694_v8  ;;  %v4108_v8 = vld [vmem:[#allocation38_spill] sm:$0xff] }
  0x9c   :  { %4105 = vst [vmem:[#allocation36_spill] sm:$0xff] %v2702_v9  ;;  %v2718_v15 = vadd.f32 %v2506_v38, %v4108_v8  ;;  %v4110_v9 = vld [vmem:[#allocation39_spill] sm:$0xff]  ;;  %v2738_v8 = vadd.f32 %v2506_v38, %v2056_v28 }
  0x9d   :  { %4107 = vst [vmem:[#allocation37_spill] sm:$0xff] %v2710_v14  ;;  %v2726_v16 = vadd.f32 %v2506_v38, %v4110_v9  ;;  %v4113_v14 = vld [vmem:[#allocation40_spill] sm:$0xff]  ;;  %v2746_v9 = vadd.f32 %v2506_v38, %v2066_v29 }
  0x9e   :  { %4109 = vst [vmem:[#allocation38_spill] sm:$0xff] %v2718_v15  ;;  %v2734_v21 = vadd.f32 %v2506_v38, %v4113_v14  ;;  %v4116_v15 = vld [vmem:[#allocation41_spill] sm:$0xff]  ;;  %v2754_v14 = vadd.f32 %v2506_v38, %v2076_v34 }
  0x9f   :  { %4111 = vst [vmem:[#allocation39_spill] sm:$0xff] %v2726_v16  ;;  %v2742_v22 = vadd.f32 %v2506_v38, %v4116_v15  ;;  %v4119_v16 = vld [vmem:[#allocation42_spill] sm:$0xff]  ;;  %v2762_v15 = vadd.f32 %v2506_v38, %v2086_v35 }
  0xa0   :  { %4112 = vst [vmem:[#allocation103_spill] sm:$0xff] %v2730_v7  ;;  %v2750_v23 = vadd.f32 %v2506_v38, %v4119_v16  ;;  %v2770_v16 = vadd.f32 %v2506_v38, %v2096_v40 }
  0xa1   :  { %4114 = vst [vmem:[#allocation40_spill] sm:$0xff] %v2734_v21  ;;  %v4122_v21 = vld [vmem:[#allocation43_spill] sm:$0xff] }
  0xa2   :  { %4115 = vst [vmem:[#allocation104_spill] sm:$0xff] %v2738_v8  ;;  %v2758_v28 = vadd.f32 %v2506_v38, %v4122_v21  ;;  %v2778_v21 = vadd.f32 %v2506_v38, %v2106_v41 }
  0xa3   :  { %4117 = vst [vmem:[#allocation41_spill] sm:$0xff] %v2742_v22  ;;  %v4124_v22 = vld [vmem:[#allocation44_spill] sm:$0xff] }
  0xa4   :  { %4118 = vst [vmem:[#allocation105_spill] sm:$0xff] %v2746_v9  ;;  %v2766_v29 = vadd.f32 %v2506_v38, %v4124_v22  ;;  %v2786_v22 = vadd.f32 %v2506_v38, %v2116_v46  ;;  %v4292_v5 = vld [vmem:[#allocation37_spill] sm:$0xff] }
  0xa5   :  { %4120 = vst [vmem:[#allocation42_spill] sm:$0xff] %v2750_v23  ;;  %v4126_v23 = vld [vmem:[#allocation45_spill] sm:$0xff]  ;;  %v4293_v31 = vld [vmem:[#allocation38_spill] sm:$0xff] }
  0xa6   :  { %4121 = vst [vmem:[#allocation106_spill] sm:$0xff] %v2754_v14  ;;  %v2774_v34 = vadd.f32 %v2506_v38, %v4126_v23  ;;  %v2794_v23 = vadd.f32 %v2506_v38, %v2126_v47  ;;  %v4294_v6 = vld [vmem:[#allocation39_spill] sm:$0xff] }
  0xa7   :  { %4123 = vst [vmem:[#allocation43_spill] sm:$0xff] %v2758_v28  ;;  %v4128_v28 = vld [vmem:[#allocation46_spill] sm:$0xff] }
  0xa8   :  { %4125 = vst [vmem:[#allocation44_spill] sm:$0xff] %v2766_v29  ;;  %v2782_v35 = vadd.f32 %v2506_v38, %v4128_v28  ;;  %v4130_v29 = vld [vmem:[#allocation47_spill] sm:$0xff]  ;;  %v2802_v28 = vadd.f32 %v2506_v38, %v2136_v52 }
  0xa9   :  { %4127 = vst [vmem:[#allocation45_spill] sm:$0xff] %v2774_v34  ;;  %v2790_v40 = vadd.f32 %v2506_v38, %v4130_v29  ;;  %v4133_v34 = vld [vmem:[#allocation48_spill] sm:$0xff]  ;;  %v2810_v29 = vadd.f32 %v2506_v38, %v2146_v53 }
  0xaa   :  { %4129 = vst [vmem:[#allocation46_spill] sm:$0xff] %v2782_v35  ;;  %v2798_v41 = vadd.f32 %v2506_v38, %v4133_v34  ;;  %v4136_v35 = vld [vmem:[#allocation49_spill] sm:$0xff]  ;;  %v2818_v34 = vadd.f32 %v2506_v38, %v2156_v58 }
  0xab   :  { %4131 = vst [vmem:[#allocation47_spill] sm:$0xff] %v2790_v40  ;;  %v2806_v46 = vadd.f32 %v2506_v38, %v4136_v35  ;;  %v4139_v40 = vld [vmem:[#allocation50_spill] sm:$0xff]  ;;  %v2826_v35 = vadd.f32 %v2506_v38, %v2166_v59 }
  0xac   :  { %4132 = vst [vmem:[#allocation107_spill] sm:$0xff] %v2794_v23  ;;  %v2814_v47 = vadd.f32 %v2506_v38, %v4139_v40  ;;  %v2834_v40 = vadd.f32 %v2506_v38, %v2176_v57 }
  0xad   :  { %4134 = vst [vmem:[#allocation48_spill] sm:$0xff] %v2798_v41  ;;  %v4142_v41 = vld [vmem:[#allocation51_spill] sm:$0xff] }
  0xae   :  { %4135 = vst [vmem:[#allocation108_spill] sm:$0xff] %v2802_v28  ;;  %v2822_v52 = vadd.f32 %v2506_v38, %v4142_v41  ;;  %v2842_v41 = vadd.f32 %v2506_v38, %v2186_v56 }
  0xaf   :  { %4137 = vst [vmem:[#allocation49_spill] sm:$0xff] %v2806_v46  ;;  %v4144_v46 = vld [vmem:[#allocation52_spill] sm:$0xff] }
  0xb0   :  { %4138 = vst [vmem:[#allocation109_spill] sm:$0xff] %v2810_v29  ;;  %v2830_v53 = vadd.f32 %v2506_v38, %v4144_v46  ;;  %v2850_v46 = vadd.f32 %v2506_v38, %v2196_v63  ;;  %v4299_v37 = vld [vmem:[#allocation44_spill] sm:$0xff]  ;;  %v4300_v7 = vld [vmem:[#allocation45_spill] sm:$0xff] }
  0xb1   :  { %4140 = vst [vmem:[#allocation50_spill] sm:$0xff] %v2814_v47  ;;  %v4146_v47 = vld [vmem:[#allocation53_spill] sm:$0xff]  ;;  %v4301_v8 = vld [vmem:[#allocation46_spill] sm:$0xff] }
  0xb2   :  { %4141 = vst [vmem:[#allocation110_spill] sm:$0xff] %v2818_v34  ;;  %v2838_v58 = vadd.f32 %v2506_v38, %v4146_v47  ;;  %v2858_v47 = vadd.f32 %v2506_v38, %v2206_v54  ;;  %v4302_v9 = vld [vmem:[#allocation47_spill] sm:$0xff] }
  0xb3   :  { %4143 = vst [vmem:[#allocation51_spill] sm:$0xff] %v2822_v52  ;;  %v4148_v52 = vld [vmem:[#allocation54_spill] sm:$0xff] }
  0xb4   :  { %4145 = vst [vmem:[#allocation52_spill] sm:$0xff] %v2830_v53  ;;  %v2846_v59 = vadd.f32 %v2506_v38, %v4148_v52  ;;  %v4150_v53 = vld [vmem:[#allocation55_spill] sm:$0xff]  ;;  %v2866_v52 = vadd.f32 %v2506_v38, %v2216_v62 }
  0xb5   :  { %4147 = vst [vmem:[#allocation53_spill] sm:$0xff] %v2838_v58  ;;  %v2854_v57 = vadd.f32 %v2506_v38, %v4150_v53  ;;  %v4153_v58 = vld [vmem:[#allocation56_spill] sm:$0xff]  ;;  %v2874_v53 = vadd.f32 %v2506_v38, %v2226_v50 }
  0xb6   :  { %4149 = vst [vmem:[#allocation54_spill] sm:$0xff] %v2846_v59  ;;  %v2862_v56 = vadd.f32 %v2506_v38, %v4153_v58  ;;  %v4156_v59 = vld [vmem:[#allocation57_spill] sm:$0xff]  ;;  %v2882_v58 = vadd.f32 %v2506_v38, %v2236_v61 }
  0xb7   :  { %4151 = vst [vmem:[#allocation55_spill] sm:$0xff] %v2854_v57  ;;  %v2870_v63 = vadd.f32 %v2506_v38, %v4156_v59  ;;  %v4159_v57 = vld [vmem:[#allocation58_spill] sm:$0xff]  ;;  %v2890_v59 = vadd.f32 %v2506_v38, %v2246_v48 }
  0xb8   :  { %4152 = vst [vmem:[#allocation111_spill] sm:$0xff] %v2858_v47  ;;  %v2878_v54 = vadd.f32 %v2506_v38, %v4159_v57  ;;  %v2898_v57 = vadd.f32 %v2506_v38, %v2256_v60 }
  0xb9   :  { %4154 = vst [vmem:[#allocation56_spill] sm:$0xff] %v2862_v56  ;;  %v4162_v56 = vld [vmem:[#allocation59_spill] sm:$0xff] }
  0xba   :  { %4155 = vst [vmem:[#allocation112_spill] sm:$0xff] %v2866_v52  ;;  %v2886_v62 = vadd.f32 %v2506_v38, %v4162_v56  ;;  %v2906_v56 = vadd.f32 %v2506_v38, %v2266_v44 }
  0xbb   :  { %4157 = vst [vmem:[#allocation57_spill] sm:$0xff] %v2870_v63  ;;  %v4165_v63 = vld [vmem:[#allocation60_spill] sm:$0xff] }
  0xbc   :  { %4158 = vst [vmem:[#allocation113_spill] sm:$0xff] %v2874_v53  ;;  %v2894_v50 = vadd.f32 %v2506_v38, %v4165_v63  ;;  %v2914_v63 = vadd.f32 %v2506_v38, %v2276_v55  ;;  %v4307_v27 = vld [vmem:[#allocation52_spill] sm:$0xff]  ;;  %v4308_v23 = vld [vmem:[#allocation53_spill] sm:$0xff] }
  0xbd   :  { %4160 = vst [vmem:[#allocation58_spill] sm:$0xff] %v2878_v54  ;;  %v4168_v54 = vld [vmem:[#allocation61_spill] sm:$0xff]  ;;  %v4309_v28 = vld [vmem:[#allocation54_spill] sm:$0xff] }
  0xbe   :  { %4161 = vst [vmem:[#allocation114_spill] sm:$0xff] %v2882_v58  ;;  %v2902_v61 = vadd.f32 %v2506_v38, %v4168_v54 }
  0xbf   :  { %4163 = vst [vmem:[#allocation59_spill] sm:$0xff] %v2886_v62  ;;  %v4171_v62 = vld [vmem:[#allocation62_spill] sm:$0xff] }
  0xc0   :  { %4164 = vst [vmem:[#allocation115_spill] sm:$0xff] %v2890_v59  ;;  %v2910_v48 = vadd.f32 %v2506_v38, %v4171_v62 }
  0xc1   :  { %4166 = vst [vmem:[#allocation60_spill] sm:$0xff] %v2894_v50  ;;  %v4174_v50 = vld [vmem:[#allocation63_spill] sm:$0xff] }
  0xc2   :  { %4167 = vst [vmem:[#allocation116_spill] sm:$0xff] %v2898_v57  ;;  %v2918_v60 = vadd.f32 %v2506_v38, %v4174_v50  ;;  %v4176_v57 = vld [vmem:[#allocation64_spill] sm:$0xff] }
  0xc3   :  { %4169 = vst [vmem:[#allocation61_spill] sm:$0xff] %v2902_v61  ;;  %v2922_v54 = vadd.f32 %v2506_v38, %v4176_v57  ;;  %v4178_v61 = vld [vmem:[#allocation65_spill] sm:$0xff] }
  0xc4   :  { %4170 = vst [vmem:[#allocation117_spill] sm:$0xff] %v2906_v56  ;;  %v2926_v44 = vadd.f32 %v2506_v38, %v4178_v61  ;;  %v4180_v56 = vld [vmem:[#allocation66_spill] sm:$0xff] }
  0xc5   :  { %4172 = vst [vmem:[#allocation62_spill] sm:$0xff] %v2910_v48  ;;  %v2930_v62 = vadd.f32 %v2506_v38, %v4180_v56  ;;  %v4182_v48 = vld [vmem:[#allocation67_spill] sm:$0xff] }
  0xc6   :  { %4173 = vst [vmem:[#allocation118_spill] sm:$0xff] %v2914_v63  ;;  %v2934_v55 = vadd.f32 %v2506_v38, %v4182_v48  ;;  %v4184_v63 = vld [vmem:[#allocation68_spill] sm:$0xff] }
  0xc7   :  { %4175 = vst [vmem:[#allocation63_spill] sm:$0xff] %v2918_v60  ;;  %v2938_v50 = vadd.f32 %v2506_v38, %v4184_v63  ;;  %v4186_v60 = vld [vmem:[#allocation69_spill] sm:$0xff] }
  0xc8   :  { %4177 = vst [vmem:[#allocation64_spill] sm:$0xff] %v2922_v54  ;;  %v2942_v57 = vadd.f32 %v2506_v38, %v4186_v60  ;;  %v4188_v54 = vld [vmem:[#allocation2_spill] sm:$0xff] }
  0xc9   :  { %4179 = vst [vmem:[#allocation65_spill] sm:$0xff] %v2926_v44  ;;  %v2946_v61 = vadd.f32 %v2506_v38, %v4188_v54  ;;  %v4190_v44 = vld [vmem:[#allocation70_spill] sm:$0xff] }
  0xca   :  { %4181 = vst [vmem:[#allocation66_spill] sm:$0xff] %v2930_v62  ;;  %v2950_v56 = vadd.f32 %v2506_v38, %v4190_v44  ;;  %v4192_v62 = vld [vmem:[#allocation3_spill] sm:$0xff] }
  0xcb   :  { %4183 = vst [vmem:[#allocation67_spill] sm:$0xff] %v2934_v55  ;;  %v2954_v48 = vadd.f32 %v2506_v38, %v4192_v62  ;;  %v4194_v55 = vld [vmem:[#allocation71_spill] sm:$0xff] }
  0xcc   :  { %4185 = vst [vmem:[#allocation68_spill] sm:$0xff] %v2938_v50  ;;  %v2958_v63 = vadd.f32 %v2506_v38, %v4194_v55  ;;  %v4196_v50 = vld [vmem:[#allocation4_spill] sm:$0xff] }
  0xcd   :  { %4187 = vst [vmem:[#allocation69_spill] sm:$0xff] %v2942_v57  ;;  %v2962_v60 = vadd.f32 %v2506_v38, %v4196_v50  ;;  %v4198_v57 = vld [vmem:[#allocation72_spill] sm:$0xff] }
  0xce   :  { %4189 = vst [vmem:[#allocation2_spill] sm:$0xff] %v2946_v61  ;;  %v2966_v54 = vadd.f32 %v2506_v38, %v4198_v57  ;;  %v4200_v61 = vld [vmem:[#allocation5_spill] sm:$0xff] }
  0xcf   :  { %4191 = vst [vmem:[#allocation70_spill] sm:$0xff] %v2950_v56  ;;  %v2970_v44 = vadd.f32 %v2506_v38, %v4200_v61  ;;  %v4202_v56 = vld [vmem:[#allocation73_spill] sm:$0xff] }
  0xd0   :  { %4193 = vst [vmem:[#allocation3_spill] sm:$0xff] %v2954_v48  ;;  %v2974_v62 = vadd.f32 %v2506_v38, %v4202_v56  ;;  %v4204_v48 = vld [vmem:[#allocation6_spill] sm:$0xff] }
  0xd1   :  { %4195 = vst [vmem:[#allocation71_spill] sm:$0xff] %v2958_v63  ;;  %v2978_v55 = vadd.f32 %v2506_v38, %v4204_v48  ;;  %v4206_v63 = vld [vmem:[#allocation74_spill] sm:$0xff] }
  0xd2   :  { %4197 = vst [vmem:[#allocation4_spill] sm:$0xff] %v2962_v60  ;;  %v2982_v50 = vadd.f32 %v2506_v38, %v4206_v63  ;;  %v4208_v60 = vld [vmem:[#allocation7_spill] sm:$0xff] }
  0xd3   :  { %4199 = vst [vmem:[#allocation72_spill] sm:$0xff] %v2966_v54  ;;  %v2986_v57 = vadd.f32 %v2506_v38, %v4208_v60  ;;  %v4210_v54 = vld [vmem:[#allocation75_spill] sm:$0xff] }
  0xd4   :  { %4201 = vst [vmem:[#allocation5_spill] sm:$0xff] %v2970_v44  ;;  %v2990_v61 = vadd.f32 %v2506_v38, %v4210_v54  ;;  %v4212_v44 = vld [vmem:[#allocation8_spill] sm:$0xff] }
  0xd5   :  { %4203 = vst [vmem:[#allocation73_spill] sm:$0xff] %v2974_v62  ;;  %v2994_v56 = vadd.f32 %v2506_v38, %v4212_v44  ;;  %v4214_v62 = vld [vmem:[#allocation76_spill] sm:$0xff] }
  0xd6   :  { %4205 = vst [vmem:[#allocation6_spill] sm:$0xff] %v2978_v55  ;;  %v2998_v48 = vadd.f32 %v2506_v38, %v4214_v62  ;;  %v4216_v55 = vld [vmem:[#allocation9_spill] sm:$0xff] }
  0xd7   :  { %4207 = vst [vmem:[#allocation74_spill] sm:$0xff] %v2982_v50  ;;  %v3002_v63 = vadd.f32 %v2506_v38, %v4216_v55  ;;  %v4218_v50 = vld [vmem:[#allocation77_spill] sm:$0xff] }
  0xd8   :  { %4209 = vst [vmem:[#allocation7_spill] sm:$0xff] %v2986_v57  ;;  %v3006_v60 = vadd.f32 %v2506_v38, %v4218_v50  ;;  %v4220_v57 = vld [vmem:[#allocation10_spill] sm:$0xff] }
  0xd9   :  { %4211 = vst [vmem:[#allocation75_spill] sm:$0xff] %v2990_v61  ;;  %v3010_v54 = vadd.f32 %v2506_v38, %v4220_v57  ;;  %v4222_v61 = vld [vmem:[#allocation78_spill] sm:$0xff] }
  0xda   :  { %4213 = vst [vmem:[#allocation8_spill] sm:$0xff] %v2994_v56  ;;  %v3014_v44 = vadd.f32 %v2506_v38, %v4222_v61  ;;  %v4224_v56 = vld [vmem:[#allocation11_spill] sm:$0xff] }
  0xdb   :  { %4215 = vst [vmem:[#allocation76_spill] sm:$0xff] %v2998_v48  ;;  %v3018_v62 = vadd.f32 %v2506_v38, %v4224_v56  ;;  %v4226_v48 = vld [vmem:[#allocation79_spill] sm:$0xff] }
  0xdc   :  { %4217 = vst [vmem:[#allocation9_spill] sm:$0xff] %v3002_v63  ;;  %v3022_v55 = vadd.f32 %v2506_v38, %v4226_v48  ;;  %v4228_v63 = vld [vmem:[#allocation12_spill] sm:$0xff] }
  0xdd   :  { %4219 = vst [vmem:[#allocation77_spill] sm:$0xff] %v3006_v60  ;;  %v3026_v50 = vadd.f32 %v2506_v38, %v4228_v63  ;;  %v4230_v60 = vld [vmem:[#allocation80_spill] sm:$0xff] }
  0xde   :  { %4221 = vst [vmem:[#allocation10_spill] sm:$0xff] %v3010_v54  ;;  %v3030_v57 = vadd.f32 %v2506_v38, %v4230_v60  ;;  %v4232_v54 = vld [vmem:[#allocation13_spill] sm:$0xff] }
  0xdf   :  { %4223 = vst [vmem:[#allocation78_spill] sm:$0xff] %v3014_v44  ;;  %v3034_v61 = vadd.f32 %v2506_v38, %v4232_v54  ;;  %v4234_v44 = vld [vmem:[#allocation81_spill] sm:$0xff] }
  0xe0   :  { %4225 = vst [vmem:[#allocation11_spill] sm:$0xff] %v3018_v62  ;;  %v3038_v56 = vadd.f32 %v2506_v38, %v4234_v44  ;;  %v4236_v62 = vld [vmem:[#allocation14_spill] sm:$0xff] }
  0xe1   :  { %4227 = vst [vmem:[#allocation79_spill] sm:$0xff] %v3022_v55  ;;  %v3042_v48 = vadd.f32 %v2506_v38, %v4236_v62  ;;  %v4238_v55 = vld [vmem:[#allocation82_spill] sm:$0xff] }
  0xe2   :  { %4229 = vst [vmem:[#allocation12_spill] sm:$0xff] %v3026_v50  ;;  %v3046_v63 = vadd.f32 %v2506_v38, %v4238_v55  ;;  %v4240_v50 = vld [vmem:[#allocation15_spill] sm:$0xff] }
  0xe3   :  { %4231 = vst [vmem:[#allocation80_spill] sm:$0xff] %v3030_v57  ;;  %v3050_v60 = vadd.f32 %v2506_v38, %v4240_v50  ;;  %v4242_v57 = vld [vmem:[#allocation83_spill] sm:$0xff] }
  0xe4   :  { %4233 = vst [vmem:[#allocation13_spill] sm:$0xff] %v3034_v61  ;;  %v3054_v54 = vadd.f32 %v2506_v38, %v4242_v57  ;;  %v4244_v61 = vld [vmem:[#allocation16_spill] sm:$0xff]  ;;  %v3074_v57 = vadd.f32 %v2506_v38, %v2476_v36 }
  0xe5   :  { %4235 = vst [vmem:[#allocation81_spill] sm:$0xff] %v3038_v56  ;;  %v3058_v44 = vadd.f32 %v2506_v38, %v4244_v61  ;;  %v4246_v56 = vld [vmem:[#allocation84_spill] sm:$0xff]  ;;  %v3078_v61 = vadd.f32 %v2506_v38, %v2481_v26  ;;  %v3098_v26 = vadd.f32 %v2506_v38, %v2511_v32 }
  0xe6   :  { %4237 = vst [vmem:[#allocation14_spill] sm:$0xff] %v3042_v48  ;;  %v3062_v62 = vadd.f32 %v2506_v38, %v4246_v56  ;;  %v4248_v48 = vld [vmem:[#allocation17_spill] sm:$0xff] }
  0xe7   :  { %4239 = vst [vmem:[#allocation82_spill] sm:$0xff] %v3046_v63  ;;  %v3066_v55 = vadd.f32 %v2506_v38, %v4248_v48  ;;  %v4250_v63 = vld [vmem:[#allocation85_spill] sm:$0xff]  ;;  %v4346_v10 = vld [vmem:[#allocation11_spill] sm:$0xff] }
  0xe8   :  { %4241 = vst [vmem:[#allocation15_spill] sm:$0xff] %v3050_v60  ;;  %v3070_v50 = vadd.f32 %v2506_v38, %v4250_v63  ;;  %v4347_v59 = vld [vmem:[#allocation79_spill] sm:$0xff] }
  0xe9   :  { %4243 = vst [vmem:[#allocation83_spill] sm:$0xff] %v3054_v54 }
  0xea   :  { %4245 = vst [vmem:[#allocation16_spill] sm:$0xff] %v3058_v44  ;;  %v4254_v44 = vld [vmem:[#allocation18_spill] sm:$0xff]  ;;  %v4349_v29 = vld [vmem:[#allocation80_spill] sm:$0xff] }
  0xeb   :  { %4247 = vst [vmem:[#allocation84_spill] sm:$0xff] %v3062_v62  ;;  %v3082_v56 = vadd.f32 %v2506_v38, %v4254_v44  ;;  %v4255_v62 = vld [vmem:[#allocation19_spill] sm:$0xff] }
  0xec   :  { %4249 = vst [vmem:[#allocation17_spill] sm:$0xff] %v3066_v55  ;;  %v3086_v48 = vadd.f32 %v2506_v38, %v4255_v62  ;;  %v4257_v55 = vld [vmem:[#allocation20_spill] sm:$0xff]  ;;  %v3106_v62 = vadd.f32 %v2506_v38, %v2521_v43  ;;  %v4351_v34 = vld [vmem:[#allocation81_spill] sm:$0xff] }
  0xed   :  { %4251 = vst [vmem:[#allocation85_spill] sm:$0xff] %v3070_v50  ;;  %v3090_v63 = vadd.f32 %v2506_v38, %v4257_v55  ;;  %v4259_v50 = vld [vmem:[#allocation86_spill] sm:$0xff] }
  0xee   :  { %4252 = vst [vmem:[#allocation119_spill] sm:$0xff] %v3074_v57  ;;  %v3094_v36 = vadd.f32 %v2506_v38, %v4259_v50  ;;  %v3114_v50 = vadd.f32 %v2506_v38, %v2531_v30  ;;  %v3134_v30 = vadd.f32 %v2506_v38, %v2556_v4  ;;  %v4277_v4 = vld [vmem:[#allocation22_spill] sm:$0xff] }
  0xef   :  { %4253 = vst [vmem:[#allocation120_spill] sm:$0xff] %v3078_v61  ;;  %v4261_v61 = vld [vmem:[#allocation87_spill] sm:$0xff]  ;;  %v4353_v45 = vld [vmem:[#allocation82_spill] sm:$0xff] }
  0xf0   :  { %4256 = vst [vmem:[#allocation18_spill] sm:$0xff] %v3086_v48  ;;  %v3102_v44 = vadd.f32 %v2506_v38, %v4261_v61  ;;  %v4264_v48 = vld [vmem:[#allocation88_spill] sm:$0xff]  ;;  %v3122_v61 = vadd.f32 %v2506_v38, %v2541_v39  ;;  %v3142_v39 = vadd.f32 %v2506_v38, %v2566_v3  ;;  %v4363_v14 = vmov %v3114_v50 }
  0xf1   :  { %4258 = vst [vmem:[#allocation19_spill] sm:$0xff] %v3090_v63  ;;  %v3110_v55 = vadd.f32 %v2506_v38, %v4264_v48  ;;  %v3130_v48 = vadd.f32 %v2506_v38, %v2551_v42  ;;  %v4276_v42 = vld [vmem:[#allocation21_spill] sm:$0xff]  ;;  %v4368_v63 = vmov %v3134_v30  ;;  %v4375_v3 = vmax.f32 %v2642_v33, 0.0 }
  0xf2   :  { %4260 = vst [vmem:[#allocation20_spill] sm:$0xff] %v3094_v36  ;;  %v4267_v36 = vld [vmem:[#allocation89_spill] sm:$0xff]  ;;  %v4365_v47 = vmov %v3122_v61  ;;  %v4385_v33 = vmax.f32 %v2658_v19, 0.0 }
  0xf3   :  { %4262 = vst [vmem:[#allocation86_spill] sm:$0xff] %v3102_v44  ;;  %v3118_v32 = vadd.f32 %v2506_v38, %v4267_v36  ;;  %v4270_v44 = vld [vmem:[#allocation90_spill] sm:$0xff]  ;;  %v3138_v36 = vadd.f32 %v2506_v38, %v2561_v49  ;;  %v4278_v49 = vld [vmem:[#allocation23_spill] sm:$0xff] }
  0xf4   :  { %4263 = vst [vmem:[#allocation87_spill] sm:$0xff] %v3106_v62  ;;  %v3126_v43 = vadd.f32 %v2506_v38, %v4270_v44  ;;  %v4291_v38 = vld [vmem:[#allocation36_spill] sm:$0xff]  ;;  %v4371_v62 = vld [vmem:[#allocation91_spill] sm:$0xff]  ;;  %v4378_v44 = vmax.f32 %v4284_v17, 0.0  ;;  %v4388_v17 = vmax.f32 %v4286_v12, 0.0  ;;  %v4395_v12 = vmax.f32 %v4293_v31, 0.0 }
  0xf5   :  { %4265 = vst [vmem:[#allocation88_spill] sm:$0xff] %v3110_v55  ;;  %v4364_v57 = vmov %v3118_v32  ;;  %v4369_v60 = vmov %v3138_v36  ;;  %v4402_v31 = vmax.f32 %v2778_v21, 0.0  ;;  %v4409_v21 = vmax.f32 %v4308_v23, 0.0  ;;  %v4419_v23 = vld [vmem:[#allocation116_spill] sm:$0xff] }
  0xf6   :  { %4266 = vst [vmem:[#allocation121_spill] sm:$0xff] %v3114_v50  ;;  %v4373_v50 = vmax.f32 %v4283_v11, 0.0  ;;  %v4383_v11 = vmax.f32 %v4285_v13, 0.0  ;;  %v4392_v13 = vmax.f32 %v2706_v0, 0.0  ;;  %v4399_v0 = vmax.f32 %v4299_v37, 0.0 }
  0xf7   :  { %4268 = vst [vmem:[#allocation89_spill] sm:$0xff] %v3118_v32  ;;  %v4359_v52 = vld [vmem:[#allocation18_spill] sm:$0xff]  ;;  %v4370_v32 = vmax.f32 %v2634_v20, 0.0  ;;  %v4380_v20 = vmax.f32 %v2650_v25, 0.0  ;;  %v4390_v25 = vmax.f32 %v2698_v24, 0.0  ;;  %v4397_v24 = vmax.f32 %v4294_v6, 0.0 }
  0xf8   :  { %4269 = vst [vmem:[#allocation122_spill] sm:$0xff] %v3122_v61  ;;  %v4377_v61 = vmax.f32 %v4376_v51, 0.0  ;;  %v4404_v6 = vmax.f32 %v2786_v22, 0.0  ;;  %v4406_v37 = vmax.f32 %v2826_v35, 0.0  ;;  %v4411_v22 = vmax.f32 %v4309_v28, 0.0  ;;  %v4413_v35 = vld [vmem:[#allocation55_spill] sm:$0xff] }
  0xf9   :  { %4271 = vst [vmem:[#allocation90_spill] sm:$0xff] %v3126_v43  ;;  %v4379_v43 = vmax.f32 %v4276_v42, 0.0  ;;  %v4423_v28 = vld [vmem:[#allocation117_spill] sm:$0xff] }
  0xfa   :  { %4272 = vst [vmem:[#allocation123_spill] sm:$0xff] %v3130_v48  ;;  %v4361_v58 = vld [vmem:[#allocation86_spill] sm:$0xff]  ;;  %v758_v54 = vmax.f32 %v4377_v61, %v4375_v3  ;;  %v4393_v3 = vmax.f32 %v4292_v5, 0.0  ;;  %v4400_v5 = vmax.f32 %v2770_v16, 0.0  ;;  %v4407_v16 = vmax.f32 %v4307_v27, 0.0  ;;  %v4415_v27 = vld [vmem:[#allocation115_spill] sm:$0xff] }
  0xfb   :  { %4273 = vst [vmem:[#allocation124_spill] sm:$0xff] %v3134_v30  ;;  %v4372_v30 = vmax.f32 %v4371_v62, 0.0  ;;  %v766_v48 = vmax.f32 %v4379_v43, %v4378_v44 }
  0xfc   :  { %4274 = vst [vmem:[#allocation125_spill] sm:$0xff] %v3138_v36  ;;  %v4374_v36 = vmax.f32 %v2574_v18, 0.0  ;;  %v4384_v18 = vmax.f32 %v4277_v4, 0.0  ;;  %v759_v4 = vmax.f32 %v758_v54, %v4392_v13 }
  0xfd   :  { %4275 = vst [vmem:[#allocation126_spill] sm:$0xff] %v3142_v39  ;;  %v742_v53 = vmax.f32 %v4372_v30, %v4370_v32  ;;  %v4381_v39 = vld [vmem:[#allocation93_spill] sm:$0xff]  ;;  %v4386_v30 = vld [vmem:[#allocation94_spill] sm:$0xff]  ;;  %v767_v19 = vmax.f32 %v766_v48, %v4393_v3 }
  0xfe   :  { %v750_v55 = vmax.f32 %v4374_v36, %v4373_v50  ;;  %v4382_v62 = vmax.f32 %v4381_v39, 0.0  ;;  %v782_v50 = vmax.f32 %v4384_v18, %v4383_v11  ;;  %v4387_v51 = vmax.f32 %v4386_v30, 0.0 }
  0xff   :  { %v4389_v36 = vmax.f32 %v4278_v49, 0.0  ;;  %v743_v44 = vmax.f32 %v742_v53, %v4390_v25  ;;  %v4391_v39 = vmax.f32 %v4291_v38, 0.0  ;;  %v4396_v49 = vmax.f32 %v2722_v2, 0.0 }
 0x100   :  { %v774_v32 = vmax.f32 %v4382_v62, %v4380_v20  ;;  %v790_v61 = vmax.f32 %v4387_v51, %v4385_v33  ;;  %v4394_v20 = vmax.f32 %v2714_v1, 0.0  ;;  %v783_v11 = vmax.f32 %v782_v50, %v4395_v12 }
 0x101   :  { %v798_v43 = vmax.f32 %v4389_v36, %v4388_v17  ;;  %v751_v42 = vmax.f32 %v750_v55, %v4391_v39  ;;  %v4398_v55 = vmax.f32 %v2762_v15, 0.0  ;;  %v760_v48 = vmax.f32 %v759_v4, %v4400_v5  ;;  %v4429_v5 = vld [vmem:[#allocation63_spill] sm:$0xff] }
 0x102   :  { %v775_v62 = vmax.f32 %v774_v32, %v4394_v20  ;;  %v791_v18 = vmax.f32 %v790_v61, %v4396_v49  ;;  %v4401_v1 = vmax.f32 %v4300_v7, 0.0  ;;  %v4403_v2 = vmax.f32 %v4301_v8, 0.0 }
 0x103   :  { %v799_v53 = vmax.f32 %v798_v43, %v4397_v24  ;;  %v744_v38 = vmax.f32 %v743_v44, %v4398_v55  ;;  %v752_v54 = vmax.f32 %v751_v42, %v4399_v0  ;;  %v4405_v15 = vmax.f32 %v4302_v9, 0.0 }
 0x104   :  { %v768_v32 = vmax.f32 %v767_v19, %v4401_v1  ;;  %v776_v50 = vmax.f32 %v775_v62, %v4402_v31  ;;  %v784_v33 = vmax.f32 %v783_v11, %v4403_v2  ;;  %v792_v30 = vmax.f32 %v791_v18, %v4404_v6  ;;  %v4433_v2 = vld [vmem:[#allocation71_spill] sm:$0xff] }
 0x105   :  { %v800_v51 = vmax.f32 %v799_v53, %v4405_v15  ;;  %v745_v61 = vmax.f32 %v744_v38, %v4406_v37  ;;  %v753_v17 = vmax.f32 %v752_v54, %v4407_v16  ;;  %v4408_v7 = vmax.f32 %v2834_v40, 0.0  ;;  %v4417_v40 = vld [vmem:[#allocation60_spill] sm:$0xff]  ;;  %v4427_v38 = vld [vmem:[#allocation118_spill] sm:$0xff] }
 0x106   :  { %v769_v43 = vmax.f32 %v768_v32, %v4409_v21  ;;  %v4410_v8 = vmax.f32 %v2842_v41, 0.0  ;;  %v785_v44 = vmax.f32 %v784_v33, %v4411_v22  ;;  %v4412_v9 = vmax.f32 %v2850_v46, 0.0  ;;  %v4421_v41 = vld [vmem:[#allocation61_spill] sm:$0xff]  ;;  %v4425_v46 = vld [vmem:[#allocation62_spill] sm:$0xff]  ;;  %v4431_v32 = vld [vmem:[#allocation3_spill] sm:$0xff] }
 0x107   :  { %v761_v36 = vmax.f32 %v760_v48, %v4408_v7  ;;  %v4414_v42 = vmax.f32 %v4413_v35, 0.0  ;;  %v4416_v4 = vmax.f32 %v4415_v27, 0.0  ;;  %v4418_v19 = vmax.f32 %v4417_v40, 0.0  ;;  %v4437_v37 = vld [vmem:[#allocation72_spill] sm:$0xff]  ;;  %v4441_v21 = vld [vmem:[#allocation73_spill] sm:$0xff] }
 0x108   :  { %v777_v25 = vmax.f32 %v776_v50, %v4410_v8  ;;  %v793_v39 = vmax.f32 %v792_v30, %v4412_v9  ;;  %v4420_v62 = vmax.f32 %v4419_v23, 0.0  ;;  %v4422_v11 = vmax.f32 %v4421_v41, 0.0  ;;  %v4435_v30 = vld [vmem:[#allocation4_spill] sm:$0xff]  ;;  %v4445_v9 = vld [vmem:[#allocation74_spill] sm:$0xff] }
 0x109   :  { %v801_v13 = vmax.f32 %v800_v51, %v4414_v42  ;;  %v746_v3 = vmax.f32 %v745_v61, %v4416_v4  ;;  %v754_v20 = vmax.f32 %v753_v17, %v4418_v19  ;;  %v4424_v18 = vmax.f32 %v4423_v28, 0.0  ;;  %v4439_v17 = vld [vmem:[#allocation5_spill] sm:$0xff]  ;;  %v4455_v28 = vld [vmem:[#allocation14_spill] sm:$0xff] }
 0x10a   :  { %v762_v12 = vmax.f32 %v761_v36, %v4420_v62  ;;  %v770_v49 = vmax.f32 %v769_v43, %v4422_v11  ;;  %v4426_v53 = vmax.f32 %v4425_v46, 0.0  ;;  %v4428_v0 = vmax.f32 %v4427_v38, 0.0  ;;  %v4452_v62 = vld [vmem:[#allocation13_spill] sm:$0xff]  ;;  %v4460_v38 = vld [vmem:[#allocation19_spill] sm:$0xff] }
 0x10b   :  { %v778_v24 = vmax.f32 %v777_v25, %v4424_v18  ;;  %v4430_v48 = vmax.f32 %v4429_v5, 0.0  ;;  %v4432_v31 = vmax.f32 %v4431_v32, 0.0  ;;  %v4434_v33 = vmax.f32 %v4433_v2, 0.0  ;;  %v4443_v25 = vld [vmem:[#allocation6_spill] sm:$0xff]  ;;  %v4468_v2 = vld [vmem:[#allocation88_spill] sm:$0xff] }
 0x10c   :  { %v786_v55 = vmax.f32 %v785_v44, %v4426_v53  ;;  %v794_v54 = vmax.f32 %v793_v39, %v4428_v0  ;;  %v4436_v15 = vmax.f32 %v4435_v30, 0.0  ;;  %v4438_v61 = vmax.f32 %v4437_v37, 0.0  ;;  %v4470_v30 = vld [vmem:[#allocation99_spill] sm:$0xff] }
 0x10d   :  { %v802_v1 = vmax.f32 %v801_v13, %v4430_v48  ;;  %v747_v50 = vmax.f32 %v746_v3, %v4432_v31  ;;  %v755_v6 = vmax.f32 %v754_v20, %v4434_v33  ;;  %v4440_v7 = vmax.f32 %v4439_v17, 0.0  ;;  %v4449_v3 = vld [vmem:[#allocation12_spill] sm:$0xff]  ;;  %v4466_v31 = vld [vmem:[#allocation87_spill] sm:$0xff] }
 0x10e   :  { %v763_v51 = vmax.f32 %v762_v12, %v4436_v15  ;;  %v771_v16 = vmax.f32 %v770_v49, %v4438_v61  ;;  %v4442_v43 = vmax.f32 %v4441_v21, 0.0  ;;  %v4444_v22 = vmax.f32 %v4443_v25, 0.0  ;;  %v4476_v17 = vld [vmem:[#allocation24_spill] sm:$0xff] }
 0x10f   :  { %v779_v36 = vmax.f32 %v778_v24, %v4440_v7  ;;  %v4446_v39 = vmax.f32 %v4445_v9, 0.0  ;;  %v4447_v42 = vmax.f32 %v4346_v10, 0.0  ;;  %v4448_v27 = vmax.f32 %v4347_v59, 0.0  ;;  %v4484_v9 = vld [vmem:[#allocation25_spill] sm:$0xff] }
 0x110   :  { %v787_v8 = vmax.f32 %v786_v55, %v4442_v43  ;;  %v795_v44 = vmax.f32 %v794_v54, %v4444_v22  ;;  %v4450_v40 = vmax.f32 %v4449_v3, 0.0  ;;  %v4451_v20 = vmax.f32 %v4349_v29, 0.0  ;;  %v4480_v43 = vld [vmem:[#allocation96_spill] sm:$0xff]  ;;  %v4482_v22 = vld [vmem:[#allocation33_spill] sm:$0xff] }
 0x111   :  { %v803_v35 = vmax.f32 %v802_v1, %v4446_v39  ;;  %v748_v13 = vmax.f32 %v747_v50, %v4447_v42  ;;  %v756_v4 = vmax.f32 %v755_v6, %v4448_v27  ;;  %v4453_v12 = vmax.f32 %v4452_v62, 0.0  ;;  %v4486_v42 = vld [vmem:[#allocation101_spill] sm:$0xff] }
 0x112   :  { %v764_v19 = vmax.f32 %v763_v51, %v4450_v40  ;;  %v772_v23 = vmax.f32 %v771_v16, %v4451_v20  ;;  %v4454_v11 = vmax.f32 %v4351_v34, 0.0  ;;  %v4456_v18 = vmax.f32 %v4455_v28, 0.0  ;;  %v4462_v34 = vld [vmem:[#allocation20_spill] sm:$0xff]  ;;  %v4472_v51 = vld [vmem:[#allocation95_spill] sm:$0xff]  ;;  %v4488_v27 = vld [vmem:[#allocation97_spill] sm:$0xff] }
 0x113   :  { %v780_v41 = vmax.f32 %v779_v36, %v4453_v12  ;;  %v4457_v10 = vmax.f32 %v4353_v45, 0.0  ;;  %v4458_v59 = vmax.f32 %v3082_v56, 0.0  ;;  %v4459_v55 = vmax.f32 %v4359_v52, 0.0  ;;  %v4478_v36 = vld [vmem:[#allocation100_spill] sm:$0xff]  ;;  %v4490_v40 = vld [vmem:[#allocation34_spill] sm:$0xff] }
 0x114   :  { %v788_v49 = vmax.f32 %v787_v8, %v4454_v11  ;;  %v796_v24 = vmax.f32 %v795_v44, %v4456_v18  ;;  %v4461_v0 = vmax.f32 %v4460_v38, 0.0  ;;  %v4463_v5 = vmax.f32 %v4462_v34, 0.0  ;;  %v4492_v20 = vld [vmem:[#allocation26_spill] sm:$0xff]  ;;  %v4498_v18 = vld [vmem:[#allocation35_spill] sm:$0xff]  ;;  %v4504_v34 = vld [vmem:[#allocation40_spill] sm:$0xff] }
 0x115   :  { %v804_v46 = vmax.f32 %v803_v35, %v4457_v10  ;;  %v3418_v53 = vmax.f32 %v748_v13, %v4458_v59  ;;  %v3422_v29 = vmax.f32 %v756_v4, %v4459_v55  ;;  %v4464_v1 = vmax.f32 %v3098_v26, 0.0  ;;  %v4474_v26 = vld [vmem:[#allocation32_spill] sm:$0xff]  ;;  %v4494_v12 = vld [vmem:[#allocation102_spill] sm:$0xff]  ;;  %v4500_v10 = vld [vmem:[#allocation27_spill] sm:$0xff] }
 0x116   :  { %v3426_v54 = vmax.f32 %v764_v19, %v4461_v0  ;;  %v3430_v48 = vmax.f32 %v772_v23, %v4463_v5  ;;  %v4465_v56 = vmax.f32 %v4361_v58, 0.0  ;;  %v4467_v52 = vmax.f32 %v4466_v31, 0.0  ;;  %v4496_v11 = vld [vmem:[#allocation98_spill] sm:$0xff]  ;;  %v4502_v55 = vld [vmem:[#allocation103_spill] sm:$0xff] }
 0x117   :  { %v3434_v45 = vmax.f32 %v780_v41, %v4464_v1  ;;  %v4469_v33 = vmax.f32 %v4468_v2, 0.0  ;;  %v4471_v15 = vmax.f32 %v4470_v30, 0.0  ;;  %v4473_v37 = vmax.f32 %v4472_v51, 0.0  ;;  %v4508_v2 = vld [vmem:[#allocation41_spill] sm:$0xff] }
 0x118   :  { %v3438_v32 = vmax.f32 %v788_v49, %v4465_v56  ;;  %v3442_v50 = vmax.f32 %v796_v24, %v4467_v52  ;;  %v4475_v16 = vmax.f32 %v4474_v26, 0.0  ;;  %v4477_v7 = vmax.f32 %v4476_v17, 0.0  ;;  %v4506_v56 = vld [vmem:[#allocation104_spill] sm:$0xff]  ;;  %v4512_v26 = vld [vmem:[#allocation42_spill] sm:$0xff] }
 0x119   :  { %v3446_v6 = vmax.f32 %v804_v46, %v4469_v33  ;;  %v806_v61 = vmax.f32 %v4473_v37, %v4471_v15  ;;  %v4479_v21 = vmax.f32 %v4478_v36, 0.0  ;;  %v4481_v8 = vmax.f32 %v4480_v43, 0.0  ;;  %v4510_v15 = vld [vmem:[#allocation105_spill] sm:$0xff]  ;;  %v4516_v43 = vld [vmem:[#allocation43_spill] sm:$0xff] }
 0x11a   :  { %v814_v58 = vmax.f32 %v4477_v7, %v4475_v16  ;;  %v4483_v44 = vmax.f32 %v4482_v22, 0.0  ;;  %v4485_v39 = vmax.f32 %v4484_v9, 0.0  ;;  %v4487_v13 = vmax.f32 %v4486_v42, 0.0  ;;  %v4514_v7 = vld [vmem:[#allocation106_spill] sm:$0xff]  ;;  %v4518_v22 = vld [vmem:[#allocation107_spill] sm:$0xff]  ;;  %v4520_v9 = vld [vmem:[#allocation48_spill] sm:$0xff] }
 0x11b   :  { %v822_v25 = vmax.f32 %v4481_v8, %v4479_v21  ;;  %v4489_v4 = vmax.f32 %v4488_v27, 0.0  ;;  %v4491_v19 = vmax.f32 %v4490_v40, 0.0  ;;  %v4493_v23 = vmax.f32 %v4492_v20, 0.0  ;;  %v4522_v42 = vld [vmem:[#allocation108_spill] sm:$0xff]  ;;  %v4524_v27 = vld [vmem:[#allocation49_spill] sm:$0xff] }
 0x11c   :  { %v830_v35 = vmax.f32 %v4485_v39, %v4483_v44  ;;  %v4495_v41 = vmax.f32 %v4494_v12, 0.0  ;;  %v4497_v49 = vmax.f32 %v4496_v11, 0.0  ;;  %v4499_v24 = vmax.f32 %v4498_v18, 0.0  ;;  %v4526_v40 = vld [vmem:[#allocation109_spill] sm:$0xff] }
 0x11d   :  { %v838_v3 = vmax.f32 %v4489_v4, %v4487_v13  ;;  %v846_v62 = vmax.f32 %v4493_v23, %v4491_v19  ;;  %v4501_v46 = vmax.f32 %v4500_v10, 0.0  ;;  %v4503_v38 = vmax.f32 %v4502_v55, 0.0  ;;  %v4528_v23 = vld [vmem:[#allocation50_spill] sm:$0xff]  ;;  %v4534_v10 = vld [vmem:[#allocation111_spill] sm:$0xff]  ;;  %v4536_v55 = vld [vmem:[#allocation56_spill] sm:$0xff] }
 0x11e   :  { %v854_v28 = vmax.f32 %v4497_v49, %v4495_v41  ;;  %v4505_v5 = vmax.f32 %v4504_v34, 0.0  ;;  %v4507_v31 = vmax.f32 %v4506_v56, 0.0  ;;  %v4509_v33 = vmax.f32 %v4508_v2, 0.0  ;;  %v4530_v41 = vld [vmem:[#allocation110_spill] sm:$0xff]  ;;  %v4538_v34 = vld [vmem:[#allocation112_spill] sm:$0xff]  ;;  %v4540_v56 = vld [vmem:[#allocation57_spill] sm:$0xff] }
 0x11f   :  { %v862_v59 = vmax.f32 %v4501_v46, %v4499_v24  ;;  %v807_v0 = vmax.f32 %v806_v61, %v4503_v38  ;;  %v4511_v51 = vmax.f32 %v4510_v15, 0.0  ;;  %v4513_v16 = vmax.f32 %v4512_v26, 0.0  ;;  %v4542_v2 = vld [vmem:[#allocation113_spill] sm:$0xff]  ;;  %v4544_v15 = vld [vmem:[#allocation58_spill] sm:$0xff] }
 0x120   :  { %v815_v1 = vmax.f32 %v814_v58, %v4505_v5  ;;  %v823_v52 = vmax.f32 %v822_v25, %v4507_v31  ;;  %v831_v30 = vmax.f32 %v830_v35, %v4509_v33  ;;  %v4515_v36 = vmax.f32 %v4514_v7, 0.0  ;;  %v4546_v26 = vld [vmem:[#allocation114_spill] sm:$0xff]  ;;  %v4548_v7 = vld [vmem:[#allocation59_spill] sm:$0xff] }
 0x121   :  { %v839_v37 = vmax.f32 %v838_v3, %v4511_v51  ;;  %v847_v17 = vmax.f32 %v846_v62, %v4513_v16  ;;  %v4517_v61 = vmax.f32 %v4516_v43, 0.0  ;;  %v4519_v58 = vmax.f32 %v4518_v22, 0.0  ;;  %v4550_v43 = vld [vmem:[#allocation64_spill] sm:$0xff]  ;;  %v4552_v22 = vld [vmem:[#allocation65_spill] sm:$0xff] }
 0x122   :  { %v855_v21 = vmax.f32 %v854_v28, %v4515_v36  ;;  %v4521_v25 = vmax.f32 %v4520_v9, 0.0  ;;  %v4523_v35 = vmax.f32 %v4522_v42, 0.0  ;;  %v4525_v4 = vmax.f32 %v4524_v27, 0.0  ;;  %v4532_v28 = vld [vmem:[#allocation51_spill] sm:$0xff]  ;;  %v4554_v9 = vld [vmem:[#allocation66_spill] sm:$0xff]  ;;  %v4558_v27 = vld [vmem:[#allocation68_spill] sm:$0xff] }
 0x123   :  { %v863_v8 = vmax.f32 %v862_v59, %v4517_v61  ;;  %v808_v44 = vmax.f32 %v807_v0, %v4519_v58  ;;  %v4527_v19 = vmax.f32 %v4526_v40, 0.0  ;;  %v4529_v62 = vmax.f32 %v4528_v23, 0.0  ;;  %v4556_v42 = vld [vmem:[#allocation67_spill] sm:$0xff]  ;;  %v4560_v40 = vld [vmem:[#allocation69_spill] sm:$0xff]  ;;  %v4562_v23 = vld [vmem:[#allocation2_spill] sm:$0xff] }
 0x124   :  { %v816_v39 = vmax.f32 %v815_v1, %v4521_v25  ;;  %v824_v13 = vmax.f32 %v823_v52, %v4523_v35  ;;  %v832_v3 = vmax.f32 %v831_v30, %v4525_v4  ;;  %v4531_v11 = vmax.f32 %v4530_v41, 0.0  ;;  %v4564_v41 = vld [vmem:[#allocation70_spill] sm:$0xff] }
 0x125   :  { %v840_v20 = vmax.f32 %v839_v37, %v4527_v19  ;;  %v848_v12 = vmax.f32 %v847_v17, %v4529_v62  ;;  %v4533_v18 = vmax.f32 %v4532_v28, 0.0  ;;  %v4535_v46 = vmax.f32 %v4534_v10, 0.0  ;;  %v4566_v28 = vld [vmem:[#allocation7_spill] sm:$0xff] }
 0x126   :  { %v856_v49 = vmax.f32 %v855_v21, %v4531_v11  ;;  %v4537_v38 = vmax.f32 %v4536_v55, 0.0  ;;  %v4539_v5 = vmax.f32 %v4538_v34, 0.0  ;;  %v4541_v31 = vmax.f32 %v4540_v56, 0.0  ;;  %v4568_v10 = vld [vmem:[#allocation75_spill] sm:$0xff]  ;;  %v4570_v55 = vld [vmem:[#allocation8_spill] sm:$0xff]  ;;  %v4574_v56 = vld [vmem:[#allocation9_spill] sm:$0xff] }
 0x127   :  { %v864_v24 = vmax.f32 %v863_v8, %v4533_v18  ;;  %v809_v59 = vmax.f32 %v808_v44, %v4535_v46  ;;  %v4543_v33 = vmax.f32 %v4542_v2, 0.0  ;;  %v4545_v51 = vmax.f32 %v4544_v15, 0.0  ;;  %v4572_v34 = vld [vmem:[#allocation76_spill] sm:$0xff]  ;;  %v4576_v2 = vld [vmem:[#allocation77_spill] sm:$0xff]  ;;  %v4578_v15 = vld [vmem:[#allocation10_spill] sm:$0xff] }
 0x128   :  { %v817_v0 = vmax.f32 %v816_v39, %v4537_v38  ;;  %v825_v1 = vmax.f32 %v824_v13, %v4539_v5  ;;  %v833_v52 = vmax.f32 %v832_v3, %v4541_v31  ;;  %v4547_v16 = vmax.f32 %v4546_v26, 0.0  ;;  %v4580_v26 = vld [vmem:[#allocation78_spill] sm:$0xff] }
 0x129   :  { %v841_v30 = vmax.f32 %v840_v20, %v4543_v33  ;;  %v849_v37 = vmax.f32 %v848_v12, %v4545_v51  ;;  %v4549_v36 = vmax.f32 %v4548_v7, 0.0  ;;  %v4551_v61 = vmax.f32 %v4550_v43, 0.0  ;;  %v4582_v7 = vld [vmem:[#allocation15_spill] sm:$0xff] }
 0x12a   :  { %v857_v17 = vmax.f32 %v856_v49, %v4547_v16  ;;  %v4553_v58 = vmax.f32 %v4552_v22, 0.0  ;;  %v4555_v25 = vmax.f32 %v4554_v9, 0.0  ;;  %v4557_v35 = vmax.f32 %v4556_v42, 0.0  ;;  %v4584_v43 = vld [vmem:[#allocation83_spill] sm:$0xff]  ;;  %v4586_v22 = vld [vmem:[#allocation16_spill] sm:$0xff]  ;;  %v4590_v42 = vld [vmem:[#allocation17_spill] sm:$0xff] }
 0x12b   :  { %v865_v21 = vmax.f32 %v864_v24, %v4549_v36  ;;  %v810_v8 = vmax.f32 %v809_v59, %v4551_v61  ;;  %v4559_v4 = vmax.f32 %v4558_v27, 0.0  ;;  %v4561_v19 = vmax.f32 %v4560_v40, 0.0  ;;  %v4588_v9 = vld [vmem:[#allocation84_spill] sm:$0xff]  ;;  %v4592_v27 = vld [vmem:[#allocation85_spill] sm:$0xff]  ;;  %v4594_v40 = vld [vmem:[#allocation119_spill] sm:$0xff] }
 0x12c   :  { %v818_v44 = vmax.f32 %v817_v0, %v4553_v58  ;;  %v826_v39 = vmax.f32 %v825_v1, %v4555_v25  ;;  %v834_v13 = vmax.f32 %v833_v52, %v4557_v35  ;;  %v4563_v62 = vmax.f32 %v4562_v23, 0.0  ;;  %v4596_v23 = vld [vmem:[#allocation120_spill] sm:$0xff] }
 0x12d   :  { %v842_v3 = vmax.f32 %v841_v30, %v4559_v4  ;;  %v850_v20 = vmax.f32 %v849_v37, %v4561_v19  ;;  %v4565_v11 = vmax.f32 %v4564_v41, 0.0  ;;  %v4567_v18 = vmax.f32 %v4566_v28, 0.0 }
 0x12e   :  { %v858_v12 = vmax.f32 %v857_v17, %v4563_v62  ;;  %v4569_v46 = vmax.f32 %v4568_v10, 0.0  ;;  %v4571_v38 = vmax.f32 %v4570_v55, 0.0  ;;  %v4573_v5 = vmax.f32 %v4572_v34, 0.0  ;;  %v4601_v10 = vld [vmem:[#allocation90_spill] sm:$0xff]  ;;  %v4603_v55 = vld [vmem:[#allocation123_spill] sm:$0xff] }
 0x12f   :  { %v866_v49 = vmax.f32 %v865_v21, %v4565_v11  ;;  %v811_v24 = vmax.f32 %v810_v8, %v4567_v18  ;;  %v4575_v31 = vmax.f32 %v4574_v56, 0.0  ;;  %v4577_v33 = vmax.f32 %v4576_v2, 0.0 }
 0x130   :  { %v819_v59 = vmax.f32 %v818_v44, %v4569_v46  ;;  %v827_v0 = vmax.f32 %v826_v39, %v4571_v38  ;;  %v835_v1 = vmax.f32 %v834_v13, %v4573_v5  ;;  %v4579_v51 = vmax.f32 %v4578_v15, 0.0 }
 0x131   :  { %v843_v52 = vmax.f32 %v842_v3, %v4575_v31  ;;  %v851_v30 = vmax.f32 %v850_v20, %v4577_v33  ;;  %v4581_v16 = vmax.f32 %v4580_v26, 0.0  ;;  %v4583_v36 = vmax.f32 %v4582_v7, 0.0 }
 0x132   :  { %v859_v37 = vmax.f32 %v858_v12, %v4579_v51  ;;  %v4585_v61 = vmax.f32 %v4584_v43, 0.0  ;;  %v4587_v58 = vmax.f32 %v4586_v22, 0.0  ;;  %v4589_v25 = vmax.f32 %v4588_v9, 0.0 }
 0x133   :  { %v867_v17 = vmax.f32 %v866_v49, %v4581_v16  ;;  %v812_v21 = vmax.f32 %v811_v24, %v4583_v36  ;;  %v4591_v35 = vmax.f32 %v4590_v42, 0.0  ;;  %v4593_v4 = vmax.f32 %v4592_v27, 0.0 }
 0x134   :  { %v820_v8 = vmax.f32 %v819_v59, %v4585_v61  ;;  %v828_v44 = vmax.f32 %v827_v0, %v4587_v58  ;;  %v836_v39 = vmax.f32 %v835_v1, %v4589_v25  ;;  %v4595_v19 = vmax.f32 %v4594_v40, 0.0 }
 0x135   :  { %v844_v13 = vmax.f32 %v843_v52, %v4591_v35  ;;  %v852_v3 = vmax.f32 %v851_v30, %v4593_v4  ;;  %v4597_v62 = vmax.f32 %v4596_v23, 0.0  ;;  %v4598_v41 = vmax.f32 %v4363_v14, 0.0  ;;  %v4607_v14 = vld [vmem:[#allocation126_spill] sm:$0xff] }
 0x136   :  { %v860_v20 = vmax.f32 %v859_v37, %v4595_v19  ;;  %v4599_v49 = vmax.f32 %v4364_v57, 0.0  ;;  %v4600_v18 = vmax.f32 %v4365_v47, 0.0  ;;  %v4602_v46 = vmax.f32 %v4601_v10, 0.0 }
 0x137   :  { %v868_v12 = vmax.f32 %v867_v17, %v4597_v62  ;;  %v813_v11 = vmax.f32 %v812_v21, %v4598_v41  ;;  %v4604_v38 = vmax.f32 %v4603_v55, 0.0  ;;  %v4605_v34 = vmax.f32 %v4368_v63, 0.0 }
 0x138   :  { %v821_v28 = vmax.f32 %v820_v8, %v4599_v49  ;;  %v829_v24 = vmax.f32 %v828_v44, %v4600_v18  ;;  %v837_v59 = vmax.f32 %v836_v39, %v4602_v46  ;;  %v4606_v1 = vmax.f32 %v4369_v60, 0.0 }
 0x139   :  { %v845_v0 = vmax.f32 %v844_v13, %v4604_v38  ;;  %v853_v5 = vmax.f32 %v852_v3, %v4605_v34  ;;  %v4608_v31 = vmax.f32 %v4607_v14, 0.0  ;;  %v1197_v57 = vpack.c.bf16 %v3422_v29, %v3418_v53 }
 0x13a   :  { %v861_v56 = vmax.f32 %v860_v20, %v4606_v1  ;;  %v1202_v47 = vpack.c.bf16 %v3430_v48, %v3426_v54  ;;  %v1207_v2 = vpack.c.bf16 %v3438_v32, %v3434_v45  ;;  %v1212_v33 = vpack.c.bf16 %v3446_v6, %v3442_v50 }
 0x13b   :  { %v869_v52 = vmax.f32 %v868_v12, %v4608_v31  ;;  %v1217_v63 = vpack.c.bf16 %v821_v28, %v813_v11  ;;  %v1222_v30 = vpack.c.bf16 %v837_v59, %v829_v24  ;;  %v1227_v15 = vpack.c.bf16 %v853_v5, %v845_v0  ;;  %1198 = vst [vmem:[%s3627_s3] sm:$0xff] %v1197_v57  }
 0x13c   :  { %1305 = vst [vmem:[%s3627_s3 + $0x8] sm:$0xff] %v1202_v47  }
 0x13d   :  { %v1232_v60 = vpack.c.bf16 %v869_v52, %v861_v56  ;;  %1306 = vst [vmem:[%s3627_s3 + $0x10] sm:$0xff] %v1207_v2  }
 0x13e   :  { %1307 = vst [vmem:[%s3627_s3 + $0x18] sm:$0xff] %v1212_v33  }
 0x13f   :  { %1308 = vst [vmem:[%s3627_s3 + $0x20] sm:$0xff] %v1217_v63  }
 0x140   :  { %1309 = vst [vmem:[%s3627_s3 + $0x28] sm:$0xff] %v1222_v30  }
 0x141   :  { %1310 = vst [vmem:[%s3627_s3 + $0x30] sm:$0xff] %v1227_v15  }
 0x142   :  { %1311 = vst [vmem:[%s3627_s3 + $0x38] sm:$0xff] %v1232_v60  }

// kernel: ordinary_cnn_forward.8
= control target key start
LH: loop header
LB: loop body
LE: loop exit
PB: predicated region body
PF: predicated region fallthrough
CT: control target
= control target key end

     0   :  { %vm67_vm0 = vcmask 1041408   ;;  %s158_s0 = inlined_call_operand.vmem [shape: bf16[9,2,128], index: 0, kind: input, shape index: {}]   ;;  %s159_s1 = inlined_call_operand.vmem [shape: f32[1,128], index: 1, kind: input, shape index: {}]   ;;  %s160_s2 = inlined_call_operand.vmem [shape: f32[1,128], index: 2, kind: input, shape index: {}]   ;;  %s161_s3 = inlined_call_operand.vmem [shape: bf16[2,128], index: 3, kind: output, shape index: {}]  }
   0x1   :  { %v14_v0 = vld [vmem:[%s158_s0] sm:$0x1]  ;;  %v15_v1 = vld [vmem:[%s158_s0 + $0x1] sm:$0x1]  ;;  %v16_v2 = vld [vmem:[%s158_s0 + $0x2] sm:$0x1] }
   0x2   :  { %v17_v3 = vld [vmem:[%s158_s0 + $0x3] sm:$0x1]  ;;  %v18_v4 = vld [vmem:[%s158_s0 + $0x4] sm:$0x1]  ;;  %v19_v5 = vld [vmem:[%s158_s0 + $0x5] sm:$0x1]  ;;  %v23_v6 = vunpack.c.l.bf16 %v14_v0  ;;  %v24_v7 = vunpack.c.l.bf16 %v15_v1  ;;  %v25_v8 = vunpack.c.l.bf16 %v16_v2 }
   0x3   :  { %v20_v9 = vld [vmem:[%s158_s0 + $0x6] sm:$0x1]  ;;  %v21_v10 = vld [vmem:[%s158_s0 + $0x7] sm:$0x1]  ;;  %v22_v11 = vld [vmem:[%s158_s0 + $0x8] sm:$0x1]  ;;  %v26_v12 = vunpack.c.l.bf16 %v17_v3  ;;  %v27_v13 = vunpack.c.l.bf16 %v18_v4  ;;  %v28_v14 = vunpack.c.l.bf16 %v19_v5 }
   0x4   :  { %v29_v15 = vunpack.c.l.bf16 %v20_v9  ;;  %v30_v16 = vunpack.c.l.bf16 %v21_v10  ;;  %v31_v17 = vunpack.c.l.bf16 %v22_v11  ;;  %v91_v18 = vld [vmem:[%s159_s1] ss:$0 sm:$0xff] }
   0x5   :  { %v92_v19 = vld [vmem:[%s160_s2] ss:$0 sm:$0xff]  ;;  %v36_v20 = vmul.f32 %v91_v18, %v23_v6  ;;  %v37_v21 = vmul.f32 %v91_v18, %v24_v7  ;;  %v38_v22 = vmul.f32 %v91_v18, %v25_v8  ;;  %v39_v23 = vmul.f32 %v91_v18, %v26_v12 }
   0x6   :  { %v40_v24 = vmul.f32 %v91_v18, %v27_v13  ;;  %v41_v25 = vmul.f32 %v91_v18, %v28_v14  ;;  %v42_v26 = vmul.f32 %v91_v18, %v29_v15  ;;  %v43_v27 = vmul.f32 %v91_v18, %v30_v16 }
   0x7   :  { %v44_v28 = vmul.f32 %v91_v18, %v31_v17  ;;  %v49_v29 = vadd.f32 %v92_v19, %v36_v20  ;;  %v50_v30 = vadd.f32 %v92_v19, %v37_v21  ;;  %v51_v31 = vadd.f32 %v92_v19, %v38_v22 }
   0x8   :  { %v52_v32 = vadd.f32 %v92_v19, %v39_v23  ;;  %v53_v33 = vadd.f32 %v92_v19, %v40_v24  ;;  %v54_v34 = vadd.f32 %v92_v19, %v41_v25  ;;  %v55_v35 = vadd.f32 %v92_v19, %v42_v26 }
   0x9   :  { %v56_v36 = vadd.f32 %v92_v19, %v43_v27  ;;  %v57_v37 = vadd.f32 %v92_v19, %v44_v28  ;;  %v58_v38 = vmax.f32 %v49_v29, 0.0  ;;  %v59_v39 = vmax.f32 %v50_v30, 0.0 }
   0xa   :  { %v60_v40 = vmax.f32 %v51_v31, 0.0  ;;  %v61_v41 = vmax.f32 %v52_v32, 0.0  ;;  %v62_v42 = vmax.f32 %v53_v33, 0.0  ;;  %v63_v43 = vmax.f32 %v54_v34, 0.0 }
   0xb   :  { %v64_v44 = vmax.f32 %v55_v35, 0.0  ;;  %v65_v45 = vmax.f32 %v56_v36, 0.0  ;;  %v66_v46 = vmax.f32 %v57_v37, 0.0  ;;  %v68_v47 = vsel %vm67_vm0, %v58_v38, -inf }
   0xc   :  { %v69_v48 = vsel %vm67_vm0, %v59_v39, -inf  ;;  %v70_v49 = vsel %vm67_vm0, %v60_v40, -inf  ;;  %v71_v50 = vsel %vm67_vm0, %v61_v41, -inf  ;;  %v72_v51 = vsel %vm67_vm0, %v62_v42, -inf }
   0xd   :  { %v73_v52 = vmax.f32 %v68_v47, %v72_v51  ;;  %v74_v53 = vsel %vm67_vm0, %v63_v43, -inf  ;;  %v76_v54 = vsel %vm67_vm0, %v64_v44, -inf  ;;  %v78_v55 = vsel %vm67_vm0, %v65_v45, -inf }
   0xe   :  { %v75_v56 = vmax.f32 %v69_v48, %v74_v53  ;;  %v77_v57 = vmax.f32 %v70_v49, %v76_v54  ;;  %v79_v58 = vmax.f32 %v71_v50, %v78_v55  ;;  %v80_v59 = vsel %vm67_vm0, %v66_v46, -inf }
   0xf   :  { %v81_v60 = vmax.f32 %v73_v52, %v80_v59 }
  0x10   :  { %v83_v61 = vmax.f32 %v77_v57, %v79_v58 }
  0x11   :  { %v82_v62 = vmax.f32 %v81_v60, %v75_v56 }
  0x13   :  { %v84_v63 = vmax.f32 %v82_v62, %v83_v61 }
  0x15   :  { %v85_v0 = vpack.c.bf16 %v84_v63, %v84_v63 }
  0x17   :  { %86 = vst [vmem:[%s161_s3] sm:$0x1] %v85_v0 }

// kernel: ordinary_cnn_forward.7
= control target key start
LH: loop header
LB: loop body
LE: loop exit
PB: predicated region body
PF: predicated region fallthrough
CT: control target
= control target key end

     0   :  { %vm902_vm0 = vcmask 1040384   ;;  %vm904_vm1 = vcmask 1041408   ;;  %s1737_s1 = inlined_call_operand.vmem [shape: bf16[1152,128], index: 1, kind: input, shape index: {}]   ;;  %s1738_s0 = inlined_call_operand.vmem [shape: bf16[32,1152], index: 0, kind: input, shape index: {}]   ;;  %s1739_s2 = inlined_call_operand.vmem [shape: bf16[32,128], index: 2, kind: output, shape index: {0}]   ;;  %s1740_s3 = inlined_call_operand.vmem [shape: f32[8,128], index: 3, kind: output, shape index: {1}]  }
   0x1   :  { %v1300_v0 = vld [vmem:[%s1737_s1 + $0x38] sm:$0xff]  ;;  %v1299_v4 = vld [vmem:[%s1737_s1 + $0x30] sm:$0xff]  ;;  %v1298_v8 = vld [vmem:[%s1737_s1 + $0x28] sm:$0xff] }
   0x2   :  { %v1308_v1 = vld [vmem:[%s1737_s1 + $0x78] sm:$0xff]  ;;  %701 = vmatpush.bf16.msra.mxu0 %v1300_v0  ;;  %v1307_v5 = vld [vmem:[%s1737_s1 + $0x70] sm:$0xff]  ;;  %v1306_v9 = vld [vmem:[%s1737_s1 + $0x68] sm:$0xff] }
   0x3   :  { %v1316_v2 = vld [vmem:[%s1737_s1 + $0xb8] sm:$0xff]  ;;  %720 = vmatpush.bf16.msra.mxu1 %v1308_v1  ;;  %v1315_v6 = vld [vmem:[%s1737_s1 + $0xb0] sm:$0xff]  ;;  %v1314_v10 = vld [vmem:[%s1737_s1 + $0xa8] sm:$0xff] }
   0x4   :  { %v1324_v3 = vld [vmem:[%s1737_s1 + $0xf8] sm:$0xff]  ;;  %739 = vmatpush.bf16.msra.mxu2 %v1316_v2  ;;  %v1323_v7 = vld [vmem:[%s1737_s1 + $0xf0] sm:$0xff]  ;;  %v1322_v11 = vld [vmem:[%s1737_s1 + $0xe8] sm:$0xff] }
   0x5   :  { %758 = vmatpush.bf16.msra.mxu3 %v1324_v3  ;;  %v1297_v12 = vld [vmem:[%s1737_s1 + $0x20] sm:$0xff]  ;;  %v1296_v16 = vld [vmem:[%s1737_s1 + $0x18] sm:$0xff]  ;;  %v1295_v20 = vld [vmem:[%s1737_s1 + $0x10] sm:$0xff] }
   0x6   :  { %702 = vmatpush.bf16.msra.mxu0 %v1299_v4  ;;  %v1305_v13 = vld [vmem:[%s1737_s1 + $0x60] sm:$0xff]  ;;  %v1304_v17 = vld [vmem:[%s1737_s1 + $0x58] sm:$0xff]  ;;  %v1303_v21 = vld [vmem:[%s1737_s1 + $0x50] sm:$0xff] }
   0x7   :  { %721 = vmatpush.bf16.msra.mxu1 %v1307_v5  ;;  %v1313_v14 = vld [vmem:[%s1737_s1 + $0xa0] sm:$0xff]  ;;  %v1312_v18 = vld [vmem:[%s1737_s1 + $0x98] sm:$0xff]  ;;  %v1311_v22 = vld [vmem:[%s1737_s1 + $0x90] sm:$0xff] }
   0x8   :  { %740 = vmatpush.bf16.msra.mxu2 %v1315_v6  ;;  %v1321_v15 = vld [vmem:[%s1737_s1 + $0xe0] sm:$0xff]  ;;  %v1320_v19 = vld [vmem:[%s1737_s1 + $0xd8] sm:$0xff]  ;;  %v1319_v23 = vld [vmem:[%s1737_s1 + $0xd0] sm:$0xff] }
   0x9   :  { %759 = vmatpush.bf16.msra.mxu3 %v1323_v7  ;;  %v1294_v24 = vld [vmem:[%s1737_s1 + $0x8] sm:$0xff]  ;;  %v1293_v28 = vld [vmem:[%s1737_s1] sm:$0xff]  ;;  %v927_v39 = vld [vmem:[%s1738_s0 + $0x2c] sm:$0xf0] }
   0xa   :  { %703 = vmatpush.bf16.msra.mxu0 %v1298_v8  ;;  %v1302_v25 = vld [vmem:[%s1737_s1 + $0x48] sm:$0xff]  ;;  %v1301_v29 = vld [vmem:[%s1737_s1 + $0x40] sm:$0xff]  ;;  %v1332_v40 = vld [vmem:[%s1737_s1 + $0x138] sm:$0xff] }
   0xb   :  { %722 = vmatpush.bf16.msra.mxu1 %v1306_v9  ;;  %v1310_v26 = vld [vmem:[%s1737_s1 + $0x88] sm:$0xff]  ;;  %v1309_v30 = vld [vmem:[%s1737_s1 + $0x80] sm:$0xff]  ;;  %v1340_v41 = vld [vmem:[%s1737_s1 + $0x178] sm:$0xff] }
   0xc   :  { %741 = vmatpush.bf16.msra.mxu2 %v1314_v10  ;;  %v1318_v27 = vld [vmem:[%s1737_s1 + $0xc8] sm:$0xff]  ;;  %v1317_v31 = vld [vmem:[%s1737_s1 + $0xc0] sm:$0xff]  ;;  %v1348_v46 = vld [vmem:[%s1737_s1 + $0x1b8] sm:$0xff] }
   0xd   :  { %760 = vmatpush.bf16.msra.mxu3 %v1322_v11  ;;  %v917_v32 = vld [vmem:[%s1738_s0] sm:$0xf]  ;;  %v1279_v33 = vld [vmem:[%s1738_s0 + $0x20] sm:$0xf0]  ;;  %v919_v35 = vld [vmem:[%s1738_s0 + $0x24] sm:$0xf0] }
   0xe   :  { %704 = vmatpush.bf16.msra.mxu0 %v1297_v12  ;;  %v1275_v34 = vld [vmem:[%s1738_s0 + $0x4] sm:$0xf]  ;;  %v925_v36 = vld [vmem:[%s1738_s0 + $0x8] sm:$0xf]  ;;  %v1280_v37 = vld [vmem:[%s1738_s0 + $0x28] sm:$0xf0]  ;;  %v918_v42 = vor.u32 %v1279_v33, %v917_v32 }
   0xf   :  { %723 = vmatpush.bf16.msra.mxu1 %v1305_v13  ;;  %v1276_v38 = vld [vmem:[%s1738_s0 + $0xc] sm:$0xf]  ;;  %v922_v43 = vor.u32 %v1275_v34, %v919_v35  ;;  %v926_v44 = vor.u32 %v1280_v37, %v925_v36  ;;  %v1356_v47 = vld [vmem:[%s1737_s1 + $0x1f8] sm:$0xff]  ;;  %v1331_v48 = vld [vmem:[%s1737_s1 + $0x130] sm:$0xff] }
  0x10   :  { %742 = vmatpush.bf16.msra.mxu2 %v1313_v14  ;;  %v930_v45 = vor.u32 %v1276_v38, %v927_v39  ;;  %v1339_v49 = vld [vmem:[%s1737_s1 + $0x170] sm:$0xff]  ;;  %v1330_v52 = vld [vmem:[%s1737_s1 + $0x128] sm:$0xff]  ;;  %v1329_v56 = vld [vmem:[%s1737_s1 + $0x120] sm:$0xff] }
  0x11   :  { %761 = vmatpush.bf16.msra.mxu3 %v1321_v15  ;;  %v1347_v50 = vld [vmem:[%s1737_s1 + $0x1b0] sm:$0xff]  ;;  %v1338_v53 = vld [vmem:[%s1737_s1 + $0x168] sm:$0xff]  ;;  %v1337_v57 = vld [vmem:[%s1737_s1 + $0x160] sm:$0xff] }
  0x12   :  { %705 = vmatpush.bf16.msra.mxu0 %v1296_v16  ;;  %v1355_v51 = vld [vmem:[%s1737_s1 + $0x1f0] sm:$0xff]  ;;  %v1346_v54 = vld [vmem:[%s1737_s1 + $0x1a8] sm:$0xff]  ;;  %v1345_v58 = vld [vmem:[%s1737_s1 + $0x1a0] sm:$0xff] }
  0x13   :  { %724 = vmatpush.bf16.msra.mxu1 %v1304_v17  ;;  %v1354_v55 = vld [vmem:[%s1737_s1 + $0x1e8] sm:$0xff]  ;;  %v1353_v59 = vld [vmem:[%s1737_s1 + $0x1e0] sm:$0xff]  ;;  %v955_v63 = vld [vmem:[%s1738_s0 + $0x6c] sm:$0xf0] }
  0x14   :  { %743 = vmatpush.bf16.msra.mxu2 %v1312_v18  ;;  %v953_v60 = vld [vmem:[%s1738_s0 + $0x48] sm:$0xf]  ;;  %v1288_v61 = vld [vmem:[%s1738_s0 + $0x68] sm:$0xf0]  ;;  %v961_v0 = vld [vmem:[%s1738_s0 + $0x50] sm:$0xf] }
  0x15   :  { %762 = vmatpush.bf16.msra.mxu3 %v1320_v19  ;;  %v1284_v62 = vld [vmem:[%s1738_s0 + $0x4c] sm:$0xf]  ;;  %v1289_v1 = vld [vmem:[%s1738_s0 + $0x70] sm:$0xf0]  ;;  %v963_v3 = vld [vmem:[%s1738_s0 + $0x74] sm:$0xf0]  ;;  %v954_v6 = vor.u32 %v1288_v61, %v953_v60 }
  0x16   :  { %706 = vmatpush.bf16.msra.mxu0 %v1295_v20  ;;  %v1285_v2 = vld [vmem:[%s1738_s0 + $0x54] sm:$0xf]  ;;  %v1328_v4 = vld [vmem:[%s1737_s1 + $0x118] sm:$0xff]  ;;  %v958_v7 = vor.u32 %v1284_v62, %v955_v63  ;;  %v962_v8 = vor.u32 %v1289_v1, %v961_v0  ;;  %v1326_v16 = vld [vmem:[%s1737_s1 + $0x108] sm:$0xff] }
  0x17   :  { %725 = vmatpush.bf16.msra.mxu1 %v1303_v21  ;;  %v1336_v5 = vld [vmem:[%s1737_s1 + $0x158] sm:$0xff]  ;;  %v966_v9 = vor.u32 %v1285_v2, %v963_v3  ;;  %v1327_v12 = vld [vmem:[%s1737_s1 + $0x110] sm:$0xff]  ;;  %v1334_v17 = vld [vmem:[%s1737_s1 + $0x148] sm:$0xff] }
  0x18   :  { %744 = vmatpush.bf16.msra.mxu2 %v1311_v22  ;;  %v1344_v10 = vld [vmem:[%s1737_s1 + $0x198] sm:$0xff]  ;;  %v1335_v13 = vld [vmem:[%s1737_s1 + $0x150] sm:$0xff]  ;;  %v1342_v18 = vld [vmem:[%s1737_s1 + $0x188] sm:$0xff] }
  0x19   :  { %763 = vmatpush.bf16.msra.mxu3 %v1319_v23  ;;  %v1352_v11 = vld [vmem:[%s1737_s1 + $0x1d8] sm:$0xff]  ;;  %v1343_v14 = vld [vmem:[%s1737_s1 + $0x190] sm:$0xff]  ;;  %v1350_v19 = vld [vmem:[%s1737_s1 + $0x1c8] sm:$0xff] }
  0x1a   :  { %707 = vmatpush.bf16.msra.mxu0 %v1294_v24  ;;  %v1351_v15 = vld [vmem:[%s1737_s1 + $0x1d0] sm:$0xff]  ;;  %v1325_v20 = vld [vmem:[%s1737_s1 + $0x100] sm:$0xff]  ;;  %v1362_v38 = vld [vmem:[%s1737_s1 + $0x228] sm:$0xff] }
  0x1b   :  { %726 = vmatpush.bf16.msra.mxu1 %v1302_v25  ;;  %v1333_v21 = vld [vmem:[%s1737_s1 + $0x140] sm:$0xff]  ;;  %v933_v24 = vld [vmem:[%s1738_s0 + $0x10] sm:$0xf]  ;;  %v1281_v25 = vld [vmem:[%s1738_s0 + $0x30] sm:$0xf0] }
  0x1c   :  { %745 = vmatpush.bf16.msra.mxu2 %v1310_v26  ;;  %v1341_v22 = vld [vmem:[%s1737_s1 + $0x180] sm:$0xff]  ;;  %v1364_v26 = vld [vmem:[%s1737_s1 + $0x238] sm:$0xff]  ;;  %v934_v33 = vor.u32 %v1281_v25, %v933_v24  ;;  %v1363_v37 = vld [vmem:[%s1737_s1 + $0x230] sm:$0xff] }
  0x1d   :  { %764 = vmatpush.bf16.msra.mxu3 %v1318_v27  ;;  %v1349_v23 = vld [vmem:[%s1737_s1 + $0x1c0] sm:$0xff]  ;;  %v1277_v27 = vld [vmem:[%s1738_s0 + $0x14] sm:$0xf] }
  0x1e   :  { %708 = vmatpush.bf16.msra.mxu0 %v1293_v28  ;;  %v935_v28 = vld [vmem:[%s1738_s0 + $0x34] sm:$0xf0]  ;;  %v943_v32 = vld [vmem:[%s1738_s0 + $0x3c] sm:$0xf0] }
  0x1f   :  { %727 = vmatpush.bf16.msra.mxu1 %v1301_v29  ;;  %v941_v29 = vld [vmem:[%s1738_s0 + $0x18] sm:$0xf]  ;;  %v938_v34 = vor.u32 %v1277_v27, %v935_v28  ;;  %v1361_v39 = vld [vmem:[%s1737_s1 + $0x220] sm:$0xff] }
  0x20   :  { %746 = vmatpush.bf16.msra.mxu2 %v1309_v30  ;;  %v1282_v30 = vld [vmem:[%s1738_s0 + $0x38] sm:$0xf0] }
  0x21   :  { %765 = vmatpush.bf16.msra.mxu3 %v1317_v31  ;;  %709 = vmatmul.bf16.vlgmr.msra.gmra.mxu0 %v918_v42  ;;  %v1278_v31 = vld [vmem:[%s1738_s0 + $0x1c] sm:$0xf]  ;;  %v942_v35 = vor.u32 %v1282_v30, %v941_v29 }
  0x22   :  { %777 = vmatpush.bf16.msrb.mxu0 %v1332_v40  ;;  %728 = vmatmul.bf16.vlgmr.msra.gmra.mxu1 %v922_v43  ;;  %v946_v36 = vor.u32 %v1278_v31, %v943_v32  ;;  %v969_v40 = vld [vmem:[%s1738_s0 + $0x58] sm:$0xf]  ;;  %v1286_v42 = vld [vmem:[%s1738_s0 + $0x5c] sm:$0xf]  ;;  %v971_v43 = vld [vmem:[%s1738_s0 + $0x7c] sm:$0xf0] }
  0x23   :  { %796 = vmatpush.bf16.msrb.mxu1 %v1340_v41  ;;  %747 = vmatmul.bf16.vlgmr.msra.gmra.mxu2 %v926_v44  ;;  %v1290_v41 = vld [vmem:[%s1738_s0 + $0x78] sm:$0xf0]  ;;  %v977_v44 = vld [vmem:[%s1738_s0 + $0x60] sm:$0xf] }
  0x24   :  { %766 = vmatmul.bf16.vlgmr.msra.gmra.mxu3 %v930_v45  ;;  %815 = vmatpush.bf16.msrb.mxu2 %v1348_v46  ;;  %v1291_v45 = vld [vmem:[%s1738_s0 + $0x80] sm:$0xf0]  ;;  %v1360_v46 = vld [vmem:[%s1737_s1 + $0x218] sm:$0xff] }
  0x25   :  { %834 = vmatpush.bf16.msrb.mxu3 %v1356_v47  ;;  %v1287_v47 = vld [vmem:[%s1738_s0 + $0x64] sm:$0xf] }
  0x26   :  { %778 = vmatpush.bf16.msrb.mxu0 %v1331_v48  ;;  %v979_v48 = vld [vmem:[%s1738_s0 + $0x84] sm:$0xf0] }
  0x27   :  { %797 = vmatpush.bf16.msrb.mxu1 %v1339_v49  ;;  %v970_v49 = vor.u32 %v1290_v41, %v969_v40 }
  0x28   :  { %816 = vmatpush.bf16.msrb.mxu2 %v1347_v50  ;;  %v974_v50 = vor.u32 %v1286_v42, %v971_v43 }
  0x29   :  { %835 = vmatpush.bf16.msrb.mxu3 %v1355_v51  ;;  %v978_v51 = vor.u32 %v1291_v45, %v977_v44 }
  0x2a   :  { %779 = vmatpush.bf16.msrb.mxu0 %v1330_v52  ;;  %v982_v52 = vor.u32 %v1287_v47, %v979_v48 }
  0x2b   :  { %798 = vmatpush.bf16.msrb.mxu1 %v1338_v53  ;;  %v1359_v53 = vld [vmem:[%s1737_s1 + $0x210] sm:$0xff] }
  0x2c   :  { %817 = vmatpush.bf16.msrb.mxu2 %v1346_v54  ;;  %v1358_v54 = vld [vmem:[%s1737_s1 + $0x208] sm:$0xff] }
  0x2d   :  { %836 = vmatpush.bf16.msrb.mxu3 %v1354_v55  ;;  %v1357_v55 = vld [vmem:[%s1737_s1 + $0x200] sm:$0xff] }
  0x2e   :  { %780 = vmatpush.bf16.msrb.mxu0 %v1329_v56  ;;  %v949_v56 = vld [vmem:[%s1738_s0 + $0x20] sm:$0xf] }
  0x2f   :  { %799 = vmatpush.bf16.msrb.mxu1 %v1337_v57  ;;  %v1283_v57 = vld [vmem:[%s1738_s0 + $0x40] sm:$0xf0] }
  0x30   :  { %818 = vmatpush.bf16.msrb.mxu2 %v1345_v58  ;;  %v985_v58 = vld [vmem:[%s1738_s0 + $0x68] sm:$0xf]  ;;  %v950_v60 = vor.u32 %v1283_v57, %v949_v56 }
  0x31   :  { %837 = vmatpush.bf16.msrb.mxu3 %v1353_v59  ;;  %714 = vmatmul.bf16.gmra.mxu0 %v954_v6  ;;  %v1292_v59 = vld [vmem:[%s1738_s0 + $0x88] sm:$0xf0] }
  0x32   :  { %781 = vmatpush.bf16.msrb.mxu0 %v1328_v4  ;;  %733 = vmatmul.bf16.gmra.mxu1 %v958_v7  ;;  %v986_v61 = vor.u32 %v1292_v59, %v985_v58 }
  0x33   :  { %800 = vmatpush.bf16.msrb.mxu1 %v1336_v5  ;;  %752 = vmatmul.bf16.gmra.mxu2 %v962_v8 }
  0x34   :  { %771 = vmatmul.bf16.gmra.mxu3 %v966_v9  ;;  %819 = vmatpush.bf16.msrb.mxu2 %v1344_v10 }
  0x35   :  { %838 = vmatpush.bf16.msrb.mxu3 %v1352_v11 }
  0x36   :  { %782 = vmatpush.bf16.msrb.mxu0 %v1327_v12 }
  0x37   :  { %801 = vmatpush.bf16.msrb.mxu1 %v1335_v13 }
  0x38   :  { %820 = vmatpush.bf16.msrb.mxu2 %v1343_v14 }
  0x39   :  { %839 = vmatpush.bf16.msrb.mxu3 %v1351_v15 }
  0x3a   :  { %783 = vmatpush.bf16.msrb.mxu0 %v1326_v16 }
  0x3b   :  { %802 = vmatpush.bf16.msrb.mxu1 %v1334_v17 }
  0x3c   :  { %821 = vmatpush.bf16.msrb.mxu2 %v1342_v18 }
  0x3d   :  { %840 = vmatpush.bf16.msrb.mxu3 %v1350_v19 }
  0x3e   :  { %784 = vmatpush.bf16.msrb.mxu0 %v1325_v20 }
  0x3f   :  { %803 = vmatpush.bf16.msrb.mxu1 %v1333_v21 }
  0x40   :  { %822 = vmatpush.bf16.msrb.mxu2 %v1341_v22 }
  0x41   :  { %841 = vmatpush.bf16.msrb.mxu3 %v1349_v23  ;;  %785 = vmatmul.bf16.vlgmr.msrb.gmra.mxu0 %v934_v33 }
  0x42   :  { %853 = vmatpush.bf16.msra.mxu0 %v1364_v26  ;;  %804 = vmatmul.bf16.vlgmr.msrb.gmra.mxu1 %v938_v34 }
  0x43   :  { %1376 = vmatpush.bf16.msra.mxu1 %v1364_v26  ;;  %823 = vmatmul.bf16.vlgmr.msrb.gmra.mxu2 %v942_v35 }
  0x44   :  { %842 = vmatmul.bf16.vlgmr.msrb.gmra.mxu3 %v946_v36 }
  0x46   :  { %854 = vmatpush.bf16.msra.mxu0 %v1363_v37 }
  0x47   :  { %1377 = vmatpush.bf16.msra.mxu1 %v1363_v37 }
  0x4a   :  { %855 = vmatpush.bf16.msra.mxu0 %v1362_v38 }
  0x4b   :  { %1378 = vmatpush.bf16.msra.mxu1 %v1362_v38 }
  0x4e   :  { %856 = vmatpush.bf16.msra.mxu0 %v1361_v39 }
  0x4f   :  { %1379 = vmatpush.bf16.msra.mxu1 %v1361_v39 }
  0x51   :  { %790 = vmatmul.bf16.gmra.mxu0 %v970_v49 }
  0x52   :  { %857 = vmatpush.bf16.msra.mxu0 %v1360_v46  ;;  %809 = vmatmul.bf16.gmra.mxu1 %v974_v50 }
  0x53   :  { %1380 = vmatpush.bf16.msra.mxu1 %v1360_v46  ;;  %828 = vmatmul.bf16.gmra.mxu2 %v978_v51 }
  0x54   :  { %847 = vmatmul.bf16.gmra.mxu3 %v982_v52 }
  0x56   :  { %858 = vmatpush.bf16.msra.mxu0 %v1359_v53 }
  0x57   :  { %1381 = vmatpush.bf16.msra.mxu1 %v1359_v53 }
  0x5a   :  { %859 = vmatpush.bf16.msra.mxu0 %v1358_v54 }
  0x5b   :  { %1382 = vmatpush.bf16.msra.mxu1 %v1358_v54 }
  0x5e   :  { %860 = vmatpush.bf16.msra.mxu0 %v1357_v55 }
  0x5f   :  { %1383 = vmatpush.bf16.msra.mxu1 %v1357_v55 }
  0x61   :  { %861 = vmatmul.bf16.vlgmr.msra.gmra.mxu0 %v950_v60 }
  0x62   :  { %866 = vmatmul.bf16.vlgmr.msra.gmra.mxu1 %v986_v61 }
  0x9e   :  { %v710_v62 = vpop.f32.mrf.mxu0 }
  0x9f   :  { %v729_v63 = vpop.f32.mrf.mxu1 }
  0xa0   :  { %v730_v24 = vadd.f32 %v729_v63, %v710_v62 }
  0xa6   :  { %v748_v0 = vpop.f32.mrf.mxu2  ;;  %v712_v2 = vpop.f32.mrf.mxu0 }
  0xa7   :  { %v767_v1 = vpop.f32.mrf.mxu3  ;;  %v731_v3 = vpop.f32.mrf.mxu1  ;;  %v749_v25 = vadd.f32 %v748_v0, %v730_v24 }
  0xa8   :  { %v732_v26 = vadd.f32 %v731_v3, %v712_v2 }
  0xa9   :  { %v768_v33 = vadd.f32 %v767_v1, %v749_v25 }
  0xae   :  { %v750_v4 = vpop.f32.mrf.mxu2  ;;  %v715_v6 = vpop.f32.mrf.mxu0 }
  0xaf   :  { %v769_v5 = vpop.f32.mrf.mxu3  ;;  %v734_v7 = vpop.f32.mrf.mxu1  ;;  %v751_v29 = vadd.f32 %v750_v4, %v732_v26 }
  0xb0   :  { %v735_v27 = vadd.f32 %v734_v7, %v715_v6 }
  0xb1   :  { %v770_v38 = vadd.f32 %v769_v5, %v751_v29 }
  0xb6   :  { %v753_v8 = vpop.f32.mrf.mxu2  ;;  %v717_v10 = vpop.f32.mrf.mxu0 }
  0xb7   :  { %v772_v9 = vpop.f32.mrf.mxu3  ;;  %v736_v11 = vpop.f32.mrf.mxu1  ;;  %v754_v30 = vadd.f32 %v753_v8, %v735_v27 }
  0xb8   :  { %v737_v28 = vadd.f32 %v736_v11, %v717_v10 }
  0xb9   :  { %v773_v39 = vadd.f32 %v772_v9, %v754_v30 }
  0xbe   :  { %v755_v12 = vpop.f32.mrf.mxu2  ;;  %v786_v14 = vpop.f32.mrf.mxu0 }
  0xbf   :  { %v774_v13 = vpop.f32.mrf.mxu3  ;;  %v805_v15 = vpop.f32.mrf.mxu1  ;;  %v756_v31 = vadd.f32 %v755_v12, %v737_v28  ;;  %v787_v36 = vadd.f32 %v786_v14, %v768_v33 }
  0xc1   :  { %v775_v40 = vadd.f32 %v774_v13, %v756_v31  ;;  %v806_v44 = vadd.f32 %v805_v15, %v787_v36 }
  0xc6   :  { %v824_v16 = vpop.f32.mrf.mxu2  ;;  %v788_v18 = vpop.f32.mrf.mxu0 }
  0xc7   :  { %v843_v17 = vpop.f32.mrf.mxu3  ;;  %v807_v19 = vpop.f32.mrf.mxu1  ;;  %v789_v41 = vadd.f32 %v788_v18, %v770_v38  ;;  %v825_v46 = vadd.f32 %v824_v16, %v806_v44 }
  0xc9   :  { %v808_v49 = vadd.f32 %v807_v19, %v789_v41  ;;  %v844_v55 = vadd.f32 %v843_v17, %v825_v46 }
  0xce   :  { %v826_v20 = vpop.f32.mrf.mxu2  ;;  %v791_v22 = vpop.f32.mrf.mxu0 }
  0xcf   :  { %v845_v21 = vpop.f32.mrf.mxu3  ;;  %v810_v23 = vpop.f32.mrf.mxu1  ;;  %v792_v42 = vadd.f32 %v791_v22, %v773_v39  ;;  %v827_v52 = vadd.f32 %v826_v20, %v808_v49 }
  0xd1   :  { %v811_v50 = vadd.f32 %v810_v23, %v792_v42  ;;  %v846_v58 = vadd.f32 %v845_v21, %v827_v52 }
  0xd6   :  { %v829_v32 = vpop.f32.mrf.mxu2  ;;  %v793_v34 = vpop.f32.mrf.mxu0 }
  0xd7   :  { %v812_v35 = vpop.f32.mrf.mxu1  ;;  %v848_v37 = vpop.f32.mrf.mxu3  ;;  %v794_v43 = vadd.f32 %v793_v34, %v775_v40  ;;  %v830_v53 = vadd.f32 %v829_v32, %v811_v50 }
  0xd9   :  { %v813_v51 = vadd.f32 %v812_v35, %v794_v43  ;;  %v849_v59 = vadd.f32 %v848_v37, %v830_v53 }
  0xde   :  { %v831_v45 = vpop.f32.mrf.mxu2  ;;  %v862_v47 = vpop.f32.mrf.mxu0 }
  0xdf   :  { %v867_v48 = vpop.f32.mrf.mxu1  ;;  %v832_v54 = vadd.f32 %v831_v45, %v813_v51  ;;  %v850_v56 = vpop.f32.mrf.mxu3  ;;  %v863_v57 = vadd.f32 %v862_v47, %v844_v55 }
  0xe0   :  { %v868_v63 = vadd.f32 %v867_v48, %v849_v59 }
  0xe1   :  { %v851_v60 = vadd.f32 %v850_v56, %v832_v54  ;;  %v889_v2 = vmul.f32 %v863_v57, %v863_v57 }
  0xe2   :  { %v891_v7 = vmul.f32 %v868_v63, %v868_v63 }
  0xe6   :  { %v864_v61 = vpop.f32.mrf.mxu0 }
  0xe7   :  { %v869_v62 = vpop.f32.mrf.mxu1  ;;  %v865_v0 = vadd.f32 %v864_v61, %v846_v58 }
  0xe8   :  { %v870_v1 = vadd.f32 %v869_v62, %v851_v60 }
  0xe9   :  { %v1368_v3 = vpack.c.bf16 %v865_v0, %v863_v57  ;;  %v880_v4 = vadd.f32 %v865_v0, %v863_v57  ;;  %v890_v5 = vmul.f32 %v865_v0, %v865_v0 }
  0xea   :  { %v1373_v6 = vpack.c.bf16 %v870_v1, %v868_v63  ;;  %v892_v11 = vmul.f32 %v870_v1, %v870_v1 }
  0xeb   :  { %1369 = vst [vmem:[%s1739_s2] sm:$0xff] %v1368_v3   ;;  %v893_v8 = vadd.f32 %v890_v5, %v889_v2  ;;  %v881_v9 = vadd.f32 %v880_v4, %v868_v63 }
  0xec   :  { %1375 = vst [vmem:[%s1739_s2 + $0x8] sm:$0xff] %v1373_v6  }
  0xed   :  { %v882_v10 = vadd.f32 %v881_v9, %v870_v1  ;;  %v894_v12 = vadd.f32 %v893_v8, %v891_v7 }
  0xef   :  { %v883_v13 = vrot.slane %v882_v10, 4  ;;  %v895_v14 = vadd.f32 %v894_v12, %v892_v11 }
  0xf1   :  { %v884_v15 = vadd.f32 %v883_v13, %v882_v10  ;;  %v896_v16 = vrot.slane %v895_v14, 4 }
  0xf3   :  { %v885_v17 = vrot.slane %v884_v15, 2  ;;  %v897_v18 = vadd.f32 %v896_v16, %v895_v14 }
  0xf5   :  { %v886_v19 = vadd.f32 %v885_v17, %v884_v15  ;;  %v898_v20 = vrot.slane %v897_v18, 2 }
  0xf7   :  { %v887_v21 = vrot.slane %v886_v19, 1  ;;  %v899_v22 = vadd.f32 %v898_v20, %v897_v18 }
  0xf9   :  { %v900_v23 = vrot.slane %v899_v22, 1  ;;  %v888_v24 = vadd.f32 %v887_v21, %v886_v19 }
  0xfb   :  { %v901_v25 = vadd.f32 %v900_v23, %v899_v22 }
  0xfd   :  { %v903_v26 = vsel %vm902_vm0, %v888_v24, %v901_v25 }
  0xfe   :  { %v905_v27 = vsel %vm904_vm1, %v903_v26, 0.0 }
  0xff   :  { %906 = vst [vmem:[%s1740_s3] sm:$0xff] %v905_v27 }

// kernel: ordinary_cnn_forward.9
= control target key start
LH: loop header
LB: loop body
LE: loop exit
PB: predicated region body
PF: predicated region fallthrough
CT: control target
= control target key end

     0   :  { %14 = vsyncpa [#allocation3], 0  ;;  %s1758_s0 = inlined_call_operand.vmem [shape: bf16[2,1152], index: 0, kind: input, shape index: {}]   ;;  %s1759_s1 = inlined_call_operand.vmem [shape: bf16[1152,128], index: 1, kind: input, shape index: {}]   ;;  %s1760_s2 = inlined_call_operand.vmem [shape: f32[1,128], index: 2, kind: input, shape index: {}]   ;;  %s1761_s3 = inlined_call_operand.vmem [shape: f32[1,128], index: 3, kind: input, shape index: {}]   ;;  %s1762_s4 = inlined_call_operand.vmem [shape: f32[2,2], index: 4, kind: input, shape index: {}]   ;;  %s1763_s5 = inlined_call_operand.vmem [shape: bf16[128,128], index: 5, kind: input, shape index: {}]   ;;  %s1764_s6 = inlined_call_operand.vmem [shape: f32[1,128], index: 6, kind: input, shape index: {}]   ;;  %s1765_s7 = inlined_call_operand.hbm [shape: f32[2,128], index: 7, kind: output, shape index: {0}]   ;;  %s1766_s8 = inlined_call_operand.hbm [shape: f32[2,128], index: 8, kind: output, shape index: {1}]  }
   0x1   :  { %v1291_v0 = vld [vmem:[%s1759_s1 + $0x38] sm:$0xff]  ;;  %v1290_v4 = vld [vmem:[%s1759_s1 + $0x30] sm:$0xff]  ;;  %v1289_v8 = vld [vmem:[%s1759_s1 + $0x28] sm:$0xff] }
   0x2   :  { %v1307_v1 = vld [vmem:[%s1759_s1 + $0xb8] sm:$0xff]  ;;  %630 = vmatpush.bf16.msra.mxu0 %v1291_v0  ;;  %v1306_v5 = vld [vmem:[%s1759_s1 + $0xb0] sm:$0xff]  ;;  %v1305_v9 = vld [vmem:[%s1759_s1 + $0xa8] sm:$0xff] }
   0x3   :  { %v1315_v2 = vld [vmem:[%s1759_s1 + $0xf8] sm:$0xff]  ;;  %656 = vmatpush.bf16.msra.mxu2 %v1307_v1  ;;  %v1314_v6 = vld [vmem:[%s1759_s1 + $0xf0] sm:$0xff]  ;;  %v1313_v10 = vld [vmem:[%s1759_s1 + $0xe8] sm:$0xff] }
   0x4   :  { %v1299_v3 = vld [vmem:[%s1759_s1 + $0x78] sm:$0xff]  ;;  %669 = vmatpush.bf16.msra.mxu3 %v1315_v2  ;;  %v1298_v7 = vld [vmem:[%s1759_s1 + $0x70] sm:$0xff]  ;;  %v1297_v11 = vld [vmem:[%s1759_s1 + $0x68] sm:$0xff] }
   0x5   :  { %643 = vmatpush.bf16.msra.mxu1 %v1299_v3  ;;  %v1288_v12 = vld [vmem:[%s1759_s1 + $0x20] sm:$0xff]  ;;  %v1287_v16 = vld [vmem:[%s1759_s1 + $0x18] sm:$0xff]  ;;  %v1286_v21 = vld [vmem:[%s1759_s1 + $0x10] sm:$0xff] }
   0x6   :  { %631 = vmatpush.bf16.msra.mxu0 %v1290_v4  ;;  %v1304_v13 = vld [vmem:[%s1759_s1 + $0xa0] sm:$0xff]  ;;  %v1303_v17 = vld [vmem:[%s1759_s1 + $0x98] sm:$0xff]  ;;  %v1302_v22 = vld [vmem:[%s1759_s1 + $0x90] sm:$0xff] }
   0x7   :  { %657 = vmatpush.bf16.msra.mxu2 %v1306_v5  ;;  %v1312_v14 = vld [vmem:[%s1759_s1 + $0xe0] sm:$0xff]  ;;  %v1311_v18 = vld [vmem:[%s1759_s1 + $0xd8] sm:$0xff]  ;;  %v1310_v23 = vld [vmem:[%s1759_s1 + $0xd0] sm:$0xff] }
   0x8   :  { %670 = vmatpush.bf16.msra.mxu3 %v1314_v6  ;;  %v1296_v15 = vld [vmem:[%s1759_s1 + $0x60] sm:$0xff]  ;;  %v1295_v19 = vld [vmem:[%s1759_s1 + $0x58] sm:$0xff]  ;;  %v1294_v24 = vld [vmem:[%s1759_s1 + $0x50] sm:$0xff] }
   0x9   :  { %644 = vmatpush.bf16.msra.mxu1 %v1298_v7  ;;  %v30_v20 = vld [vmem:[%s1758_s0] sm:$0xff] }
   0xa   :  { %632 = vmatpush.bf16.msra.mxu0 %v1289_v8  ;;  %177 = vst [vmem:[#allocation1] ss:$9 sm:$0xff] %v30_v20 }
   0xb   :  { %658 = vmatpush.bf16.msra.mxu2 %v1305_v9 }
   0xc   :  { %671 = vmatpush.bf16.msra.mxu3 %v1313_v10 }
   0xd   :  { %645 = vmatpush.bf16.msra.mxu1 %v1297_v11 }
   0xe   :  { %633 = vmatpush.bf16.msra.mxu0 %v1288_v12 }
   0xf   :  { %659 = vmatpush.bf16.msra.mxu2 %v1304_v13 }
  0x10   :  { %672 = vmatpush.bf16.msra.mxu3 %v1312_v14 }
  0x11   :  { %646 = vmatpush.bf16.msra.mxu1 %v1296_v15 }
  0x12   :  { %634 = vmatpush.bf16.msra.mxu0 %v1287_v16 }
  0x13   :  { %660 = vmatpush.bf16.msra.mxu2 %v1303_v17 }
  0x14   :  { %673 = vmatpush.bf16.msra.mxu3 %v1311_v18 }
  0x15   :  { %647 = vmatpush.bf16.msra.mxu1 %v1295_v19 }
  0x16   :  { %15 = vsyncpa [#allocation5], 0  ;;  %635 = vmatpush.bf16.msra.mxu0 %v1286_v21  ;;  %v1285_v25 = vld [vmem:[%s1759_s1 + $0x8] sm:$0xff]  ;;  %v1284_v29 = vld [vmem:[%s1759_s1] sm:$0xff]  ;;  %vm747_vm0 = vcmask 1041408   ;;  %vm795_vm5 = vcmask 15360  }
  0x17   :  { %661 = vmatpush.bf16.msra.mxu2 %v1302_v22  ;;  %v1301_v26 = vld [vmem:[%s1759_s1 + $0x88] sm:$0xff]  ;;  %v1300_v30 = vld [vmem:[%s1759_s1 + $0x80] sm:$0xff]  ;;  %v1323_v31 = vld [vmem:[%s1759_s1 + $0x138] sm:$0xff]  ;;  %s937_s16 = sshll.u32 %s1765_s7, 4  ;;  %s1430_s17 = smov [#allocation2]   ;;  %s938_s16 = int_to_ptr.hbm [resolvable:$true] %s937_s16 }
  0x18   :  { %674 = vmatpush.bf16.msra.mxu3 %v1310_v23  ;;  %v1309_v27 = vld [vmem:[%s1759_s1 + $0xc8] sm:$0xff]  ;;  %v1339_v32 = vld [vmem:[%s1759_s1 + $0x1b8] sm:$0xff]  ;;  %v1308_v33 = vld [vmem:[%s1759_s1 + $0xc0] sm:$0xff]  ;;  %s948_s20 = sshll.u32 %s1766_s8, 4  ;;  %s949_s20 = int_to_ptr.hbm [resolvable:$true] %s948_s20 }
  0x19   :  { %648 = vmatpush.bf16.msra.mxu1 %v1294_v24  ;;  %v1293_v28 = vld [vmem:[%s1759_s1 + $0x48] sm:$0xff]  ;;  %v1292_v34 = vld [vmem:[%s1759_s1 + $0x40] sm:$0xff]  ;;  %v1347_v35 = vld [vmem:[%s1759_s1 + $0x1f8] sm:$0xff] }
  0x1a   :  { %636 = vmatpush.bf16.msra.mxu0 %v1285_v25  ;;  %v1331_v36 = vld [vmem:[%s1759_s1 + $0x178] sm:$0xff]  ;;  %v1322_v37 = vld [vmem:[%s1759_s1 + $0x130] sm:$0xff]  ;;  %v178_v42 = vld [vmem:[#allocation1] sm:$0xff] }
  0x1b   :  { %662 = vmatpush.bf16.msra.mxu2 %v1301_v26  ;;  %v1338_v38 = vld [vmem:[%s1759_s1 + $0x1b0] sm:$0xff]  ;;  %v181_v43 = vld [vmem:[#allocation1 + $0x1b] sm:$0xff]  ;;  %v31_v46 = vld [vmem:[%s1758_s0 + $0x8] sm:$0x1] }
  0x1c   :  { %675 = vmatpush.bf16.msra.mxu3 %v1309_v27  ;;  %v1346_v39 = vld [vmem:[%s1759_s1 + $0x1f0] sm:$0xff]  ;;  %v1605_v47 = vld [vmem:[#allocation1 + $0x24] sm:$0xff]  ;;  %v1319_v58 = vld [vmem:[%s1759_s1 + $0x118] sm:$0xff] }
  0x1d   :  { %649 = vmatpush.bf16.msra.mxu1 %v1293_v28  ;;  %v1330_v40 = vld [vmem:[%s1759_s1 + $0x170] sm:$0xff]  ;;  %v1607_v48 = vld [vmem:[#allocation1 + $0x3f] sm:$0xff]  ;;  %v1321_v50 = vld [vmem:[%s1759_s1 + $0x128] sm:$0xff] }
  0x1e   :  { %637 = vmatpush.bf16.msra.mxu0 %v1284_v29  ;;  %v180_v41 = vld [vmem:[#allocation1 + $0x12] sm:$0xff]  ;;  %v179_v44 = vld [vmem:[#allocation1 + $0x9] sm:$0xff]  ;;  %v1320_v54 = vld [vmem:[%s1759_s1 + $0x120] sm:$0xff] }
  0x1f   :  { %663 = vmatpush.bf16.msra.mxu2 %v1300_v30  ;;  %v1600_v45 = vld [vmem:[#allocation1 + $0x36] sm:$0xff]  ;;  %v1609_v49 = vld [vmem:[#allocation1 + $0x2d] sm:$0xff]  ;;  %v1336_v55 = vld [vmem:[%s1759_s1 + $0x1a0] sm:$0xff] }
  0x20   :  { %676 = vmatpush.bf16.msra.mxu3 %v1308_v33  ;;  %187 = vst [vmem:[#allocation1] ss:$9 sm:$0xff] %v31_v46  ;;  %v1337_v51 = vld [vmem:[%s1759_s1 + $0x1a8] sm:$0xff]  ;;  %v1344_v56 = vld [vmem:[%s1759_s1 + $0x1e0] sm:$0xff]  ;;  %v1335_v59 = vld [vmem:[%s1759_s1 + $0x198] sm:$0xff] }
  0x21   :  { %650 = vmatpush.bf16.msra.mxu1 %v1292_v34  ;;  %638 = vmatmul.bf16.vlgmr.msra.gmra.mxu0 %v178_v42  ;;  %v1345_v52 = vld [vmem:[%s1759_s1 + $0x1e8] sm:$0xff]  ;;  %v1328_v57 = vld [vmem:[%s1759_s1 + $0x160] sm:$0xff]  ;;  %v1343_v60 = vld [vmem:[%s1759_s1 + $0x1d8] sm:$0xff] }
  0x22   :  { %682 = vmatpush.bf16.msrb.mxu0 %v1323_v31  ;;  %664 = vmatmul.bf16.vlgmr.msra.gmra.mxu2 %v180_v41  ;;  %v1329_v53 = vld [vmem:[%s1759_s1 + $0x168] sm:$0xff]  ;;  %v1327_v61 = vld [vmem:[%s1759_s1 + $0x158] sm:$0xff]  ;;  %v1318_v62 = vld [vmem:[%s1759_s1 + $0x110] sm:$0xff] }
  0x23   :  { %708 = vmatpush.bf16.msrb.mxu2 %v1339_v32  ;;  %677 = vmatmul.bf16.vlgmr.msra.gmra.mxu3 %v181_v43  ;;  %v1334_v63 = vld [vmem:[%s1759_s1 + $0x190] sm:$0xff]  ;;  %v1317_v2 = vld [vmem:[%s1759_s1 + $0x108] sm:$0xff]  ;;  %v1316_v6 = vld [vmem:[%s1759_s1 + $0x100] sm:$0xff] }
  0x24   :  { %721 = vmatpush.bf16.msrb.mxu3 %v1347_v35  ;;  %651 = vmatmul.bf16.vlgmr.msra.gmra.mxu1 %v179_v44  ;;  %v1342_v0 = vld [vmem:[%s1759_s1 + $0x1d0] sm:$0xff]  ;;  %v1333_v3 = vld [vmem:[%s1759_s1 + $0x188] sm:$0xff]  ;;  %v1332_v7 = vld [vmem:[%s1759_s1 + $0x180] sm:$0xff] }
  0x25   :  { %695 = vmatpush.bf16.msrb.mxu1 %v1331_v36  ;;  %v1326_v1 = vld [vmem:[%s1759_s1 + $0x150] sm:$0xff]  ;;  %v1341_v4 = vld [vmem:[%s1759_s1 + $0x1c8] sm:$0xff]  ;;  %v1355_v8 = vld [vmem:[%s1759_s1 + $0x238] sm:$0xff] }
  0x26   :  { %683 = vmatpush.bf16.msrb.mxu0 %v1322_v37  ;;  %v1325_v5 = vld [vmem:[%s1759_s1 + $0x148] sm:$0xff]  ;;  %v1340_v9 = vld [vmem:[%s1759_s1 + $0x1c0] sm:$0xff]  ;;  %v1354_v11 = vld [vmem:[%s1759_s1 + $0x230] sm:$0xff] }
  0x27   :  { %709 = vmatpush.bf16.msrb.mxu2 %v1338_v38  ;;  %v1324_v10 = vld [vmem:[%s1759_s1 + $0x140] sm:$0xff]  ;;  %v1353_v12 = vld [vmem:[%s1759_s1 + $0x228] sm:$0xff]  ;;  %v1351_v14 = vld [vmem:[%s1759_s1 + $0x218] sm:$0xff] }
  0x28   :  { %722 = vmatpush.bf16.msrb.mxu3 %v1346_v39  ;;  %v1352_v13 = vld [vmem:[%s1759_s1 + $0x220] sm:$0xff]  ;;  %v1350_v15 = vld [vmem:[%s1759_s1 + $0x210] sm:$0xff]  ;;  %v1349_v16 = vld [vmem:[%s1759_s1 + $0x208] sm:$0xff]  ;;  %v1429_v39 = vmov 2.0  }
  0x29   :  { %696 = vmatpush.bf16.msrb.mxu1 %v1330_v40  ;;  %v1348_v17 = vld [vmem:[%s1759_s1 + $0x200] sm:$0xff]  ;;  %1369 = vrcp.f32 %v1429_v39  ;;  %s1431_s1 = smov [#allocation4]  }
  0x2a   :  { %684 = vmatpush.bf16.msrb.mxu0 %v1321_v50  ;;  %v188_v18 = vld [vmem:[#allocation1] sm:$0xff]  ;;  %s946_s7 = sshll.u32 %s1431_s1, 4  ;;  %s947_s7 = int_to_ptr.vmem [resolvable:$true] %s946_s7 }
  0x2b   :  { %710 = vmatpush.bf16.msrb.mxu2 %v1337_v51 }
  0x2c   :  { %723 = vmatpush.bf16.msrb.mxu3 %v1345_v52 }
  0x2d   :  { %697 = vmatpush.bf16.msrb.mxu1 %v1329_v53 }
  0x2e   :  { %685 = vmatpush.bf16.msrb.mxu0 %v1320_v54 }
  0x2f   :  { %711 = vmatpush.bf16.msrb.mxu2 %v1336_v55  ;;  %v1370_v41 = vpop.eup %1369 }
  0x30   :  { %724 = vmatpush.bf16.msrb.mxu3 %v1344_v56  ;;  %v756_v43 = vmul.f32 2.0, %v1370_v41  ;;  %vm760_vm1 = vweird.f32 %v1370_v41 }
  0x31   :  { %698 = vmatpush.bf16.msrb.mxu1 %v1328_v57 }
  0x32   :  { %686 = vmatpush.bf16.msrb.mxu0 %v1319_v58 }
  0x33   :  { %712 = vmatpush.bf16.msrb.mxu2 %v1335_v59 }
  0x34   :  { %725 = vmatpush.bf16.msrb.mxu3 %v1343_v60 }
  0x35   :  { %699 = vmatpush.bf16.msrb.mxu1 %v1327_v61 }
  0x36   :  { %687 = vmatpush.bf16.msrb.mxu0 %v1318_v62 }
  0x37   :  { %713 = vmatpush.bf16.msrb.mxu2 %v1334_v63 }
  0x38   :  { %726 = vmatpush.bf16.msrb.mxu3 %v1342_v0 }
  0x39   :  { %700 = vmatpush.bf16.msrb.mxu1 %v1326_v1 }
  0x3a   :  { %688 = vmatpush.bf16.msrb.mxu0 %v1317_v2 }
  0x3b   :  { %714 = vmatpush.bf16.msrb.mxu2 %v1333_v3 }
  0x3c   :  { %727 = vmatpush.bf16.msrb.mxu3 %v1341_v4 }
  0x3d   :  { %701 = vmatpush.bf16.msrb.mxu1 %v1325_v5 }
  0x3e   :  { %689 = vmatpush.bf16.msrb.mxu0 %v1316_v6  ;;  %v1363_v6 = vld [vmem:[%s1763_s5 + $0x38] sm:$0xff] }
  0x3f   :  { %715 = vmatpush.bf16.msrb.mxu2 %v1332_v7 }
  0x40   :  { %728 = vmatpush.bf16.msrb.mxu3 %v1340_v9  ;;  %v1361_v9 = vld [vmem:[%s1763_s5 + $0x28] sm:$0xff] }
  0x41   :  { %702 = vmatpush.bf16.msrb.mxu1 %v1324_v10  ;;  %690 = vmatmul.bf16.vlgmr.msrb.gmra.mxu0 %v1605_v47  ;;  %v757_v47 = vsub.f32 1.0, %v756_v43 }
  0x42   :  { %734 = vmatpush.bf16.msra.mxu0 %v1355_v8  ;;  %716 = vmatmul.bf16.vlgmr.msrb.gmra.mxu2 %v1600_v45  ;;  %v1362_v8 = vld [vmem:[%s1763_s5 + $0x30] sm:$0xff] }
  0x43   :  { %729 = vmatmul.bf16.vlgmr.msrb.gmra.mxu3 %v1607_v48  ;;  %v758_v50 = vmul.f32 %v1370_v41, %v757_v47  ;;  %892 = vmatpush.bf16.msra.mxu2 %v1363_v6 }
  0x44   :  { %703 = vmatmul.bf16.vlgmr.msrb.gmra.mxu1 %v1609_v49 }
  0x45   :  { %v759_v54 = vadd.f32 %v1370_v41, %v758_v50 }
  0x46   :  { %735 = vmatpush.bf16.msra.mxu0 %v1354_v11 }
  0x47   :  { %v761_v57 = vsel %vm760_vm1, %v1370_v41, %v759_v54  ;;  %893 = vmatpush.bf16.msra.mxu2 %v1362_v8 }
  0x4a   :  { %736 = vmatpush.bf16.msra.mxu0 %v1353_v12  ;;  %v1360_v12 = vld [vmem:[%s1763_s5 + $0x20] sm:$0xff] }
  0x4b   :  { %894 = vmatpush.bf16.msra.mxu2 %v1361_v9 }
  0x4e   :  { %737 = vmatpush.bf16.msra.mxu0 %v1352_v13 }
  0x4f   :  { %895 = vmatpush.bf16.msra.mxu2 %v1360_v12 }
  0x52   :  { %738 = vmatpush.bf16.msra.mxu0 %v1351_v14 }
  0x56   :  { %739 = vmatpush.bf16.msra.mxu0 %v1350_v15  ;;  %v1359_v15 = vld [vmem:[%s1763_s5 + $0x18] sm:$0xff] }
  0x57   :  { %896 = vmatpush.bf16.msra.mxu2 %v1359_v15 }
  0x5a   :  { %740 = vmatpush.bf16.msra.mxu0 %v1349_v16 }
  0x5e   :  { %741 = vmatpush.bf16.msra.mxu0 %v1348_v17 }
  0x61   :  { %742 = vmatmul.bf16.vlgmr.msra.gmra.mxu0 %v188_v18  ;;  %v784_v18 = vld [vmem:[%s1760_s2] sm:$0x1] }
  0x9e   :  { %v639_v19 = vpop.f32.mrf.mxu0 }
  0xa1   :  { %v652_v20 = vpop.f32.mrf.mxu1 }
  0xa2   :  { %v653_v29 = vadd.f32 %v652_v20, %v639_v19  ;;  %v1358_v19 = vld [vmem:[%s1763_s5 + $0x10] sm:$0xff] }
  0xa3   :  { %897 = vmatpush.bf16.msra.mxu2 %v1358_v19 }
  0xa5   :  { %v665_v21 = vpop.f32.mrf.mxu2 }
  0xa6   :  { %v678_v22 = vpop.f32.mrf.mxu3  ;;  %v641_v23 = vpop.f32.mrf.mxu0  ;;  %v666_v31 = vadd.f32 %v665_v21, %v653_v29  ;;  %v1356_v29 = vld [vmem:[%s1763_s5] sm:$0xff] }
  0xa8   :  { %v679_v35 = vadd.f32 %v678_v22, %v666_v31  ;;  %v1357_v22 = vld [vmem:[%s1763_s5 + $0x8] sm:$0xff] }
  0xa9   :  { %v654_v24 = vpop.f32.mrf.mxu1  ;;  %898 = vmatpush.bf16.msra.mxu2 %v1357_v22 }
  0xaa   :  { %v1367_v24 = vld [vmem:[%s1761_s3] ss:$0 sm:$0xff] }
  0xad   :  { %v667_v25 = vpop.f32.mrf.mxu2  ;;  %899 = vmatpush.bf16.msra.mxu2 %v1356_v29 }
  0xae   :  { %v680_v26 = vpop.f32.mrf.mxu3 }
  0xbe   :  { %v691_v27 = vpop.f32.mrf.mxu0 }
  0xbf   :  { %v692_v37 = vadd.f32 %v691_v27, %v679_v35 }
  0xc1   :  { %v704_v28 = vpop.f32.mrf.mxu1 }
  0xc2   :  { %v705_v40 = vadd.f32 %v704_v28, %v692_v37  ;;  %v794_v28 = vld [vmem:[%s1762_s4] sm:$0x3] }
  0xc5   :  { %v717_v30 = vpop.f32.mrf.mxu2 }
  0xc6   :  { %v730_v32 = vpop.f32.mrf.mxu3  ;;  %v693_v33 = vpop.f32.mrf.mxu0  ;;  %v718_v42 = vadd.f32 %v717_v30, %v705_v40 }
  0xc8   :  { %v731_v44 = vadd.f32 %v730_v32, %v718_v42  ;;  %v1368_v32 = vld [vmem:[%s1764_s6] ss:$0 sm:$0xff]  ;;  %s935_s6 = sshll.u32 %s1430_s17, 4  ;;  %s936_s6 = int_to_ptr.vmem [resolvable:$true] %s935_s6 }
  0xc9   :  { %v706_v34 = vpop.f32.mrf.mxu1 }
  0xcd   :  { %v719_v36 = vpop.f32.mrf.mxu2 }
  0xce   :  { %v732_v38 = vpop.f32.mrf.mxu3 }
  0xde   :  { %v743_v45 = vpop.f32.mrf.mxu0 }
  0xdf   :  { %v744_v46 = vadd.f32 %v743_v45, %v731_v44 }
  0xe1   :  { %v748_v48 = vsel %vm747_vm0, %v744_v46, 0.0 }
  0xe2   :  { %v749_v49 = vrot.slane %v748_v48, 4 }
  0xe4   :  { %v750_v51 = vadd.f32 %v749_v49, %v748_v48 }
  0xe6   :  { %v751_v52 = vrot.slane %v750_v51, 2  ;;  %v745_v53 = vpop.f32.mrf.mxu0 }
  0xe8   :  { %v752_v55 = vadd.f32 %v751_v52, %v750_v51 }
  0xea   :  { %v753_v56 = vrot.slane %v752_v55, 1 }
  0xec   :  { %v754_v58 = vadd.f32 %v753_v56, %v752_v55 }
  0xee   :  { %v762_v59 = vmul.f32 %v761_v57, %v754_v58 }
  0xf0   :  { %v763_v60 = vsub.f32 %v744_v46, %v762_v59 }
  0xf2   :  { %v764_v61 = vmul.f32 %v763_v60, %v763_v60 }
  0xf4   :  { %v765_v62 = vsel %vm747_vm0, %v764_v61, 0.0 }
  0xf5   :  { %v766_v63 = vrot.slane %v765_v62, 4 }
  0xf7   :  { %v767_v0 = vadd.f32 %v766_v63, %v765_v62 }
  0xf9   :  { %v768_v1 = vrot.slane %v767_v0, 2 }
  0xfb   :  { %v769_v2 = vadd.f32 %v768_v1, %v767_v0 }
  0xfd   :  { %v770_v3 = vrot.slane %v769_v2, 1 }
  0xff   :  { %v771_v4 = vadd.f32 %v770_v3, %v769_v2 }
 0x101   :  { %v772_v5 = vmul.f32 %v771_v4, %v761_v57 }
 0x103   :  { %v773_v7 = vadd.f32 1e-05, %v772_v5 }
 0x105   :  { %1371 = vrsqrt.f32 %v773_v7  ;;  %vm780_vm3 = vweird.f32 %v773_v7 }
 0x10b   :  { %v1372_v10 = vpop.eup %1371 }
 0x10c   :  { %v775_v11 = vmul.f32 %v1372_v10, %v773_v7  ;;  %vm781_vm2 = vweird.f32 %v1372_v10 }
 0x10d   :  { %vm782_vm4 = vmor %vm780_vm3, %vm781_vm2 }
 0x10e   :  { %v776_v13 = vmul.f32 %v1372_v10, %v775_v11 }
 0x110   :  { %v777_v14 = vmul.f32 0.5, %v776_v13 }
 0x112   :  { %v778_v16 = vsub.f32 1.5, %v777_v14 }
 0x114   :  { %v779_v17 = vmul.f32 %v1372_v10, %v778_v16 }
 0x116   :  { %v783_v20 = vsel %vm782_vm4, %v1372_v10, %v779_v17 }
 0x117   :  { %v785_v21 = vmul.f32 %v784_v18, %v783_v20 }
 0x119   :  { %v786_v23 = vperm.slane %v785_v21, 0 }
 0x11b   :  { %v787_v25 = vmul.f32 %v786_v23, %v763_v60 }
 0x11d   :  { %v792_v26 = vadd.f32 %v1367_v24, %v787_v25 }
 0x11f   :  { %v793_v27 = vmax.f32 %v792_v26, 0.0 }
 0x121   :  { %1250 = vmatpush.msk.msra.mxu1 %vm747_vm0, %v793_v27 }
 0x122   :  { %1251 = vmatmul.msk.f32.vlgmr.msra.gmra.mxu1 %vm795_vm5, %v794_v28 }
 0x19f   :  { %v819_v30 = vpop.f32.mrf.mxu1 }
 0x1a0   :  { %822 = vst [vmem:[#allocation2] sm:$0x3] %v819_v30  ;;  %v823_v31 = vpack.c.bf16 %v819_v30, %v819_v30 }
 0x1a1   :  { %940 = dma.vmem_to_hbm [thread:$0]  %s936_s6, 32, %s938_s16, [#allocation3]  }
 0x1a2   :  { %900 = vmatmul.bf16.vlgmr.msra.gmra.mxu2 %v823_v31 }
 0x225   :  { %v901_v33 = vpop.f32.mrf.mxu2 }
 0x226   :  { %v902_v34 = vadd.f32 %v1368_v32, %v901_v33 }
 0x228   :  { %v905_v35 = vsel %vm747_vm0, %v902_v34, -inf }
 0x229   :  { %906 = vmax.xlane.f32.xlu0 %v905_v35 }
 0x22d   :  { %v903_v36 = vpop.f32.mrf.mxu2 }
 0x29c   :  { %v907_v37 = vpop.xlane.xlu0 %906 }
 0x29d   :  { %v908_v38 = vsub.f32 %v902_v34, %v907_v37 }
 0x29f   :  { %v909_v39 = vmul.f32 1.442695, %v908_v38 }
 0x2a1   :  { %1373 = vpow2.f32 %v909_v39 }
 0x2a7   :  { %v1374_v40 = vpop.eup %1373 }
 0x2a8   :  { %v911_v41 = vsel %vm747_vm0, %v1374_v40, 0.0 }
 0x2a9   :  { %912 = vadd.xlane.f32.xlu0 %v911_v41 }
 0x31c   :  { %v913_v42 = vpop.xlane.xlu0 %912 }
 0x31d   :  { %1375 = vrcp.f32 %v913_v42  ;;  %v925_v46 = vand.u32 2147483648, %v913_v42  ;;  %v923_v48 = vand.u32 2147483647, %v913_v42  ;;  %vm919_vm7 = vweird.f32 %v913_v42 }
 0x31f   :  { %v926_v50 = vor.u32 1.1754944e-38, %v925_v46  ;;  %vm924_vm9 = vcmp.eq.f32.partialorder %v923_v48, 8.507059e+37 }
 0x323   :  { %v1376_v43 = vpop.eup %1375 }
 0x324   :  { %v915_v44 = vmul.f32 %v1376_v43, %v913_v42  ;;  %vm920_vm6 = vweird.f32 %v1376_v43 }
 0x325   :  { %vm921_vm8 = vmor %vm919_vm7, %vm920_vm6 }
 0x326   :  { %v916_v45 = vsub.f32 1.0, %v915_v44 }
 0x328   :  { %v917_v47 = vmul.f32 %v1376_v43, %v916_v45 }
 0x32a   :  { %v918_v49 = vadd.f32 %v1376_v43, %v917_v47 }
 0x32c   :  { %v922_v51 = vsel %vm921_vm8, %v1376_v43, %v918_v49 }
 0x32d   :  { %v927_v52 = vsel %vm924_vm9, %v926_v50, %v922_v51 }
 0x32e   :  { %v928_v53 = vmul.f32 %v1374_v40, %v927_v52 }
 0x330   :  { %929 = vst [vmem:[#allocation4] sm:$0x3] %v928_v53 }
 0x331   :  { %951 = dma.vmem_to_hbm [thread:$0]  %s947_s7, 32, %s949_s20, [#allocation5]  }
 0x332   :  { %1425 = dma.done.wait [#allocation3], 32  }
 0x333   :  { %1426 = vsyncadd [#allocation3], 4294967264 }
 0x334   :  { %1427 = dma.done.wait [#allocation5], 32  }
 0x335   :  { %1428 = vsyncadd [#allocation5], 4294967264 }
 0x336   :  { %960 = vsyncpa [#allocation3], 1 }
 0x337   :  { %961 = vsyncpa [#allocation5], 1 }

</bundles_post_ra>
